<compile_context>
chip_gen: v7x
topology: tpu7x:2x2x1
jax: 0.10.0
libtpu: 0.0.40
codegen_flags: <defaults>
</compile_context>

<pallas_src>
import functools
import math

import jax
import jax.numpy as jnp
from jax.experimental import pallas as pl
from jax.experimental.pallas import tpu as pltpu

_MIB = 1024 * 1024


def _round_up(n, m):
    return ((n + m - 1) // m) * m


# ----------------------------------------------------------------------------
# Kernel 1: fused [LayerNorm] -> (bf16 x) @ (bf16 W) + b -> [ReLU] -> [+residual]
# ----------------------------------------------------------------------------
def _fused_linear_kernel(*refs, use_ln, use_relu, use_residual, eps):
    idx = 0
    if use_ln:
        ln_ref = refs[idx]                                  # SMEM (2,): [alpha, bias]
        idx += 1
    x_ref, w_ref, b_ref = refs[idx], refs[idx + 1], refs[idx + 2]
    idx += 3
    if use_residual:
        res_ref = refs[idx]
        idx += 1
    o_ref = refs[idx]

    x = x_ref[...]                                          # (tm, K)
    if use_ln:
        x = x.astype(jnp.float32)                           # LN statistics in f32
        d = x.shape[-1]
        mean = jnp.mean(x, axis=-1, keepdims=True)
        var = jnp.sum((x - mean) ** 2, axis=-1, keepdims=True) / (d - 1)   # unbiased (torch std)
        inv = pl.reciprocal(jnp.sqrt(var) + eps, approx=True)              # eps on std, EUP divide
        x = ln_ref[0] * (x - mean) * inv + ln_ref[1]

    xb = x.astype(jnp.bfloat16)                             # bf16 operands -> native MXU path
    wb = w_ref[...].astype(jnp.bfloat16)
    y = jnp.dot(xb, wb, preferred_element_type=jnp.float32) + b_ref[...].astype(jnp.float32)
    if use_relu:
        y = jnp.maximum(y, 0.0)
    if use_residual:
        y = y + res_ref[...].astype(jnp.float32)            # residual add in f32
    o_ref[...] = y.astype(o_ref.dtype)


def fused_linear(x2d, w, b, *, ln_params=None, relu=False, residual=None,
                 out_dtype=jnp.float32, tm_max=512, tn_max=512):
    """y = [+residual] [relu]( [LN](x2d) @ w + b ).  x2d: (M, K), w: (K, N), b: (N,)."""
    M, K = x2d.shape
    N = w.shape[1]

    # Row tile: 128-multiples when M is large (MXU feed / unmasked stores), else multiple of 8.
    if M >= 128:
        tm = min(tm_max, _round_up(M, 128))
    else:
        tm = _round_up(M, 8)
    Mp = _round_up(M, tm)
    pad = Mp - M
    xp = jnp.pad(x2d, ((0, pad), (0, 0))) if pad else x2d

    # Output-column tile: largest 128-multiple divisor of N (keeps weight tiles VMEM-bounded
    # for d_ff-sized layers, lane-dense stores); fall back to full N otherwise.
    tn = N
    for cand in (tn_max, 384, 256, 128):
        if N >= cand and N % cand == 0:
            tn = cand
            break

    inputs, in_specs = [], []
    if ln_params is not None:
        inputs.append(ln_params)
        in_specs.append(pl.BlockSpec(memory_space=pltpu.MemorySpace.SMEM))
    inputs += [xp, w, b.reshape(1, N)]
    in_specs += [
        pl.BlockSpec((tm, K), lambda i, j: (i, 0)),          # row tile of x (full K)
        pl.BlockSpec((K, tn), lambda i, j: (0, j)),          # column tile of weight
        pl.BlockSpec((1, tn), lambda i, j: (0, j)),          # bias tile
    ]
    if residual is not None:
        rp = jnp.pad(residual, ((0, pad), (0, 0))) if pad else residual
        inputs.append(rp)
        in_specs.append(pl.BlockSpec((tm, tn), lambda i, j: (i, j)))

    kernel = functools.partial(
        _fused_linear_kernel,
        use_ln=ln_params is not None,
        use_relu=relu,
        use_residual=residual is not None,
        eps=1e-6,
    )

    # Scoped-VMEM hint from the double-buffered tile footprint (clamped to [32, 64] MiB so it
    # is valid on v5e/v6e/v7x alike).
    bpe_x = x2d.dtype.itemsize
    bpe_w = w.dtype.itemsize
    est = 2 * (tm * K * bpe_x + K * tn * bpe_w + tn * 4 + 2 * tm * tn * 4) + (1 << 20)
    vmem_limit = int(min(max(est, 32 * _MIB), 64 * _MIB))

    cost = pl.CostEstimate(
        flops=int(2 * M * K * N),
        transcendentals=int(M if ln_params is not None else 0),
        bytes_accessed=int(M * K * bpe_x + K * N * bpe_w + N * 4
                           + M * N * jnp.dtype(out_dtype).itemsize
                           + (M * N * 4 if residual is not None else 0)),
    )

    out = pl.pallas_call(
        kernel,
        out_shape=jax.ShapeDtypeStruct((Mp, N), out_dtype),
        grid_spec=pltpu.PrefetchScalarGridSpec(
            num_scalar_prefetch=0,
            grid=(Mp // tm, N // tn),
            in_specs=in_specs,
            out_specs=pl.BlockSpec((tm, tn), lambda i, j: (i, j)),
        ),
        compiler_params=pltpu.CompilerParams(
            dimension_semantics=("parallel", "parallel"),
            vmem_limit_bytes=vmem_limit),
        cost_estimate=cost,
    )(*inputs)
    return out[:M] if pad else out


# ----------------------------------------------------------------------------
# Kernel 2: per-batch masked softmax attention over all heads (no HBM transposes)
# ----------------------------------------------------------------------------
def _attention_kernel(q_ref, k_ref, v_ref, m_ref, ctx_ref, *score_refs,
                      scale, num_heads, return_scores):
    q = q_ref[...]                                          # (Sq, H, dk)
    k = k_ref[...]                                          # (Sk, H, dk)
    v = v_ref[...]                                          # (Sk, H, dk)
    mask = m_ref[...]                                       # (Sq, Sk)

    ctx_heads, score_heads = [], []
    for h in range(num_heads):                              # static unroll over heads
        qh = q[:, h, :].astype(jnp.bfloat16)
        kh = k[:, h, :].astype(jnp.bfloat16)
        vh = v[:, h, :].astype(jnp.bfloat16)
        s = jax.lax.dot_general(qh, kh, (((1,), (1,)), ((), ())),
                                preferred_element_type=jnp.float32) * scale   # (Sq, Sk) f32
        s = jnp.where(mask == 0, -1e9, s)                   # masked_fill(mask == 0, -1e9)
        mx = jnp.max(s, axis=-1, keepdims=True)
        p = jnp.exp(s - mx)                                 # softmax math stays f32
        denom = jnp.sum(p, axis=-1, keepdims=True)
        attn = p * pl.reciprocal(denom, approx=True)
        ctx_heads.append(jnp.dot(attn.astype(jnp.bfloat16), vh,
                                 preferred_element_type=jnp.float32))
        if return_scores:
            score_heads.append(attn)

    ctx_ref[...] = jnp.stack(ctx_heads, axis=1).astype(ctx_ref.dtype)          # (Sq, H, dk)
    if return_scores:
        score_refs[0][...] = jnp.stack(score_heads, axis=0).astype(score_refs[0].dtype)


def _head_slab_spec(arr, sel):
    """BlockSpec that feeds one (S, H, dk) slab per batch straight from a (B,S,H,dk) array or
    a packed (B,S,G,H,dk) projection output (sel indexes G) -- no XLA transpose/copy needed."""
    S_, H_, dk_ = arr.shape[1], arr.shape[-2], arr.shape[-1]
    if arr.ndim == 4:
        return pl.BlockSpec((None, S_, H_, dk_), lambda b: (b, 0, 0, 0))
    return pl.BlockSpec((None, S_, None, H_, dk_),
                        lambda b, _s=sel: (b, 0, _s, 0, 0))


def mha_attention(q, k, v, mask, *, return_scores=False, out_dtype=jnp.bfloat16):
    """q/k/v: (array, sel) pairs laid out (B, S, H, dk) (sel=None) or packed (B, S, G, H, dk)
    (sel picks the G slot).  mask: (B, Sq, Sk).
    Returns ctx (B, Sq, H, dk) [, attention probs (B, H, Sq, Sk) if return_scores]."""
    (q_arr, q_sel), (k_arr, k_sel), (v_arr, v_sel) = q, k, v
    B, Sq = q_arr.shape[0], q_arr.shape[1]
    H, dk = q_arr.shape[-2], q_arr.shape[-1]
    Sk = k_arr.shape[1]
    scale = 1.0 / math.sqrt(dk)

    kernel = functools.partial(_attention_kernel, scale=scale, num_heads=H,
                               return_scores=return_scores)

    ctx_shape = jax.ShapeDtypeStruct((B, Sq, H, dk), out_dtype)
    ctx_spec = pl.BlockSpec((None, Sq, H, dk), lambda b: (b, 0, 0, 0))
    if return_scores:
        out_shape = (ctx_shape, jax.ShapeDtypeStruct((B, H, Sq, Sk), jnp.float32))
        out_specs = (ctx_spec, pl.BlockSpec((None, H, Sq, Sk), lambda b: (b, 0, 0, 0)))
    else:
        out_shape = ctx_shape                               # self-attn: no O(S^2) scores writeback
        out_specs = ctx_spec

    bpe = q_arr.dtype.itemsize
    bytes_accessed = int((B * Sq * H * dk + 2 * B * Sk * H * dk) * bpe
                         + B * Sq * Sk * mask.dtype.itemsize
                         + B * Sq * H * dk * jnp.dtype(out_dtype).itemsize
                         + (B * H * Sq * Sk * 4 if return_scores else 0))
    cost = pl.CostEstimate(flops=int(4 * B * H * Sq * Sk * dk),
                           transcendentals=int(B * H * Sq * Sk),
                           bytes_accessed=bytes_accessed)

    est = 2 * ((Sq * H * dk + 2 * Sk * H * dk) * bpe + Sq * Sk * 4 + Sq * H * dk * 4
               + (H * Sq * Sk * 4 if return_scores else Sq * Sk * 4)) + (1 << 20)
    vmem_limit = int(min(max(est, 32 * _MIB), 64 * _MIB))

    res = pl.pallas_call(
        kernel,
        out_shape=out_shape,
        grid_spec=pltpu.PrefetchScalarGridSpec(
            num_scalar_prefetch=0,
            grid=(B,),
            in_specs=[_head_slab_spec(q_arr, q_sel),
                      _head_slab_spec(k_arr, k_sel),
                      _head_slab_spec(v_arr, v_sel),
                      pl.BlockSpec((None, Sq, Sk), lambda b: (b, 0, 0))],
            out_specs=out_specs,
        ),
        compiler_params=pltpu.CompilerParams(dimension_semantics=("parallel",),
                                             vmem_limit_bytes=vmem_limit),
        cost_estimate=cost,
    )(q_arr, k_arr, v_arr, mask)
    if return_scores:
        return res[0], res[1]
    return res


# ----------------------------------------------------------------------------
# DecoderBlock forward (Pallas path)
# ----------------------------------------------------------------------------
@functools.partial(jax.jit, static_argnames=("num_heads",))
def decoder_block_pallas(x, enc, src_mask, tgt_mask, fp, *, num_heads):
    B, S, D = x.shape
    Se = enc.shape[1]
    H = num_heads
    dk = D // H

    xf = x.reshape(B * S, D)
    encf = enc.reshape(B * Se, D)
    tgt_m = tgt_mask.reshape(B, S, S)
    src_m = src_mask.reshape(B, S, Se)

    # ---- sublayer 0: self-attention (pre-norm; LN fused into the packed QKV projection) ----
    qkv = fused_linear(xf, fp["self_wqkv"], fp["self_bqkv"], ln_params=fp["ln0"],
                       out_dtype=jnp.bfloat16)                          # (B*S, 3D) bf16
    qkv5 = qkv.reshape(B, S, 3, H, dk)                                  # free reshape, no transpose
    ctx = mha_attention((qkv5, 0), (qkv5, 1), (qkv5, 2), tgt_m, return_scores=False)
    x1 = fused_linear(ctx.reshape(B * S, D), fp["self_wo"], fp["self_bo"], residual=xf)

    # ---- sublayer 1: cross-attention (LN only on the query input, per the module) ----
    qc = fused_linear(x1, fp["cross_wq"], fp["cross_bq"], ln_params=fp["ln1"],
                      out_dtype=jnp.bfloat16)
    kv = fused_linear(encf, fp["cross_wkv"], fp["cross_bkv"], out_dtype=jnp.bfloat16)  # no LN
    q4 = qc.reshape(B, S, H, dk)
    kv5 = kv.reshape(B, Se, 2, H, dk)
    ctx, cross_scores = mha_attention((q4, None), (kv5, 0), (kv5, 1), src_m,
                                      return_scores=True)
    x2 = fused_linear(ctx.reshape(B * S, D), fp["cross_wo"], fp["cross_bo"], residual=x1)

    # ---- sublayer 2: feed-forward (LN + linear1 + ReLU fused; linear2 + residual fused) ----
    h = fused_linear(x2, fp["ffn_w1"], fp["ffn_b1"], ln_params=fp["ln2"], relu=True,
                     out_dtype=jnp.bfloat16)
    x3 = fused_linear(h, fp["ffn_w2"], fp["ffn_b2"], residual=x2)

    return x3.reshape(B, S, D), cross_scores


# ----------------------------------------------------------------------------
# Parameter prep (concat QKV / KV once, bf16 weight masters for the kernel path)
# ----------------------------------------------------------------------------
def prepare_fast_params(p):
    bf = lambda a: a.astype(jnp.bfloat16)
    return {
        "ln0": p["ln0"], "ln1": p["ln1"], "ln2": p["ln2"],
        "self_wqkv": bf(jnp.concatenate([p["self_wq"], p["self_wk"], p["self_wv"]], axis=1)),
        "self_bqkv": jnp.concatenate([p["self_bq"], p["self_bk"], p["self_bv"]]),
        "self_wo": bf(p["self_wo"]), "self_bo": p["self_bo"],
        "cross_wq": bf(p["cross_wq"]), "cross_bq": p["cross_bq"],
        "cross_wkv": bf(jnp.concatenate([p["cross_wk"], p["cross_wv"]], axis=1)),
        "cross_bkv": jnp.concatenate([p["cross_bk"], p["cross_bv"]]),
        "cross_wo": bf(p["cross_wo"]), "cross_bo": p["cross_bo"],
        "ffn_w1": bf(p["ffn_w1"]), "ffn_b1": p["ffn_b1"],
        "ffn_w2": bf(p["ffn_w2"]), "ffn_b2": p["ffn_b2"],
    }


# ----------------------------------------------------------------------------
# Pure-JAX f32 reference (mirrors the PyTorch module exactly, eval mode)
# ----------------------------------------------------------------------------
def _layer_norm_ref(x, ln, eps=1e-6):
    alpha, beta = ln[0], ln[1]
    mean = jnp.mean(x, axis=-1, keepdims=True)
    var = jnp.sum((x - mean) ** 2, axis=-1, keepdims=True) / (x.shape[-1] - 1)
    return alpha * (x - mean) / (jnp.sqrt(var) + eps) + beta


def _mha_ref(q_in, k_in, v_in, mask, wq, bq, wk, bk, wv, bv, wo, bo, num_heads):
    B, Sq, D = q_in.shape
    Sk = k_in.shape[1]
    dk = D // num_heads
    q = (q_in @ wq + bq).reshape(B, Sq, num_heads, dk).transpose(0, 2, 1, 3)
    k = (k_in @ wk + bk).reshape(B, Sk, num_heads, dk).transpose(0, 2, 1, 3)
    v = (v_in @ wv + bv).reshape(B, Sk, num_heads, dk).transpose(0, 2, 1, 3)
    s = jnp.einsum("bhqd,bhkd->bhqk", q, k) * (1.0 / math.sqrt(dk))
    s = jnp.where(mask == 0.0, -1e9, s)
    attn = jax.nn.softmax(s, axis=-1)
    ctx = jnp.einsum("bhqk,bhkd->bhqd", attn, v)
    ctx = ctx.transpose(0, 2, 1, 3).reshape(B, Sq, D)
    return ctx @ wo + bo, attn


def decoder_block_ref(x, enc, src_mask, tgt_mask, p, *, num_heads):
    xn = _layer_norm_ref(x, p["ln0"])
    sa, _ = _mha_ref(xn, xn, xn, tgt_mask,
                     p["self_wq"], p["self_bq"], p["self_wk"], p["self_bk"],
                     p["self_wv"], p["self_bv"], p["self_wo"], p["self_bo"], num_heads)
    x = x + sa
    xn = _layer_norm_ref(x, p["ln1"])
    ca, cross_scores = _mha_ref(xn, enc, enc, src_mask,
                                p["cross_wq"], p["cross_bq"], p["cross_wk"], p["cross_bk"],
                                p["cross_wv"], p["cross_bv"], p["cross_wo"], p["cross_bo"],
                                num_heads)
    x = x + ca
    xn = _layer_norm_ref(x, p["ln2"])
    h = jnp.maximum(xn @ p["ffn_w1"] + p["ffn_b1"], 0.0)
    x = x + (h @ p["ffn_w2"] + p["ffn_b2"])
    return x, cross_scores


# ----------------------------------------------------------------------------
# Parameter init (mimics nn.Linear's uniform(-1/sqrt(fan_in), 1/sqrt(fan_in)))
# ----------------------------------------------------------------------------
def _init_linear(key, fan_in, fan_out):
    kw, kb = jax.random.split(key)
    bound = 1.0 / math.sqrt(fan_in)
    w = jax.random.uniform(kw, (fan_in, fan_out), jnp.float32, -bound, bound)
    b = jax.random.uniform(kb, (fan_out,), jnp.float32, -bound, bound)
    return w, b


def init_decoder_params(key, d_model, d_ff):
    ks = jax.random.split(key, 10)
    p = {}
    p["self_wq"], p["self_bq"] = _init_linear(ks[0], d_model, d_model)
    p["self_wk"], p["self_bk"] = _init_linear(ks[1], d_model, d_model)
    p["self_wv"], p["self_bv"] = _init_linear(ks[2], d_model, d_model)
    p["self_wo"], p["self_bo"] = _init_linear(ks[3], d_model, d_model)
    p["cross_wq"], p["cross_bq"] = _init_linear(ks[4], d_model, d_model)
    p["cross_wk"], p["cross_bk"] = _init_linear(ks[5], d_model, d_model)
    p["cross_wv"], p["cross_bv"] = _init_linear(ks[6], d_model, d_model)
    p["cross_wo"], p["cross_bo"] = _init_linear(ks[7], d_model, d_model)
    p["ffn_w1"], p["ffn_b1"] = _init_linear(ks[8], d_model, d_ff)
    p["ffn_w2"], p["ffn_b2"] = _init_linear(ks[9], d_ff, d_model)
    # LayerNormalization: alpha=1, bias=0 (scalars), matching the module's init.
    p["ln0"] = jnp.array([1.0, 0.0], jnp.float32)
    p["ln1"] = jnp.array([1.0, 0.0], jnp.float32)
    p["ln2"] = jnp.array([1.0, 0.0], jnp.float32)
    return p


if __name__ == "__main__":
    # Small shapes consistent with the module.
    B, S, Se, d_model, num_heads, d_ff = 2, 8, 16, 32, 4, 64

    key = jax.random.PRNGKey(0)
    kx, ke, kp = jax.random.split(key, 3)
    x = jax.random.normal(kx, (B, S, d_model), jnp.float32)
    enc = jax.random.normal(ke, (B, Se, d_model), jnp.float32)
    params = init_decoder_params(kp, d_model, d_ff)
    fast_params = prepare_fast_params(params)   # concat + bf16 cast done once, outside jit

    # Causal target mask (B,1,S,S); source mask all ones except last 3 source tokens of batch 1.
    tgt_mask = jnp.broadcast_to(jnp.tril(jnp.ones((S, S), jnp.float32)), (B, 1, S, S))
    src_mask = jnp.ones((B, 1, S, Se), jnp.float32)
    src_mask = src_mask.at[1, :, :, Se - 3:].set(0.0)

    out, cross_scores = decoder_block_pallas(x, enc, src_mask, tgt_mask, fast_params,
                                             num_heads=num_heads)
    out = jax.block_until_ready(out)
    cross_scores = jax.block_until_ready(cross_scores)

    ref_out, ref_scores = decoder_block_ref(x, enc, src_mask, tgt_mask, params,
                                            num_heads=num_heads)

    assert out.shape == (B, S, d_model)
    assert cross_scores.shape == (B, num_heads, S, Se)
    # Tolerances account for bf16 matmul operands / bf16 intermediate activations
    # (f32 accumulation, f32 LN/softmax math) vs the pure-f32 reference.
    assert jnp.allclose(out, ref_out, atol=8e-2, rtol=8e-2), "decoder output mismatch vs reference"
    assert jnp.allclose(cross_scores, ref_scores, atol=5e-2, rtol=5e-2), \
        "cross-attention scores mismatch vs reference"

    print("KERNEL_OK")
</pallas_src>

<mosaic_0001>
module attributes {stable_mosaic.version = 11 : i64} {
  func.func @_fused_linear_kernel(%arg0: i32, %arg1: i32, %arg2: memref<2xf32, #tpu.memory_space<smem>>, %arg3: memref<16x32xf32, #tpu.memory_space<vmem>>, %arg4: memref<32x96xbf16, #tpu.memory_space<vmem>>, %arg5: memref<1x96xf32, #tpu.memory_space<vmem>>, %arg6: memref<16x96xbf16, #tpu.memory_space<vmem>>) attributes {dimension_semantics = [#tpu.dimension_semantics<parallel>, #tpu.dimension_semantics<parallel>], iteration_bounds = array<i64: 1, 1>, scalar_prefetch = 0 : i64, scratch_operands = 0 : i64, tpu.core_type = #tpu.core_type<tc>, window_params = [{transform_indices = @transform_0, window_bounds = array<i64: 2>}, {transform_indices = @transform_1, window_bounds = array<i64: 16, 32>}, {transform_indices = @transform_2, window_bounds = array<i64: 32, 96>}, {transform_indices = @transform_3, window_bounds = array<i64: 1, 96>}, {transform_indices = @transform_4, window_bounds = array<i64: 16, 96>}]} {
    %c0 = arith.constant 0 : index
    %c0_0 = arith.constant 0 : index
    %0 = vector.load %arg3[%c0, %c0_0] : memref<16x32xf32, #tpu.memory_space<vmem>>, vector<16x32xf32>
    %cst = arith.constant dense<0.000000e+00> : vector<16xf32>
    %1 = vector.multi_reduction <add>, %0, %cst [1] : vector<16x32xf32> to vector<16xf32>
    %2 = vector.shape_cast %1 : vector<16xf32> to vector<16x1xf32>
    %cst_1 = arith.constant 3.200000e+01 : f32
    %3 = vector.broadcast %cst_1 : f32 to vector<16x1xf32>
    %4 = arith.divf %2, %3 : vector<16x1xf32>
    %5 = vector.broadcast %4 : vector<16x1xf32> to vector<16x32xf32>
    %6 = arith.subf %0, %5 : vector<16x32xf32>
    %7 = arith.mulf %6, %6 : vector<16x32xf32>
    %cst_2 = arith.constant dense<0.000000e+00> : vector<16xf32>
    %8 = vector.multi_reduction <add>, %7, %cst_2 [1] : vector<16x32xf32> to vector<16xf32>
    %9 = vector.shape_cast %8 : vector<16xf32> to vector<16x1xf32>
    %cst_3 = arith.constant 3.100000e+01 : f32
    %10 = vector.broadcast %cst_3 : f32 to vector<16x1xf32>
    %11 = arith.divf %9, %10 : vector<16x1xf32>
    %12 = math.sqrt %11 : vector<16x1xf32>
    %cst_4 = arith.constant 9.99999997E-7 : f32
    %13 = vector.broadcast %cst_4 : f32 to vector<16x1xf32>
    %14 = arith.addf %12, %13 : vector<16x1xf32>
    %15 = tpu.reciprocal %14 {approx = true} : vector<16x1xf32> -> vector<16x1xf32>
    %c0_5 = arith.constant 0 : index
    %16 = memref.load %arg2[%c0_5] : memref<2xf32, #tpu.memory_space<smem>>
    %17 = vector.broadcast %4 : vector<16x1xf32> to vector<16x32xf32>
    %18 = arith.subf %0, %17 : vector<16x32xf32>
    %19 = vector.broadcast %16 : f32 to vector<16x32xf32>
    %20 = arith.mulf %19, %18 : vector<16x32xf32>
    %21 = vector.broadcast %15 : vector<16x1xf32> to vector<16x32xf32>
    %22 = arith.mulf %20, %21 : vector<16x32xf32>
    %c1 = arith.constant 1 : index
    %23 = memref.load %arg2[%c1] : memref<2xf32, #tpu.memory_space<smem>>
    %24 = vector.broadcast %23 : f32 to vector<16x32xf32>
    %25 = arith.addf %22, %24 : vector<16x32xf32>
    %26 = arith.truncf %25 : vector<16x32xf32> to vector<16x32xbf16>
    %c0_6 = arith.constant 0 : index
    %c0_7 = arith.constant 0 : index
    %27 = vector.load %arg4[%c0_6, %c0_7] : memref<32x96xbf16, #tpu.memory_space<vmem>>, vector<32x96xbf16>
    %cst_8 = arith.constant dense<0.000000e+00> : vector<16x96xf32>
    %28 = tpu.matmul %26, %27, %cst_8 {dimension_numbers = #tpu.dot_dimension_numbers<[1], [0], [0], [1], [0, 0, 1, 1], [], []>} : vector<16x32xbf16>, vector<32x96xbf16>, vector<16x96xf32> -> vector<16x96xf32>
    %c0_9 = arith.constant 0 : index
    %c0_10 = arith.constant 0 : index
    %29 = vector.load %arg5[%c0_9, %c0_10] : memref<1x96xf32, #tpu.memory_space<vmem>>, vector<1x96xf32>
    %30 = vector.broadcast %29 : vector<1x96xf32> to vector<16x96xf32>
    %31 = arith.addf %28, %30 : vector<16x96xf32>
    %32 = arith.truncf %31 : vector<16x96xf32> to vector<16x96xbf16>
    %c0_11 = arith.constant 0 : index
    %c0_12 = arith.constant 0 : index
    %33 = vector.load %arg6[%c0_11, %c0_12] : memref<16x96xbf16, #tpu.memory_space<vmem>>, vector<16x96xbf16>
    tpu.vector_store %arg6[%c0_11, %c0_12], %32 {strides = array<i32>} : memref<16x96xbf16, #tpu.memory_space<vmem>>, vector<16x96xbf16>,
    return
  }
  func.func @transform_0(%arg0: i32, %arg1: i32) -> i32 {
    %c0_i32 = arith.constant 0 : i32
    %c0_i32_0 = arith.constant 0 : i32
    return %c0_i32 : i32
  }
  func.func @transform_1(%arg0: i32, %arg1: i32) -> (i32, i32) {
    %c0_i32 = arith.constant 0 : i32
    %c0_i32_0 = arith.constant 0 : i32
    return %arg0, %c0_i32 : i32, i32
  }
  func.func @transform_2(%arg0: i32, %arg1: i32) -> (i32, i32) {
    %c0_i32 = arith.constant 0 : i32
    %c0_i32_0 = arith.constant 0 : i32
    return %c0_i32, %arg1 : i32, i32
  }
  func.func @transform_3(%arg0: i32, %arg1: i32) -> (i32, i32) {
    %c0_i32 = arith.constant 0 : i32
    %c0_i32_0 = arith.constant 0 : i32
    return %c0_i32, %arg1 : i32, i32
  }
  func.func @transform_4(%arg0: i32, %arg1: i32) -> (i32, i32) {
    %c0_i32 = arith.constant 0 : i32
    return %arg0, %arg1 : i32, i32
  }
}

module attributes {stable_mosaic.version = 11 : i64} {
  func.func @_attention_kernel(%arg0: i32, %arg1: memref<1x8x1x4x8xbf16, #tpu.memory_space<vmem>>, %arg2: memref<1x8x1x4x8xbf16, #tpu.memory_space<vmem>>, %arg3: memref<1x8x1x4x8xbf16, #tpu.memory_space<vmem>>, %arg4: memref<1x8x8xf32, #tpu.memory_space<vmem>>, %arg5: memref<1x8x4x8xbf16, #tpu.memory_space<vmem>>) attributes {dimension_semantics = [#tpu.dimension_semantics<parallel>], iteration_bounds = array<i64: 2>, scalar_prefetch = 0 : i64, scratch_operands = 0 : i64, tpu.core_type = #tpu.core_type<tc>, window_params = [{transform_indices = @transform_0, window_bounds = array<i64: 1, 8, 1, 4, 8>}, {transform_indices = @transform_1, window_bounds = array<i64: 1, 8, 1, 4, 8>}, {transform_indices = @transform_2, window_bounds = array<i64: 1, 8, 1, 4, 8>}, {transform_indices = @transform_3, window_bounds = array<i64: 1, 8, 8>}, {transform_indices = @transform_4, window_bounds = array<i64: 1, 8, 4, 8>}]} {
    %c0 = arith.constant 0 : index
    %c0_0 = arith.constant 0 : index
    %c0_1 = arith.constant 0 : index
    %c0_2 = arith.constant 0 : index
    %c0_3 = arith.constant 0 : index
    %0 = vector.load %arg1[%c0, %c0_0, %c0_1, %c0_2, %c0_3] : memref<1x8x1x4x8xbf16, #tpu.memory_space<vmem>>, vector<1x8x1x4x8xbf16>
    %1 = vector.shape_cast %0 : vector<1x8x1x4x8xbf16> to vector<8x4x8xbf16>
    %c0_4 = arith.constant 0 : index
    %c0_5 = arith.constant 0 : index
    %c0_6 = arith.constant 0 : index
    %c0_7 = arith.constant 0 : index
    %c0_8 = arith.constant 0 : index
    %2 = vector.load %arg2[%c0_4, %c0_5, %c0_6, %c0_7, %c0_8] : memref<1x8x1x4x8xbf16, #tpu.memory_space<vmem>>, vector<1x8x1x4x8xbf16>
    %3 = vector.shape_cast %2 : vector<1x8x1x4x8xbf16> to vector<8x4x8xbf16>
    %c0_9 = arith.constant 0 : index
    %c0_10 = arith.constant 0 : index
    %c0_11 = arith.constant 0 : index
    %c0_12 = arith.constant 0 : index
    %c0_13 = arith.constant 0 : index
    %4 = vector.load %arg3[%c0_9, %c0_10, %c0_11, %c0_12, %c0_13] : memref<1x8x1x4x8xbf16, #tpu.memory_space<vmem>>, vector<1x8x1x4x8xbf16>
    %5 = vector.shape_cast %4 : vector<1x8x1x4x8xbf16> to vector<8x4x8xbf16>
    %c0_14 = arith.constant 0 : index
    %c0_15 = arith.constant 0 : index
    %c0_16 = arith.constant 0 : index
    %6 = vector.load %arg4[%c0_14, %c0_15, %c0_16] : memref<1x8x8xf32, #tpu.memory_space<vmem>>, vector<1x8x8xf32>
    %7 = vector.shape_cast %6 : vector<1x8x8xf32> to vector<8x8xf32>
    %8 = vector.extract_strided_slice %1 {offsets = [0, 0, 0], sizes = [8, 1, 8], strides = [1, 1, 1]} : vector<8x4x8xbf16> to vector<8x1x8xbf16>
    %9 = vector.shape_cast %8 : vector<8x1x8xbf16> to vector<8x8xbf16>
    %10 = vector.extract_strided_slice %3 {offsets = [0, 0, 0], sizes = [8, 1, 8], strides = [1, 1, 1]} : vector<8x4x8xbf16> to vector<8x1x8xbf16>
    %11 = vector.shape_cast %10 : vector<8x1x8xbf16> to vector<8x8xbf16>
    %12 = vector.extract_strided_slice %5 {offsets = [0, 0, 0], sizes = [8, 1, 8], strides = [1, 1, 1]} : vector<8x4x8xbf16> to vector<8x1x8xbf16>
    %13 = vector.shape_cast %12 : vector<8x1x8xbf16> to vector<8x8xbf16>
    %cst = arith.constant dense<0.000000e+00> : vector<8x8xf32>
    %14 = tpu.matmul %9, %11, %cst {dimension_numbers = #tpu.dot_dimension_numbers<[1], [1], [0], [0], [0, 0, 1, 0], [], []>} : vector<8x8xbf16>, vector<8x8xbf16>, vector<8x8xf32> -> vector<8x8xf32>
    %cst_17 = arith.constant 0.353553385 : f32
    %15 = vector.broadcast %cst_17 : f32 to vector<8x8xf32>
    %16 = arith.mulf %14, %15 : vector<8x8xf32>
    %cst_18 = arith.constant 0.000000e+00 : f32
    %17 = vector.broadcast %cst_18 : f32 to vector<8x8xf32>
    %18 = arith.cmpf oeq, %7, %17 : vector<8x8xf32>
    %cst_19 = arith.constant -1.000000e+09 : f32
    %19 = vector.broadcast %cst_19 : f32 to vector<8x8xf32>
    %20 = arith.select %18, %19, %16 : vector<8x8xi1>, vector<8x8xf32>
    %cst_20 = arith.constant dense<0xFF800000> : vector<8xf32>
    %21 = vector.multi_reduction <maximumf>, %20, %cst_20 [1] : vector<8x8xf32> to vector<8xf32>
    %22 = vector.shape_cast %21 : vector<8xf32> to vector<8x1xf32>
    %23 = vector.broadcast %22 : vector<8x1xf32> to vector<8x8xf32>
    %24 = arith.subf %20, %23 : vector<8x8xf32>
    %25 = math.exp %24 : vector<8x8xf32>
    %cst_21 = arith.constant dense<0.000000e+00> : vector<8xf32>
    %26 = vector.multi_reduction <add>, %25, %cst_21 [1] : vector<8x8xf32> to vector<8xf32>
    %27 = vector.shape_cast %26 : vector<8xf32> to vector<8x1xf32>
    %28 = tpu.reciprocal %27 {approx = true} : vector<8x1xf32> -> vector<8x1xf32>
    %29 = vector.broadcast %28 : vector<8x1xf32> to vector<8x8xf32>
    %30 = arith.mulf %25, %29 : vector<8x8xf32>
    %31 = arith.truncf %30 : vector<8x8xf32> to vector<8x8xbf16>
    %cst_22 = arith.constant dense<0.000000e+00> : vector<8x8xf32>
    %32 = tpu.matmul %31, %13, %cst_22 {dimension_numbers = #tpu.dot_dimension_numbers<[1], [0], [0], [1], [0, 0, 1, 1], [], []>} : vector<8x8xbf16>, vector<8x8xbf16>, vector<8x8xf32> -> vector<8x8xf32>
    %33 = vector.extract_strided_slice %1 {offsets = [0, 1, 0], sizes = [8, 1, 8], strides = [1, 1, 1]} : vector<8x4x8xbf16> to vector<8x1x8xbf16>
    %34 = vector.shape_cast %33 : vector<8x1x8xbf16> to vector<8x8xbf16>
    %35 = vector.extract_strided_slice %3 {offsets = [0, 1, 0], sizes = [8, 1, 8], strides = [1, 1, 1]} : vector<8x4x8xbf16> to vector<8x1x8xbf16>
    %36 = vector.shape_cast %35 : vector<8x1x8xbf16> to vector<8x8xbf16>
    %37 = vector.extract_strided_slice %5 {offsets = [0, 1, 0], sizes = [8, 1, 8], strides = [1, 1, 1]} : vector<8x4x8xbf16> to vector<8x1x8xbf16>
    %38 = vector.shape_cast %37 : vector<8x1x8xbf16> to vector<8x8xbf16>
    %cst_23 = arith.constant dense<0.000000e+00> : vector<8x8xf32>
    %39 = tpu.matmul %34, %36, %cst_23 {dimension_numbers = #tpu.dot_dimension_numbers<[1], [1], [0], [0], [0, 0, 1, 0], [], []>} : vector<8x8xbf16>, vector<8x8xbf16>, vector<8x8xf32> -> vector<8x8xf32>
    %cst_24 = arith.constant 0.353553385 : f32
    %40 = vector.broadcast %cst_24 : f32 to vector<8x8xf32>
    %41 = arith.mulf %39, %40 : vector<8x8xf32>
    %cst_25 = arith.constant 0.000000e+00 : f32
    %42 = vector.broadcast %cst_25 : f32 to vector<8x8xf32>
    %43 = arith.cmpf oeq, %7, %42 : vector<8x8xf32>
    %cst_26 = arith.constant -1.000000e+09 : f32
    %44 = vector.broadcast %cst_26 : f32 to vector<8x8xf32>
    %45 = arith.select %43, %44, %41 : vector<8x8xi1>, vector<8x8xf32>
    %cst_27 = arith.constant dense<0xFF800000> : vector<8xf32>
    %46 = vector.multi_reduction <maximumf>, %45, %cst_27 [1] : vector<8x8xf32> to vector<8xf32>
    %47 = vector.shape_cast %46 : vector<8xf32> to vector<8x1xf32>
    %48 = vector.broadcast %47 : vector<8x1xf32> to vector<8x8xf32>
    %49 = arith.subf %45, %48 : vector<8x8xf32>
    %50 = math.exp %49 : vector<8x8xf32>
    %cst_28 = arith.constant dense<0.000000e+00> : vector<8xf32>
    %51 = vector.multi_reduction <add>, %50, %cst_28 [1] : vector<8x8xf32> to vector<8xf32>
    %52 = vector.shape_cast %51 : vector<8xf32> to vector<8x1xf32>
    %53 = tpu.reciprocal %52 {approx = true} : vector<8x1xf32> -> vector<8x1xf32>
    %54 = vector.broadcast %53 : vector<8x1xf32> to vector<8x8xf32>
    %55 = arith.mulf %50, %54 : vector<8x8xf32>
    %56 = arith.truncf %55 : vector<8x8xf32> to vector<8x8xbf16>
    %cst_29 = arith.constant dense<0.000000e+00> : vector<8x8xf32>
    %57 = tpu.matmul %56, %38, %cst_29 {dimension_numbers = #tpu.dot_dimension_numbers<[1], [0], [0], [1], [0, 0, 1, 1], [], []>} : vector<8x8xbf16>, vector<8x8xbf16>, vector<8x8xf32> -> vector<8x8xf32>
    %58 = vector.extract_strided_slice %1 {offsets = [0, 2, 0], sizes = [8, 1, 8], strides = [1, 1, 1]} : vector<8x4x8xbf16> to vector<8x1x8xbf16>
    %59 = vector.shape_cast %58 : vector<8x1x8xbf16> to vector<8x8xbf16>
    %60 = vector.extract_strided_slice %3 {offsets = [0, 2, 0], sizes = [8, 1, 8], strides = [1, 1, 1]} : vector<8x4x8xbf16> to vector<8x1x8xbf16>
    %61 = vector.shape_cast %60 : vector<8x1x8xbf16> to vector<8x8xbf16>
    %62 = vector.extract_strided_slice %5 {offsets = [0, 2, 0], sizes = [8, 1, 8], strides = [1, 1, 1]} : vector<8x4x8xbf16> to vector<8x1x8xbf16>
    %63 = vector.shape_cast %62 : vector<8x1x8xbf16> to vector<8x8xbf16>
    %cst_30 = arith.constant dense<0.000000e+00> : vector<8x8xf32>
    %64 = tpu.matmul %59, %61, %cst_30 {dimension_numbers = #tpu.dot_dimension_numbers<[1], [1], [0], [0], [0, 0, 1, 0], [], []>} : vector<8x8xbf16>, vector<8x8xbf16>, vector<8x8xf32> -> vector<8x8xf32>
    %cst_31 = arith.constant 0.353553385 : f32
    %65 = vector.broadcast %cst_31 : f32 to vector<8x8xf32>
    %66 = arith.mulf %64, %65 : vector<8x8xf32>
    %cst_32 = arith.constant 0.000000e+00 : f32
    %67 = vector.broadcast %cst_32 : f32 to vector<8x8xf32>
    %68 = arith.cmpf oeq, %7, %67 : vector<8x8xf32>
    %cst_33 = arith.constant -1.000000e+09 : f32
    %69 = vector.broadcast %cst_33 : f32 to vector<8x8xf32>
    %70 = arith.select %68, %69, %66 : vector<8x8xi1>, vector<8x8xf32>
    %cst_34 = arith.constant dense<0xFF800000> : vector<8xf32>
    %71 = vector.multi_reduction <maximumf>, %70, %cst_34 [1] : vector<8x8xf32> to vector<8xf32>
    %72 = vector.shape_cast %71 : vector<8xf32> to vector<8x1xf32>
    %73 = vector.broadcast %72 : vector<8x1xf32> to vector<8x8xf32>
    %74 = arith.subf %70, %73 : vector<8x8xf32>
    %75 = math.exp %74 : vector<8x8xf32>
    %cst_35 = arith.constant dense<0.000000e+00> : vector<8xf32>
    %76 = vector.multi_reduction <add>, %75, %cst_35 [1] : vector<8x8xf32> to vector<8xf32>
    %77 = vector.shape_cast %76 : vector<8xf32> to vector<8x1xf32>
    %78 = tpu.reciprocal %77 {approx = true} : vector<8x1xf32> -> vector<8x1xf32>
    %79 = vector.broadcast %78 : vector<8x1xf32> to vector<8x8xf32>
    %80 = arith.mulf %75, %79 : vector<8x8xf32>
    %81 = arith.truncf %80 : vector<8x8xf32> to vector<8x8xbf16>
    %cst_36 = arith.constant dense<0.000000e+00> : vector<8x8xf32>
    %82 = tpu.matmul %81, %63, %cst_36 {dimension_numbers = #tpu.dot_dimension_numbers<[1], [0], [0], [1], [0, 0, 1, 1], [], []>} : vector<8x8xbf16>, vector<8x8xbf16>, vector<8x8xf32> -> vector<8x8xf32>
    %83 = vector.extract_strided_slice %1 {offsets = [0, 3, 0], sizes = [8, 1, 8], strides = [1, 1, 1]} : vector<8x4x8xbf16> to vector<8x1x8xbf16>
    %84 = vector.shape_cast %83 : vector<8x1x8xbf16> to vector<8x8xbf16>
    %85 = vector.extract_strided_slice %3 {offsets = [0, 3, 0], sizes = [8, 1, 8], strides = [1, 1, 1]} : vector<8x4x8xbf16> to vector<8x1x8xbf16>
    %86 = vector.shape_cast %85 : vector<8x1x8xbf16> to vector<8x8xbf16>
    %87 = vector.extract_strided_slice %5 {offsets = [0, 3, 0], sizes = [8, 1, 8], strides = [1, 1, 1]} : vector<8x4x8xbf16> to vector<8x1x8xbf16>
    %88 = vector.shape_cast %87 : vector<8x1x8xbf16> to vector<8x8xbf16>
    %cst_37 = arith.constant dense<0.000000e+00> : vector<8x8xf32>
    %89 = tpu.matmul %84, %86, %cst_37 {dimension_numbers = #tpu.dot_dimension_numbers<[1], [1], [0], [0], [0, 0, 1, 0], [], []>} : vector<8x8xbf16>, vector<8x8xbf16>, vector<8x8xf32> -> vector<8x8xf32>
    %cst_38 = arith.constant 0.353553385 : f32
    %90 = vector.broadcast %cst_38 : f32 to vector<8x8xf32>
    %91 = arith.mulf %89, %90 : vector<8x8xf32>
    %cst_39 = arith.constant 0.000000e+00 : f32
    %92 = vector.broadcast %cst_39 : f32 to vector<8x8xf32>
    %93 = arith.cmpf oeq, %7, %92 : vector<8x8xf32>
    %cst_40 = arith.constant -1.000000e+09 : f32
    %94 = vector.broadcast %cst_40 : f32 to vector<8x8xf32>
    %95 = arith.select %93, %94, %91 : vector<8x8xi1>, vector<8x8xf32>
    %cst_41 = arith.constant dense<0xFF800000> : vector<8xf32>
    %96 = vector.multi_reduction <maximumf>, %95, %cst_41 [1] : vector<8x8xf32> to vector<8xf32>
    %97 = vector.shape_cast %96 : vector<8xf32> to vector<8x1xf32>
    %98 = vector.broadcast %97 : vector<8x1xf32> to vector<8x8xf32>
    %99 = arith.subf %95, %98 : vector<8x8xf32>
    %100 = math.exp %99 : vector<8x8xf32>
    %cst_42 = arith.constant dense<0.000000e+00> : vector<8xf32>
    %101 = vector.multi_reduction <add>, %100, %cst_42 [1] : vector<8x8xf32> to vector<8xf32>
    %102 = vector.shape_cast %101 : vector<8xf32> to vector<8x1xf32>
    %103 = tpu.reciprocal %102 {approx = true} : vector<8x1xf32> -> vector<8x1xf32>
    %104 = vector.broadcast %103 : vector<8x1xf32> to vector<8x8xf32>
    %105 = arith.mulf %100, %104 : vector<8x8xf32>
    %106 = arith.truncf %105 : vector<8x8xf32> to vector<8x8xbf16>
    %cst_43 = arith.constant dense<0.000000e+00> : vector<8x8xf32>
    %107 = tpu.matmul %106, %88, %cst_43 {dimension_numbers = #tpu.dot_dimension_numbers<[1], [0], [0], [1], [0, 0, 1, 1], [], []>} : vector<8x8xbf16>, vector<8x8xbf16>, vector<8x8xf32> -> vector<8x8xf32>
    %108 = vector.shape_cast %32 : vector<8x8xf32> to vector<8x1x8xf32>
    %109 = vector.shape_cast %57 : vector<8x8xf32> to vector<8x1x8xf32>
    %110 = vector.shape_cast %82 : vector<8x8xf32> to vector<8x1x8xf32>
    %111 = vector.shape_cast %107 : vector<8x8xf32> to vector<8x1x8xf32>
    %112 = tpu.concatenate %108, %109, %110, %111 in 1 : vector<8x1x8xf32>, vector<8x1x8xf32>, vector<8x1x8xf32>, vector<8x1x8xf32> -> vector<8x4x8xf32>
    %113 = arith.truncf %112 : vector<8x4x8xf32> to vector<8x4x8xbf16>
    %c0_44 = arith.constant 0 : index
    %c0_45 = arith.constant 0 : index
    %c0_46 = arith.constant 0 : index
    %c0_47 = arith.constant 0 : index
    %114 = vector.load %arg5[%c0_44, %c0_45, %c0_46, %c0_47] : memref<1x8x4x8xbf16, #tpu.memory_space<vmem>>, vector<1x8x4x8xbf16>
    %115 = vector.shape_cast %114 : vector<1x8x4x8xbf16> to vector<8x4x8xbf16>
    %116 = vector.shape_cast %113 : vector<8x4x8xbf16> to vector<1x8x4x8xbf16>
    tpu.vector_store %arg5[%c0_44, %c0_45, %c0_46, %c0_47], %116 {strides = array<i32>} : memref<1x8x4x8xbf16, #tpu.memory_space<vmem>>, vector<1x8x4x8xbf16>,
    return
  }
  func.func @transform_0(%arg0: i32) -> (i32, i32, i32, i32, i32) {
    %c0_i32 = arith.constant 0 : i32
    %c0_i32_0 = arith.constant 0 : i32
    %c0_i32_1 = arith.constant 0 : i32
    %c0_i32_2 = arith.constant 0 : i32
    %c0_i32_3 = arith.constant 0 : i32
    return %arg0, %c0_i32, %c0_i32_0, %c0_i32_1, %c0_i32_2 : i32, i32, i32, i32, i32
  }
  func.func @transform_1(%arg0: i32) -> (i32, i32, i32, i32, i32) {
    %c0_i32 = arith.constant 0 : i32
    %c1_i32 = arith.constant 1 : i32
    %c0_i32_0 = arith.constant 0 : i32
    %c0_i32_1 = arith.constant 0 : i32
    %c0_i32_2 = arith.constant 0 : i32
    return %arg0, %c0_i32, %c1_i32, %c0_i32_0, %c0_i32_1 : i32, i32, i32, i32, i32
  }
  func.func @transform_2(%arg0: i32) -> (i32, i32, i32, i32, i32) {
    %c0_i32 = arith.constant 0 : i32
    %c2_i32 = arith.constant 2 : i32
    %c0_i32_0 = arith.constant 0 : i32
    %c0_i32_1 = arith.constant 0 : i32
    %c0_i32_2 = arith.constant 0 : i32
    return %arg0, %c0_i32, %c2_i32, %c0_i32_0, %c0_i32_1 : i32, i32, i32, i32, i32
  }
  func.func @transform_3(%arg0: i32) -> (i32, i32, i32) {
    %c0_i32 = arith.constant 0 : i32
    %c0_i32_0 = arith.constant 0 : i32
    %c0_i32_1 = arith.constant 0 : i32
    return %arg0, %c0_i32, %c0_i32_0 : i32, i32, i32
  }
  func.func @transform_4(%arg0: i32) -> (i32, i32, i32, i32) {
    %c0_i32 = arith.constant 0 : i32
    %c0_i32_0 = arith.constant 0 : i32
    %c0_i32_1 = arith.constant 0 : i32
    %c0_i32_2 = arith.constant 0 : i32
    return %arg0, %c0_i32, %c0_i32_0, %c0_i32_1 : i32, i32, i32, i32
  }
}

module attributes {stable_mosaic.version = 11 : i64} {
  func.func @_fused_linear_kernel(%arg0: i32, %arg1: i32, %arg2: memref<16x32xbf16, #tpu.memory_space<vmem>>, %arg3: memref<32x32xbf16, #tpu.memory_space<vmem>>, %arg4: memref<1x32xf32, #tpu.memory_space<vmem>>, %arg5: memref<16x32xf32, #tpu.memory_space<vmem>>, %arg6: memref<16x32xf32, #tpu.memory_space<vmem>>) attributes {dimension_semantics = [#tpu.dimension_semantics<parallel>, #tpu.dimension_semantics<parallel>], iteration_bounds = array<i64: 1, 1>, scalar_prefetch = 0 : i64, scratch_operands = 0 : i64, tpu.core_type = #tpu.core_type<tc>, window_params = [{transform_indices = @transform_0, window_bounds = array<i64: 16, 32>}, {transform_indices = @transform_1, window_bounds = array<i64: 32, 32>}, {transform_indices = @transform_2, window_bounds = array<i64: 1, 32>}, {transform_indices = @transform_3, window_bounds = array<i64: 16, 32>}, {transform_indices = @transform_4, window_bounds = array<i64: 16, 32>}]} {
    %c0 = arith.constant 0 : index
    %c0_0 = arith.constant 0 : index
    %0 = vector.load %arg2[%c0, %c0_0] : memref<16x32xbf16, #tpu.memory_space<vmem>>, vector<16x32xbf16>
    %c0_1 = arith.constant 0 : index
    %c0_2 = arith.constant 0 : index
    %1 = vector.load %arg3[%c0_1, %c0_2] : memref<32x32xbf16, #tpu.memory_space<vmem>>, vector<32x32xbf16>
    %cst = arith.constant dense<0.000000e+00> : vector<16x32xf32>
    %2 = tpu.matmul %0, %1, %cst {dimension_numbers = #tpu.dot_dimension_numbers<[1], [0], [0], [1], [0, 0, 1, 1], [], []>} : vector<16x32xbf16>, vector<32x32xbf16>, vector<16x32xf32> -> vector<16x32xf32>
    %c0_3 = arith.constant 0 : index
    %c0_4 = arith.constant 0 : index
    %3 = vector.load %arg4[%c0_3, %c0_4] : memref<1x32xf32, #tpu.memory_space<vmem>>, vector<1x32xf32>
    %4 = vector.broadcast %3 : vector<1x32xf32> to vector<16x32xf32>
    %5 = arith.addf %2, %4 : vector<16x32xf32>
    %c0_5 = arith.constant 0 : index
    %c0_6 = arith.constant 0 : index
    %6 = vector.load %arg5[%c0_5, %c0_6] : memref<16x32xf32, #tpu.memory_space<vmem>>, vector<16x32xf32>
    %7 = arith.addf %5, %6 : vector<16x32xf32>
    %c0_7 = arith.constant 0 : index
    %c0_8 = arith.constant 0 : index
    %8 = vector.load %arg6[%c0_7, %c0_8] : memref<16x32xf32, #tpu.memory_space<vmem>>, vector<16x32xf32>
    tpu.vector_store %arg6[%c0_7, %c0_8], %7 {strides = array<i32>} : memref<16x32xf32, #tpu.memory_space<vmem>>, vector<16x32xf32>,
    return
  }
  func.func @transform_0(%arg0: i32, %arg1: i32) -> (i32, i32) {
    %c0_i32 = arith.constant 0 : i32
    %c0_i32_0 = arith.constant 0 : i32
    return %arg0, %c0_i32 : i32, i32
  }
  func.func @transform_1(%arg0: i32, %arg1: i32) -> (i32, i32) {
    %c0_i32 = arith.constant 0 : i32
    %c0_i32_0 = arith.constant 0 : i32
    return %c0_i32, %arg1 : i32, i32
  }
  func.func @transform_2(%arg0: i32, %arg1: i32) -> (i32, i32) {
    %c0_i32 = arith.constant 0 : i32
    %c0_i32_0 = arith.constant 0 : i32
    return %c0_i32, %arg1 : i32, i32
  }
  func.func @transform_3(%arg0: i32, %arg1: i32) -> (i32, i32) {
    %c0_i32 = arith.constant 0 : i32
    return %arg0, %arg1 : i32, i32
  }
  func.func @transform_4(%arg0: i32, %arg1: i32) -> (i32, i32) {
    %c0_i32 = arith.constant 0 : i32
    return %arg0, %arg1 : i32, i32
  }
}

module attributes {stable_mosaic.version = 11 : i64} {
  func.func @_fused_linear_kernel(%arg0: i32, %arg1: i32, %arg2: memref<2xf32, #tpu.memory_space<smem>>, %arg3: memref<16x32xf32, #tpu.memory_space<vmem>>, %arg4: memref<32x32xbf16, #tpu.memory_space<vmem>>, %arg5: memref<1x32xf32, #tpu.memory_space<vmem>>, %arg6: memref<16x32xbf16, #tpu.memory_space<vmem>>) attributes {dimension_semantics = [#tpu.dimension_semantics<parallel>, #tpu.dimension_semantics<parallel>], iteration_bounds = array<i64: 1, 1>, scalar_prefetch = 0 : i64, scratch_operands = 0 : i64, tpu.core_type = #tpu.core_type<tc>, window_params = [{transform_indices = @transform_0, window_bounds = array<i64: 2>}, {transform_indices = @transform_1, window_bounds = array<i64: 16, 32>}, {transform_indices = @transform_2, window_bounds = array<i64: 32, 32>}, {transform_indices = @transform_3, window_bounds = array<i64: 1, 32>}, {transform_indices = @transform_4, window_bounds = array<i64: 16, 32>}]} {
    %c0 = arith.constant 0 : index
    %c0_0 = arith.constant 0 : index
    %0 = vector.load %arg3[%c0, %c0_0] : memref<16x32xf32, #tpu.memory_space<vmem>>, vector<16x32xf32>
    %cst = arith.constant dense<0.000000e+00> : vector<16xf32>
    %1 = vector.multi_reduction <add>, %0, %cst [1] : vector<16x32xf32> to vector<16xf32>
    %2 = vector.shape_cast %1 : vector<16xf32> to vector<16x1xf32>
    %cst_1 = arith.constant 3.200000e+01 : f32
    %3 = vector.broadcast %cst_1 : f32 to vector<16x1xf32>
    %4 = arith.divf %2, %3 : vector<16x1xf32>
    %5 = vector.broadcast %4 : vector<16x1xf32> to vector<16x32xf32>
    %6 = arith.subf %0, %5 : vector<16x32xf32>
    %7 = arith.mulf %6, %6 : vector<16x32xf32>
    %cst_2 = arith.constant dense<0.000000e+00> : vector<16xf32>
    %8 = vector.multi_reduction <add>, %7, %cst_2 [1] : vector<16x32xf32> to vector<16xf32>
    %9 = vector.shape_cast %8 : vector<16xf32> to vector<16x1xf32>
    %cst_3 = arith.constant 3.100000e+01 : f32
    %10 = vector.broadcast %cst_3 : f32 to vector<16x1xf32>
    %11 = arith.divf %9, %10 : vector<16x1xf32>
    %12 = math.sqrt %11 : vector<16x1xf32>
    %cst_4 = arith.constant 9.99999997E-7 : f32
    %13 = vector.broadcast %cst_4 : f32 to vector<16x1xf32>
    %14 = arith.addf %12, %13 : vector<16x1xf32>
    %15 = tpu.reciprocal %14 {approx = true} : vector<16x1xf32> -> vector<16x1xf32>
    %c0_5 = arith.constant 0 : index
    %16 = memref.load %arg2[%c0_5] : memref<2xf32, #tpu.memory_space<smem>>
    %17 = vector.broadcast %4 : vector<16x1xf32> to vector<16x32xf32>
    %18 = arith.subf %0, %17 : vector<16x32xf32>
    %19 = vector.broadcast %16 : f32 to vector<16x32xf32>
    %20 = arith.mulf %19, %18 : vector<16x32xf32>
    %21 = vector.broadcast %15 : vector<16x1xf32> to vector<16x32xf32>
    %22 = arith.mulf %20, %21 : vector<16x32xf32>
    %c1 = arith.constant 1 : index
    %23 = memref.load %arg2[%c1] : memref<2xf32, #tpu.memory_space<smem>>
    %24 = vector.broadcast %23 : f32 to vector<16x32xf32>
    %25 = arith.addf %22, %24 : vector<16x32xf32>
    %26 = arith.truncf %25 : vector<16x32xf32> to vector<16x32xbf16>
    %c0_6 = arith.constant 0 : index
    %c0_7 = arith.constant 0 : index
    %27 = vector.load %arg4[%c0_6, %c0_7] : memref<32x32xbf16, #tpu.memory_space<vmem>>, vector<32x32xbf16>
    %cst_8 = arith.constant dense<0.000000e+00> : vector<16x32xf32>
    %28 = tpu.matmul %26, %27, %cst_8 {dimension_numbers = #tpu.dot_dimension_numbers<[1], [0], [0], [1], [0, 0, 1, 1], [], []>} : vector<16x32xbf16>, vector<32x32xbf16>, vector<16x32xf32> -> vector<16x32xf32>
    %c0_9 = arith.constant 0 : index
    %c0_10 = arith.constant 0 : index
    %29 = vector.load %arg5[%c0_9, %c0_10] : memref<1x32xf32, #tpu.memory_space<vmem>>, vector<1x32xf32>
    %30 = vector.broadcast %29 : vector<1x32xf32> to vector<16x32xf32>
    %31 = arith.addf %28, %30 : vector<16x32xf32>
    %32 = arith.truncf %31 : vector<16x32xf32> to vector<16x32xbf16>
    %c0_11 = arith.constant 0 : index
    %c0_12 = arith.constant 0 : index
    %33 = vector.load %arg6[%c0_11, %c0_12] : memref<16x32xbf16, #tpu.memory_space<vmem>>, vector<16x32xbf16>
    tpu.vector_store %arg6[%c0_11, %c0_12], %32 {strides = array<i32>} : memref<16x32xbf16, #tpu.memory_space<vmem>>, vector<16x32xbf16>,
    return
  }
  func.func @transform_0(%arg0: i32, %arg1: i32) -> i32 {
    %c0_i32 = arith.constant 0 : i32
    %c0_i32_0 = arith.constant 0 : i32
    return %c0_i32 : i32
  }
  func.func @transform_1(%arg0: i32, %arg1: i32) -> (i32, i32) {
    %c0_i32 = arith.constant 0 : i32
    %c0_i32_0 = arith.constant 0 : i32
    return %arg0, %c0_i32 : i32, i32
  }
  func.func @transform_2(%arg0: i32, %arg1: i32) -> (i32, i32) {
    %c0_i32 = arith.constant 0 : i32
    %c0_i32_0 = arith.constant 0 : i32
    return %c0_i32, %arg1 : i32, i32
  }
  func.func @transform_3(%arg0: i32, %arg1: i32) -> (i32, i32) {
    %c0_i32 = arith.constant 0 : i32
    %c0_i32_0 = arith.constant 0 : i32
    return %c0_i32, %arg1 : i32, i32
  }
  func.func @transform_4(%arg0: i32, %arg1: i32) -> (i32, i32) {
    %c0_i32 = arith.constant 0 : i32
    return %arg0, %arg1 : i32, i32
  }
}

module attributes {stable_mosaic.version = 11 : i64} {
  func.func @_fused_linear_kernel(%arg0: i32, %arg1: i32, %arg2: memref<32x32xf32, #tpu.memory_space<vmem>>, %arg3: memref<32x64xbf16, #tpu.memory_space<vmem>>, %arg4: memref<1x64xf32, #tpu.memory_space<vmem>>, %arg5: memref<32x64xbf16, #tpu.memory_space<vmem>>) attributes {dimension_semantics = [#tpu.dimension_semantics<parallel>, #tpu.dimension_semantics<parallel>], iteration_bounds = array<i64: 1, 1>, scalar_prefetch = 0 : i64, scratch_operands = 0 : i64, tpu.core_type = #tpu.core_type<tc>, window_params = [{transform_indices = @transform_0, window_bounds = array<i64: 32, 32>}, {transform_indices = @transform_1, window_bounds = array<i64: 32, 64>}, {transform_indices = @transform_2, window_bounds = array<i64: 1, 64>}, {transform_indices = @transform_3, window_bounds = array<i64: 32, 64>}]} {
    %c0 = arith.constant 0 : index
    %c0_0 = arith.constant 0 : index
    %0 = vector.load %arg2[%c0, %c0_0] : memref<32x32xf32, #tpu.memory_space<vmem>>, vector<32x32xf32>
    %1 = arith.truncf %0 : vector<32x32xf32> to vector<32x32xbf16>
    %c0_1 = arith.constant 0 : index
    %c0_2 = arith.constant 0 : index
    %2 = vector.load %arg3[%c0_1, %c0_2] : memref<32x64xbf16, #tpu.memory_space<vmem>>, vector<32x64xbf16>
    %cst = arith.constant dense<0.000000e+00> : vector<32x64xf32>
    %3 = tpu.matmul %1, %2, %cst {dimension_numbers = #tpu.dot_dimension_numbers<[1], [0], [0], [1], [0, 0, 1, 1], [], []>} : vector<32x32xbf16>, vector<32x64xbf16>, vector<32x64xf32> -> vector<32x64xf32>
    %c0_3 = arith.constant 0 : index
    %c0_4 = arith.constant 0 : index
    %4 = vector.load %arg4[%c0_3, %c0_4] : memref<1x64xf32, #tpu.memory_space<vmem>>, vector<1x64xf32>
    %5 = vector.broadcast %4 : vector<1x64xf32> to vector<32x64xf32>
    %6 = arith.addf %3, %5 : vector<32x64xf32>
    %7 = arith.truncf %6 : vector<32x64xf32> to vector<32x64xbf16>
    %c0_5 = arith.constant 0 : index
    %c0_6 = arith.constant 0 : index
    %8 = vector.load %arg5[%c0_5, %c0_6] : memref<32x64xbf16, #tpu.memory_space<vmem>>, vector<32x64xbf16>
    tpu.vector_store %arg5[%c0_5, %c0_6], %7 {strides = array<i32>} : memref<32x64xbf16, #tpu.memory_space<vmem>>, vector<32x64xbf16>,
    return
  }
  func.func @transform_0(%arg0: i32, %arg1: i32) -> (i32, i32) {
    %c0_i32 = arith.constant 0 : i32
    %c0_i32_0 = arith.constant 0 : i32
    return %arg0, %c0_i32 : i32, i32
  }
  func.func @transform_1(%arg0: i32, %arg1: i32) -> (i32, i32) {
    %c0_i32 = arith.constant 0 : i32
    %c0_i32_0 = arith.constant 0 : i32
    return %c0_i32, %arg1 : i32, i32
  }
  func.func @transform_2(%arg0: i32, %arg1: i32) -> (i32, i32) {
    %c0_i32 = arith.constant 0 : i32
    %c0_i32_0 = arith.constant 0 : i32
    return %c0_i32, %arg1 : i32, i32
  }
  func.func @transform_3(%arg0: i32, %arg1: i32) -> (i32, i32) {
    %c0_i32 = arith.constant 0 : i32
    return %arg0, %arg1 : i32, i32
  }
}

module attributes {stable_mosaic.version = 11 : i64} {
  func.func @_attention_kernel(%arg0: i32, %arg1: memref<1x8x4x8xbf16, #tpu.memory_space<vmem>>, %arg2: memref<1x16x1x4x8xbf16, #tpu.memory_space<vmem>>, %arg3: memref<1x16x1x4x8xbf16, #tpu.memory_space<vmem>>, %arg4: memref<1x8x16xf32, #tpu.memory_space<vmem>>, %arg5: memref<1x8x4x8xbf16, #tpu.memory_space<vmem>>, %arg6: memref<1x4x8x16xf32, #tpu.memory_space<vmem>>) attributes {dimension_semantics = [#tpu.dimension_semantics<parallel>], iteration_bounds = array<i64: 2>, scalar_prefetch = 0 : i64, scratch_operands = 0 : i64, tpu.core_type = #tpu.core_type<tc>, window_params = [{transform_indices = @transform_0, window_bounds = array<i64: 1, 8, 4, 8>}, {transform_indices = @transform_1, window_bounds = array<i64: 1, 16, 1, 4, 8>}, {transform_indices = @transform_2, window_bounds = array<i64: 1, 16, 1, 4, 8>}, {transform_indices = @transform_3, window_bounds = array<i64: 1, 8, 16>}, {transform_indices = @transform_4, window_bounds = array<i64: 1, 8, 4, 8>}, {transform_indices = @transform_5, window_bounds = array<i64: 1, 4, 8, 16>}]} {
    %c0 = arith.constant 0 : index
    %c0_0 = arith.constant 0 : index
    %c0_1 = arith.constant 0 : index
    %c0_2 = arith.constant 0 : index
    %0 = vector.load %arg1[%c0, %c0_0, %c0_1, %c0_2] : memref<1x8x4x8xbf16, #tpu.memory_space<vmem>>, vector<1x8x4x8xbf16>
    %1 = vector.shape_cast %0 : vector<1x8x4x8xbf16> to vector<8x4x8xbf16>
    %c0_3 = arith.constant 0 : index
    %c0_4 = arith.constant 0 : index
    %c0_5 = arith.constant 0 : index
    %c0_6 = arith.constant 0 : index
    %c0_7 = arith.constant 0 : index
    %2 = vector.load %arg2[%c0_3, %c0_4, %c0_5, %c0_6, %c0_7] : memref<1x16x1x4x8xbf16, #tpu.memory_space<vmem>>, vector<1x16x1x4x8xbf16>
    %3 = vector.shape_cast %2 : vector<1x16x1x4x8xbf16> to vector<16x4x8xbf16>
    %c0_8 = arith.constant 0 : index
    %c0_9 = arith.constant 0 : index
    %c0_10 = arith.constant 0 : index
    %c0_11 = arith.constant 0 : index
    %c0_12 = arith.constant 0 : index
    %4 = vector.load %arg3[%c0_8, %c0_9, %c0_10, %c0_11, %c0_12] : memref<1x16x1x4x8xbf16, #tpu.memory_space<vmem>>, vector<1x16x1x4x8xbf16>
    %5 = vector.shape_cast %4 : vector<1x16x1x4x8xbf16> to vector<16x4x8xbf16>
    %c0_13 = arith.constant 0 : index
    %c0_14 = arith.constant 0 : index
    %c0_15 = arith.constant 0 : index
    %6 = vector.load %arg4[%c0_13, %c0_14, %c0_15] : memref<1x8x16xf32, #tpu.memory_space<vmem>>, vector<1x8x16xf32>
    %7 = vector.shape_cast %6 : vector<1x8x16xf32> to vector<8x16xf32>
    %8 = vector.extract_strided_slice %1 {offsets = [0, 0, 0], sizes = [8, 1, 8], strides = [1, 1, 1]} : vector<8x4x8xbf16> to vector<8x1x8xbf16>
    %9 = vector.shape_cast %8 : vector<8x1x8xbf16> to vector<8x8xbf16>
    %10 = vector.extract_strided_slice %3 {offsets = [0, 0, 0], sizes = [16, 1, 8], strides = [1, 1, 1]} : vector<16x4x8xbf16> to vector<16x1x8xbf16>
    %11 = vector.shape_cast %10 : vector<16x1x8xbf16> to vector<16x8xbf16>
    %12 = vector.extract_strided_slice %5 {offsets = [0, 0, 0], sizes = [16, 1, 8], strides = [1, 1, 1]} : vector<16x4x8xbf16> to vector<16x1x8xbf16>
    %13 = vector.shape_cast %12 : vector<16x1x8xbf16> to vector<16x8xbf16>
    %cst = arith.constant dense<0.000000e+00> : vector<8x16xf32>
    %14 = tpu.matmul %9, %11, %cst {dimension_numbers = #tpu.dot_dimension_numbers<[1], [1], [0], [0], [0, 0, 1, 0], [], []>} : vector<8x8xbf16>, vector<16x8xbf16>, vector<8x16xf32> -> vector<8x16xf32>
    %cst_16 = arith.constant 0.353553385 : f32
    %15 = vector.broadcast %cst_16 : f32 to vector<8x16xf32>
    %16 = arith.mulf %14, %15 : vector<8x16xf32>
    %cst_17 = arith.constant 0.000000e+00 : f32
    %17 = vector.broadcast %cst_17 : f32 to vector<8x16xf32>
    %18 = arith.cmpf oeq, %7, %17 : vector<8x16xf32>
    %cst_18 = arith.constant -1.000000e+09 : f32
    %19 = vector.broadcast %cst_18 : f32 to vector<8x16xf32>
    %20 = arith.select %18, %19, %16 : vector<8x16xi1>, vector<8x16xf32>
    %cst_19 = arith.constant dense<0xFF800000> : vector<8xf32>
    %21 = vector.multi_reduction <maximumf>, %20, %cst_19 [1] : vector<8x16xf32> to vector<8xf32>
    %22 = vector.shape_cast %21 : vector<8xf32> to vector<8x1xf32>
    %23 = vector.broadcast %22 : vector<8x1xf32> to vector<8x16xf32>
    %24 = arith.subf %20, %23 : vector<8x16xf32>
    %25 = math.exp %24 : vector<8x16xf32>
    %cst_20 = arith.constant dense<0.000000e+00> : vector<8xf32>
    %26 = vector.multi_reduction <add>, %25, %cst_20 [1] : vector<8x16xf32> to vector<8xf32>
    %27 = vector.shape_cast %26 : vector<8xf32> to vector<8x1xf32>
    %28 = tpu.reciprocal %27 {approx = true} : vector<8x1xf32> -> vector<8x1xf32>
    %29 = vector.broadcast %28 : vector<8x1xf32> to vector<8x16xf32>
    %30 = arith.mulf %25, %29 : vector<8x16xf32>
    %31 = arith.truncf %30 : vector<8x16xf32> to vector<8x16xbf16>
    %cst_21 = arith.constant dense<0.000000e+00> : vector<8x8xf32>
    %32 = tpu.matmul %31, %13, %cst_21 {dimension_numbers = #tpu.dot_dimension_numbers<[1], [0], [0], [1], [0, 0, 1, 1], [], []>} : vector<8x16xbf16>, vector<16x8xbf16>, vector<8x8xf32> -> vector<8x8xf32>
    %33 = vector.extract_strided_slice %1 {offsets = [0, 1, 0], sizes = [8, 1, 8], strides = [1, 1, 1]} : vector<8x4x8xbf16> to vector<8x1x8xbf16>
    %34 = vector.shape_cast %33 : vector<8x1x8xbf16> to vector<8x8xbf16>
    %35 = vector.extract_strided_slice %3 {offsets = [0, 1, 0], sizes = [16, 1, 8], strides = [1, 1, 1]} : vector<16x4x8xbf16> to vector<16x1x8xbf16>
    %36 = vector.shape_cast %35 : vector<16x1x8xbf16> to vector<16x8xbf16>
    %37 = vector.extract_strided_slice %5 {offsets = [0, 1, 0], sizes = [16, 1, 8], strides = [1, 1, 1]} : vector<16x4x8xbf16> to vector<16x1x8xbf16>
    %38 = vector.shape_cast %37 : vector<16x1x8xbf16> to vector<16x8xbf16>
    %cst_22 = arith.constant dense<0.000000e+00> : vector<8x16xf32>
    %39 = tpu.matmul %34, %36, %cst_22 {dimension_numbers = #tpu.dot_dimension_numbers<[1], [1], [0], [0], [0, 0, 1, 0], [], []>} : vector<8x8xbf16>, vector<16x8xbf16>, vector<8x16xf32> -> vector<8x16xf32>
    %cst_23 = arith.constant 0.353553385 : f32
    %40 = vector.broadcast %cst_23 : f32 to vector<8x16xf32>
    %41 = arith.mulf %39, %40 : vector<8x16xf32>
    %cst_24 = arith.constant 0.000000e+00 : f32
    %42 = vector.broadcast %cst_24 : f32 to vector<8x16xf32>
    %43 = arith.cmpf oeq, %7, %42 : vector<8x16xf32>
    %cst_25 = arith.constant -1.000000e+09 : f32
    %44 = vector.broadcast %cst_25 : f32 to vector<8x16xf32>
    %45 = arith.select %43, %44, %41 : vector<8x16xi1>, vector<8x16xf32>
    %cst_26 = arith.constant dense<0xFF800000> : vector<8xf32>
    %46 = vector.multi_reduction <maximumf>, %45, %cst_26 [1] : vector<8x16xf32> to vector<8xf32>
    %47 = vector.shape_cast %46 : vector<8xf32> to vector<8x1xf32>
    %48 = vector.broadcast %47 : vector<8x1xf32> to vector<8x16xf32>
    %49 = arith.subf %45, %48 : vector<8x16xf32>
    %50 = math.exp %49 : vector<8x16xf32>
    %cst_27 = arith.constant dense<0.000000e+00> : vector<8xf32>
    %51 = vector.multi_reduction <add>, %50, %cst_27 [1] : vector<8x16xf32> to vector<8xf32>
    %52 = vector.shape_cast %51 : vector<8xf32> to vector<8x1xf32>
    %53 = tpu.reciprocal %52 {approx = true} : vector<8x1xf32> -> vector<8x1xf32>
    %54 = vector.broadcast %53 : vector<8x1xf32> to vector<8x16xf32>
    %55 = arith.mulf %50, %54 : vector<8x16xf32>
    %56 = arith.truncf %55 : vector<8x16xf32> to vector<8x16xbf16>
    %cst_28 = arith.constant dense<0.000000e+00> : vector<8x8xf32>
    %57 = tpu.matmul %56, %38, %cst_28 {dimension_numbers = #tpu.dot_dimension_numbers<[1], [0], [0], [1], [0, 0, 1, 1], [], []>} : vector<8x16xbf16>, vector<16x8xbf16>, vector<8x8xf32> -> vector<8x8xf32>
    %58 = vector.extract_strided_slice %1 {offsets = [0, 2, 0], sizes = [8, 1, 8], strides = [1, 1, 1]} : vector<8x4x8xbf16> to vector<8x1x8xbf16>
    %59 = vector.shape_cast %58 : vector<8x1x8xbf16> to vector<8x8xbf16>
    %60 = vector.extract_strided_slice %3 {offsets = [0, 2, 0], sizes = [16, 1, 8], strides = [1, 1, 1]} : vector<16x4x8xbf16> to vector<16x1x8xbf16>
    %61 = vector.shape_cast %60 : vector<16x1x8xbf16> to vector<16x8xbf16>
    %62 = vector.extract_strided_slice %5 {offsets = [0, 2, 0], sizes = [16, 1, 8], strides = [1, 1, 1]} : vector<16x4x8xbf16> to vector<16x1x8xbf16>
    %63 = vector.shape_cast %62 : vector<16x1x8xbf16> to vector<16x8xbf16>
    %cst_29 = arith.constant dense<0.000000e+00> : vector<8x16xf32>
    %64 = tpu.matmul %59, %61, %cst_29 {dimension_numbers = #tpu.dot_dimension_numbers<[1], [1], [0], [0], [0, 0, 1, 0], [], []>} : vector<8x8xbf16>, vector<16x8xbf16>, vector<8x16xf32> -> vector<8x16xf32>
    %cst_30 = arith.constant 0.353553385 : f32
    %65 = vector.broadcast %cst_30 : f32 to vector<8x16xf32>
    %66 = arith.mulf %64, %65 : vector<8x16xf32>
    %cst_31 = arith.constant 0.000000e+00 : f32
    %67 = vector.broadcast %cst_31 : f32 to vector<8x16xf32>
    %68 = arith.cmpf oeq, %7, %67 : vector<8x16xf32>
    %cst_32 = arith.constant -1.000000e+09 : f32
    %69 = vector.broadcast %cst_32 : f32 to vector<8x16xf32>
    %70 = arith.select %68, %69, %66 : vector<8x16xi1>, vector<8x16xf32>
    %cst_33 = arith.constant dense<0xFF800000> : vector<8xf32>
    %71 = vector.multi_reduction <maximumf>, %70, %cst_33 [1] : vector<8x16xf32> to vector<8xf32>
    %72 = vector.shape_cast %71 : vector<8xf32> to vector<8x1xf32>
    %73 = vector.broadcast %72 : vector<8x1xf32> to vector<8x16xf32>
    %74 = arith.subf %70, %73 : vector<8x16xf32>
    %75 = math.exp %74 : vector<8x16xf32>
    %cst_34 = arith.constant dense<0.000000e+00> : vector<8xf32>
    %76 = vector.multi_reduction <add>, %75, %cst_34 [1] : vector<8x16xf32> to vector<8xf32>
    %77 = vector.shape_cast %76 : vector<8xf32> to vector<8x1xf32>
    %78 = tpu.reciprocal %77 {approx = true} : vector<8x1xf32> -> vector<8x1xf32>
    %79 = vector.broadcast %78 : vector<8x1xf32> to vector<8x16xf32>
    %80 = arith.mulf %75, %79 : vector<8x16xf32>
    %81 = arith.truncf %80 : vector<8x16xf32> to vector<8x16xbf16>
    %cst_35 = arith.constant dense<0.000000e+00> : vector<8x8xf32>
    %82 = tpu.matmul %81, %63, %cst_35 {dimension_numbers = #tpu.dot_dimension_numbers<[1], [0], [0], [1], [0, 0, 1, 1], [], []>} : vector<8x16xbf16>, vector<16x8xbf16>, vector<8x8xf32> -> vector<8x8xf32>
    %83 = vector.extract_strided_slice %1 {offsets = [0, 3, 0], sizes = [8, 1, 8], strides = [1, 1, 1]} : vector<8x4x8xbf16> to vector<8x1x8xbf16>
    %84 = vector.shape_cast %83 : vector<8x1x8xbf16> to vector<8x8xbf16>
    %85 = vector.extract_strided_slice %3 {offsets = [0, 3, 0], sizes = [16, 1, 8], strides = [1, 1, 1]} : vector<16x4x8xbf16> to vector<16x1x8xbf16>
    %86 = vector.shape_cast %85 : vector<16x1x8xbf16> to vector<16x8xbf16>
    %87 = vector.extract_strided_slice %5 {offsets = [0, 3, 0], sizes = [16, 1, 8], strides = [1, 1, 1]} : vector<16x4x8xbf16> to vector<16x1x8xbf16>
    %88 = vector.shape_cast %87 : vector<16x1x8xbf16> to vector<16x8xbf16>
    %cst_36 = arith.constant dense<0.000000e+00> : vector<8x16xf32>
    %89 = tpu.matmul %84, %86, %cst_36 {dimension_numbers = #tpu.dot_dimension_numbers<[1], [1], [0], [0], [0, 0, 1, 0], [], []>} : vector<8x8xbf16>, vector<16x8xbf16>, vector<8x16xf32> -> vector<8x16xf32>
    %cst_37 = arith.constant 0.353553385 : f32
    %90 = vector.broadcast %cst_37 : f32 to vector<8x16xf32>
    %91 = arith.mulf %89, %90 : vector<8x16xf32>
    %cst_38 = arith.constant 0.000000e+00 : f32
    %92 = vector.broadcast %cst_38 : f32 to vector<8x16xf32>
    %93 = arith.cmpf oeq, %7, %92 : vector<8x16xf32>
    %cst_39 = arith.constant -1.000000e+09 : f32
    %94 = vector.broadcast %cst_39 : f32 to vector<8x16xf32>
    %95 = arith.select %93, %94, %91 : vector<8x16xi1>, vector<8x16xf32>
    %cst_40 = arith.constant dense<0xFF800000> : vector<8xf32>
    %96 = vector.multi_reduction <maximumf>, %95, %cst_40 [1] : vector<8x16xf32> to vector<8xf32>
    %97 = vector.shape_cast %96 : vector<8xf32> to vector<8x1xf32>
    %98 = vector.broadcast %97 : vector<8x1xf32> to vector<8x16xf32>
    %99 = arith.subf %95, %98 : vector<8x16xf32>
    %100 = math.exp %99 : vector<8x16xf32>
    %cst_41 = arith.constant dense<0.000000e+00> : vector<8xf32>
    %101 = vector.multi_reduction <add>, %100, %cst_41 [1] : vector<8x16xf32> to vector<8xf32>
    %102 = vector.shape_cast %101 : vector<8xf32> to vector<8x1xf32>
    %103 = tpu.reciprocal %102 {approx = true} : vector<8x1xf32> -> vector<8x1xf32>
    %104 = vector.broadcast %103 : vector<8x1xf32> to vector<8x16xf32>
    %105 = arith.mulf %100, %104 : vector<8x16xf32>
    %106 = arith.truncf %105 : vector<8x16xf32> to vector<8x16xbf16>
    %cst_42 = arith.constant dense<0.000000e+00> : vector<8x8xf32>
    %107 = tpu.matmul %106, %88, %cst_42 {dimension_numbers = #tpu.dot_dimension_numbers<[1], [0], [0], [1], [0, 0, 1, 1], [], []>} : vector<8x16xbf16>, vector<16x8xbf16>, vector<8x8xf32> -> vector<8x8xf32>
    %108 = vector.shape_cast %32 : vector<8x8xf32> to vector<8x1x8xf32>
    %109 = vector.shape_cast %57 : vector<8x8xf32> to vector<8x1x8xf32>
    %110 = vector.shape_cast %82 : vector<8x8xf32> to vector<8x1x8xf32>
    %111 = vector.shape_cast %107 : vector<8x8xf32> to vector<8x1x8xf32>
    %112 = tpu.concatenate %108, %109, %110, %111 in 1 : vector<8x1x8xf32>, vector<8x1x8xf32>, vector<8x1x8xf32>, vector<8x1x8xf32> -> vector<8x4x8xf32>
    %113 = arith.truncf %112 : vector<8x4x8xf32> to vector<8x4x8xbf16>
    %c0_43 = arith.constant 0 : index
    %c0_44 = arith.constant 0 : index
    %c0_45 = arith.constant 0 : index
    %c0_46 = arith.constant 0 : index
    %114 = vector.load %arg5[%c0_43, %c0_44, %c0_45, %c0_46] : memref<1x8x4x8xbf16, #tpu.memory_space<vmem>>, vector<1x8x4x8xbf16>
    %115 = vector.shape_cast %114 : vector<1x8x4x8xbf16> to vector<8x4x8xbf16>
    %116 = vector.shape_cast %113 : vector<8x4x8xbf16> to vector<1x8x4x8xbf16>
    tpu.vector_store %arg5[%c0_43, %c0_44, %c0_45, %c0_46], %116 {strides = array<i32>} : memref<1x8x4x8xbf16, #tpu.memory_space<vmem>>, vector<1x8x4x8xbf16>,
    %117 = vector.shape_cast %30 : vector<8x16xf32> to vector<1x8x16xf32>
    %118 = vector.shape_cast %55 : vector<8x16xf32> to vector<1x8x16xf32>
    %119 = vector.shape_cast %80 : vector<8x16xf32> to vector<1x8x16xf32>
    %120 = vector.shape_cast %105 : vector<8x16xf32> to vector<1x8x16xf32>
    %121 = tpu.concatenate %117, %118, %119, %120 in 0 : vector<1x8x16xf32>, vector<1x8x16xf32>, vector<1x8x16xf32>, vector<1x8x16xf32> -> vector<4x8x16xf32>
    %c0_47 = arith.constant 0 : index
    %c0_48 = arith.constant 0 : index
    %c0_49 = arith.constant 0 : index
    %c0_50 = arith.constant 0 : index
    %122 = vector.load %arg6[%c0_47, %c0_48, %c0_49, %c0_50] : memref<1x4x8x16xf32, #tpu.memory_space<vmem>>, vector<1x4x8x16xf32>
    %123 = vector.shape_cast %122 : vector<1x4x8x16xf32> to vector<4x8x16xf32>
    %124 = vector.shape_cast %121 : vector<4x8x16xf32> to vector<1x4x8x16xf32>
    tpu.vector_store %arg6[%c0_47, %c0_48, %c0_49, %c0_50], %124 {strides = array<i32>} : memref<1x4x8x16xf32, #tpu.memory_space<vmem>>, vector<1x4x8x16xf32>,
    return
  }
  func.func @transform_0(%arg0: i32) -> (i32, i32, i32, i32) {
    %c0_i32 = arith.constant 0 : i32
    %c0_i32_0 = arith.constant 0 : i32
    %c0_i32_1 = arith.constant 0 : i32
    %c0_i32_2 = arith.constant 0 : i32
    return %arg0, %c0_i32, %c0_i32_0, %c0_i32_1 : i32, i32, i32, i32
  }
  func.func @transform_1(%arg0: i32) -> (i32, i32, i32, i32, i32) {
    %c0_i32 = arith.constant 0 : i32
    %c0_i32_0 = arith.constant 0 : i32
    %c0_i32_1 = arith.constant 0 : i32
    %c0_i32_2 = arith.constant 0 : i32
    %c0_i32_3 = arith.constant 0 : i32
    return %arg0, %c0_i32, %c0_i32_0, %c0_i32_1, %c0_i32_2 : i32, i32, i32, i32, i32
  }
  func.func @transform_2(%arg0: i32) -> (i32, i32, i32, i32, i32) {
    %c0_i32 = arith.constant 0 : i32
    %c1_i32 = arith.constant 1 : i32
    %c0_i32_0 = arith.constant 0 : i32
    %c0_i32_1 = arith.constant 0 : i32
    %c0_i32_2 = arith.constant 0 : i32
    return %arg0, %c0_i32, %c1_i32, %c0_i32_0, %c0_i32_1 : i32, i32, i32, i32, i32
  }
  func.func @transform_3(%arg0: i32) -> (i32, i32, i32) {
    %c0_i32 = arith.constant 0 : i32
    %c0_i32_0 = arith.constant 0 : i32
    %c0_i32_1 = arith.constant 0 : i32
    return %arg0, %c0_i32, %c0_i32_0 : i32, i32, i32
  }
  func.func @transform_4(%arg0: i32) -> (i32, i32, i32, i32) {
    %c0_i32 = arith.constant 0 : i32
    %c0_i32_0 = arith.constant 0 : i32
    %c0_i32_1 = arith.constant 0 : i32
    %c0_i32_2 = arith.constant 0 : i32
    return %arg0, %c0_i32, %c0_i32_0, %c0_i32_1 : i32, i32, i32, i32
  }
  func.func @transform_5(%arg0: i32) -> (i32, i32, i32, i32) {
    %c0_i32 = arith.constant 0 : i32
    %c0_i32_0 = arith.constant 0 : i32
    %c0_i32_1 = arith.constant 0 : i32
    %c0_i32_2 = arith.constant 0 : i32
    return %arg0, %c0_i32, %c0_i32_0, %c0_i32_1 : i32, i32, i32, i32
  }
}

module attributes {stable_mosaic.version = 11 : i64} {
  func.func @_fused_linear_kernel(%arg0: i32, %arg1: i32, %arg2: memref<2xf32, #tpu.memory_space<smem>>, %arg3: memref<16x32xf32, #tpu.memory_space<vmem>>, %arg4: memref<32x64xbf16, #tpu.memory_space<vmem>>, %arg5: memref<1x64xf32, #tpu.memory_space<vmem>>, %arg6: memref<16x64xbf16, #tpu.memory_space<vmem>>) attributes {dimension_semantics = [#tpu.dimension_semantics<parallel>, #tpu.dimension_semantics<parallel>], iteration_bounds = array<i64: 1, 1>, scalar_prefetch = 0 : i64, scratch_operands = 0 : i64, tpu.core_type = #tpu.core_type<tc>, window_params = [{transform_indices = @transform_0, window_bounds = array<i64: 2>}, {transform_indices = @transform_1, window_bounds = array<i64: 16, 32>}, {transform_indices = @transform_2, window_bounds = array<i64: 32, 64>}, {transform_indices = @transform_3, window_bounds = array<i64: 1, 64>}, {transform_indices = @transform_4, window_bounds = array<i64: 16, 64>}]} {
    %c0 = arith.constant 0 : index
    %c0_0 = arith.constant 0 : index
    %0 = vector.load %arg3[%c0, %c0_0] : memref<16x32xf32, #tpu.memory_space<vmem>>, vector<16x32xf32>
    %cst = arith.constant dense<0.000000e+00> : vector<16xf32>
    %1 = vector.multi_reduction <add>, %0, %cst [1] : vector<16x32xf32> to vector<16xf32>
    %2 = vector.shape_cast %1 : vector<16xf32> to vector<16x1xf32>
    %cst_1 = arith.constant 3.200000e+01 : f32
    %3 = vector.broadcast %cst_1 : f32 to vector<16x1xf32>
    %4 = arith.divf %2, %3 : vector<16x1xf32>
    %5 = vector.broadcast %4 : vector<16x1xf32> to vector<16x32xf32>
    %6 = arith.subf %0, %5 : vector<16x32xf32>
    %7 = arith.mulf %6, %6 : vector<16x32xf32>
    %cst_2 = arith.constant dense<0.000000e+00> : vector<16xf32>
    %8 = vector.multi_reduction <add>, %7, %cst_2 [1] : vector<16x32xf32> to vector<16xf32>
    %9 = vector.shape_cast %8 : vector<16xf32> to vector<16x1xf32>
    %cst_3 = arith.constant 3.100000e+01 : f32
    %10 = vector.broadcast %cst_3 : f32 to vector<16x1xf32>
    %11 = arith.divf %9, %10 : vector<16x1xf32>
    %12 = math.sqrt %11 : vector<16x1xf32>
    %cst_4 = arith.constant 9.99999997E-7 : f32
    %13 = vector.broadcast %cst_4 : f32 to vector<16x1xf32>
    %14 = arith.addf %12, %13 : vector<16x1xf32>
    %15 = tpu.reciprocal %14 {approx = true} : vector<16x1xf32> -> vector<16x1xf32>
    %c0_5 = arith.constant 0 : index
    %16 = memref.load %arg2[%c0_5] : memref<2xf32, #tpu.memory_space<smem>>
    %17 = vector.broadcast %4 : vector<16x1xf32> to vector<16x32xf32>
    %18 = arith.subf %0, %17 : vector<16x32xf32>
    %19 = vector.broadcast %16 : f32 to vector<16x32xf32>
    %20 = arith.mulf %19, %18 : vector<16x32xf32>
    %21 = vector.broadcast %15 : vector<16x1xf32> to vector<16x32xf32>
    %22 = arith.mulf %20, %21 : vector<16x32xf32>
    %c1 = arith.constant 1 : index
    %23 = memref.load %arg2[%c1] : memref<2xf32, #tpu.memory_space<smem>>
    %24 = vector.broadcast %23 : f32 to vector<16x32xf32>
    %25 = arith.addf %22, %24 : vector<16x32xf32>
    %26 = arith.truncf %25 : vector<16x32xf32> to vector<16x32xbf16>
    %c0_6 = arith.constant 0 : index
    %c0_7 = arith.constant 0 : index
    %27 = vector.load %arg4[%c0_6, %c0_7] : memref<32x64xbf16, #tpu.memory_space<vmem>>, vector<32x64xbf16>
    %cst_8 = arith.constant dense<0.000000e+00> : vector<16x64xf32>
    %28 = tpu.matmul %26, %27, %cst_8 {dimension_numbers = #tpu.dot_dimension_numbers<[1], [0], [0], [1], [0, 0, 1, 1], [], []>} : vector<16x32xbf16>, vector<32x64xbf16>, vector<16x64xf32> -> vector<16x64xf32>
    %c0_9 = arith.constant 0 : index
    %c0_10 = arith.constant 0 : index
    %29 = vector.load %arg5[%c0_9, %c0_10] : memref<1x64xf32, #tpu.memory_space<vmem>>, vector<1x64xf32>
    %30 = vector.broadcast %29 : vector<1x64xf32> to vector<16x64xf32>
    %31 = arith.addf %28, %30 : vector<16x64xf32>
    %cst_11 = arith.constant 0.000000e+00 : f32
    %32 = vector.broadcast %cst_11 : f32 to vector<16x64xf32>
    %33 = arith.maximumf %31, %32 : vector<16x64xf32>
    %34 = arith.truncf %33 : vector<16x64xf32> to vector<16x64xbf16>
    %c0_12 = arith.constant 0 : index
    %c0_13 = arith.constant 0 : index
    %35 = vector.load %arg6[%c0_12, %c0_13] : memref<16x64xbf16, #tpu.memory_space<vmem>>, vector<16x64xbf16>
    tpu.vector_store %arg6[%c0_12, %c0_13], %34 {strides = array<i32>} : memref<16x64xbf16, #tpu.memory_space<vmem>>, vector<16x64xbf16>,
    return
  }
  func.func @transform_0(%arg0: i32, %arg1: i32) -> i32 {
    %c0_i32 = arith.constant 0 : i32
    %c0_i32_0 = arith.constant 0 : i32
    return %c0_i32 : i32
  }
  func.func @transform_1(%arg0: i32, %arg1: i32) -> (i32, i32) {
    %c0_i32 = arith.constant 0 : i32
    %c0_i32_0 = arith.constant 0 : i32
    return %arg0, %c0_i32 : i32, i32
  }
  func.func @transform_2(%arg0: i32, %arg1: i32) -> (i32, i32) {
    %c0_i32 = arith.constant 0 : i32
    %c0_i32_0 = arith.constant 0 : i32
    return %c0_i32, %arg1 : i32, i32
  }
  func.func @transform_3(%arg0: i32, %arg1: i32) -> (i32, i32) {
    %c0_i32 = arith.constant 0 : i32
    %c0_i32_0 = arith.constant 0 : i32
    return %c0_i32, %arg1 : i32, i32
  }
  func.func @transform_4(%arg0: i32, %arg1: i32) -> (i32, i32) {
    %c0_i32 = arith.constant 0 : i32
    return %arg0, %arg1 : i32, i32
  }
}

module attributes {stable_mosaic.version = 11 : i64} {
  func.func @_fused_linear_kernel(%arg0: i32, %arg1: i32, %arg2: memref<16x64xbf16, #tpu.memory_space<vmem>>, %arg3: memref<64x32xbf16, #tpu.memory_space<vmem>>, %arg4: memref<1x32xf32, #tpu.memory_space<vmem>>, %arg5: memref<16x32xf32, #tpu.memory_space<vmem>>, %arg6: memref<16x32xf32, #tpu.memory_space<vmem>>) attributes {dimension_semantics = [#tpu.dimension_semantics<parallel>, #tpu.dimension_semantics<parallel>], iteration_bounds = array<i64: 1, 1>, scalar_prefetch = 0 : i64, scratch_operands = 0 : i64, tpu.core_type = #tpu.core_type<tc>, window_params = [{transform_indices = @transform_0, window_bounds = array<i64: 16, 64>}, {transform_indices = @transform_1, window_bounds = array<i64: 64, 32>}, {transform_indices = @transform_2, window_bounds = array<i64: 1, 32>}, {transform_indices = @transform_3, window_bounds = array<i64: 16, 32>}, {transform_indices = @transform_4, window_bounds = array<i64: 16, 32>}]} {
    %c0 = arith.constant 0 : index
    %c0_0 = arith.constant 0 : index
    %0 = vector.load %arg2[%c0, %c0_0] : memref<16x64xbf16, #tpu.memory_space<vmem>>, vector<16x64xbf16>
    %c0_1 = arith.constant 0 : index
    %c0_2 = arith.constant 0 : index
    %1 = vector.load %arg3[%c0_1, %c0_2] : memref<64x32xbf16, #tpu.memory_space<vmem>>, vector<64x32xbf16>
    %cst = arith.constant dense<0.000000e+00> : vector<16x32xf32>
    %2 = tpu.matmul %0, %1, %cst {dimension_numbers = #tpu.dot_dimension_numbers<[1], [0], [0], [1], [0, 0, 1, 1], [], []>} : vector<16x64xbf16>, vector<64x32xbf16>, vector<16x32xf32> -> vector<16x32xf32>
    %c0_3 = arith.constant 0 : index
    %c0_4 = arith.constant 0 : index
    %3 = vector.load %arg4[%c0_3, %c0_4] : memref<1x32xf32, #tpu.memory_space<vmem>>, vector<1x32xf32>
    %4 = vector.broadcast %3 : vector<1x32xf32> to vector<16x32xf32>
    %5 = arith.addf %2, %4 : vector<16x32xf32>
    %c0_5 = arith.constant 0 : index
    %c0_6 = arith.constant 0 : index
    %6 = vector.load %arg5[%c0_5, %c0_6] : memref<16x32xf32, #tpu.memory_space<vmem>>, vector<16x32xf32>
    %7 = arith.addf %5, %6 : vector<16x32xf32>
    %c0_7 = arith.constant 0 : index
    %c0_8 = arith.constant 0 : index
    %8 = vector.load %arg6[%c0_7, %c0_8] : memref<16x32xf32, #tpu.memory_space<vmem>>, vector<16x32xf32>
    tpu.vector_store %arg6[%c0_7, %c0_8], %7 {strides = array<i32>} : memref<16x32xf32, #tpu.memory_space<vmem>>, vector<16x32xf32>,
    return
  }
  func.func @transform_0(%arg0: i32, %arg1: i32) -> (i32, i32) {
    %c0_i32 = arith.constant 0 : i32
    %c0_i32_0 = arith.constant 0 : i32
    return %arg0, %c0_i32 : i32, i32
  }
  func.func @transform_1(%arg0: i32, %arg1: i32) -> (i32, i32) {
    %c0_i32 = arith.constant 0 : i32
    %c0_i32_0 = arith.constant 0 : i32
    return %c0_i32, %arg1 : i32, i32
  }
  func.func @transform_2(%arg0: i32, %arg1: i32) -> (i32, i32) {
    %c0_i32 = arith.constant 0 : i32
    %c0_i32_0 = arith.constant 0 : i32
    return %c0_i32, %arg1 : i32, i32
  }
  func.func @transform_3(%arg0: i32, %arg1: i32) -> (i32, i32) {
    %c0_i32 = arith.constant 0 : i32
    return %arg0, %arg1 : i32, i32
  }
  func.func @transform_4(%arg0: i32, %arg1: i32) -> (i32, i32) {
    %c0_i32 = arith.constant 0 : i32
    return %arg0, %arg1 : i32, i32
  }
}

</mosaic_0001>

<bundles_post_ra>
// kernel: decoder_block_pallas.9
= control target key start
LH: loop header
LB: loop body
LE: loop exit
PB: predicated region body
PF: predicated region fallthrough
CT: control target
= control target key end

     0   :  { %9 = vsyncpa [#allocation3], 0  ;;  %s272_s0 = inlined_call_operand.vmem [shape: f32[2], index: 0, kind: input, shape index: {}]   ;;  %s273_s1 = inlined_call_operand.vmem [shape: f32[16,32], index: 1, kind: input, shape index: {}]   ;;  %s274_s2 = inlined_call_operand.vmem [shape: bf16[32,96], index: 2, kind: input, shape index: {}]   ;;  %s275_s3 = inlined_call_operand.vmem [shape: f32[1,96], index: 3, kind: input, shape index: {}]   ;;  %s276_s4 = inlined_call_operand.vmem [shape: bf16[16,96], index: 4, kind: output, shape index: {}]  }
   0x1   :  { %s16_s17 = sshll.u32 %s272_s0, 4  ;;  %s17_s17 = int_to_ptr.vmem [resolvable:$true] %s16_s17 }
   0x2   :  { %s201_s18 = scalar_lea.vmem %s17_s17, 16  ;;  %p206_p1 = scmp.lt.s32.totalorder %s17_s17, %s17_s17 }
   0x3   :  { %p202_p0 = scmp.ne.s32.totalorder %s17_s17, %s201_s18  ;;  %p207_p2 = scmp.lt.s32.totalorder %s201_s18, %s201_s18 }
   0x5   :  { %p208_p3 = por %p207_p2, %p206_p1 }
   0x7   :  { %p209_p4 = pnand %p208_p3, %p202_p0 }
   0x9   :  { %212 = shalt.err (!%p209_p4)
}
   0xa   :  { %s215_s19 = smov [#allocation2]  }
   0xb   :  { %19 = dma.vmem_to_smem %s17_s17, 16, %s215_s19, [#allocation3]  }
   0xc   :  { %213 = dma.done.wait [#allocation3], 16  }
   0xd   :  { %214 = vsyncadd [#allocation3], 4294967280 }
   0xe   :  { %29 = sfence }
   0xf   :  { %v31_v0 = vld [vmem:[%s273_s1] sm:$0xff]  ;;  %vm33_vm0 = vcmask 261120   ;;  %v32_v1 = vld [vmem:[%s273_s1 + $0x8] sm:$0xff]  ;;  %v216_v15 = vmov 0.0   ;;  %vm217_vm1 = vmmov 0   ;;  %s168_s26 = sld [smem:[#allocation2 + $0x1]] }
  0x10   :  { %v34_v2 = vsel %vm33_vm0, %v31_v0, 0.0  ;;  %v37_v3 = vsel %vm33_vm0, %v32_v1, 0.0  ;;  %v191_v14 = vld [vmem:[%s274_s2] sm:$0xff]   ;;  %180 = vmatprep.subr.bf16.mxu0 %v216_v15  ;;  %184 = vmatprep.mubr.msk.bf16.mxu0 %vm217_vm1, %v216_v15  ;;  %v192_v16 = vld [vmem:[%s274_s2 + $0x8] sm:$0xff]   ;;  %s74_s2 = sld [smem:[#allocation2]]  ;;  %vm160_vm6 = vcmask 781312  }
  0x11   :  { %35 = vadd.xlane.f32.xlu0 %v34_v2  ;;  %181 = vmatpush3.bf16.msra.mxu0 %v191_v14  ;;  %v169_v44 = vld [vmem:[%s275_s3] ss:$0 sm:$0xff] }
  0x12   :  { %182 = vmatprep.subr.bf16.mxu0 %v216_v15 }
  0x15   :  { %38 = vadd.xlane.f32.xlu0 %v37_v3  ;;  %183 = vmatpush3.bf16.msra.mxu0 %v192_v16  ;;  %v81_v39 = vstv %s168_s26 }
  0x16   :  { %v75_v33 = vstv %s74_s2 }
  0x9e   :  { %v36_v4 = vpop.xlane.xlu0 %35 }
  0x9f   :  { %v41_v5 = vmul.f32 0.03125, %v36_v4 }
  0xa1   :  { %v43_v6 = vsub.f32 %v31_v0, %v41_v5 }
  0xa2   :  { %v39_v7 = vpop.xlane.xlu0 %38 }
  0xa3   :  { %v42_v8 = vmul.f32 0.03125, %v39_v7  ;;  %v45_v9 = vmul.f32 %v43_v6, %v43_v6  ;;  %v76_v35 = vmul.f32 %v75_v33, %v43_v6 }
  0xa5   :  { %v44_v10 = vsub.f32 %v32_v1, %v42_v8  ;;  %v47_v11 = vsel %vm33_vm0, %v45_v9, 0.0 }
  0xa6   :  { %48 = vadd.xlane.f32.xlu1 %v47_v11 }
  0xa7   :  { %v46_v12 = vmul.f32 %v44_v10, %v44_v10  ;;  %v77_v36 = vmul.f32 %v75_v33, %v44_v10 }
  0xa9   :  { %v50_v13 = vsel %vm33_vm0, %v46_v12, 0.0 }
  0xaa   :  { %51 = vadd.xlane.f32.xlu1 %v50_v13 }
 0x133   :  { %v49_v17 = vpop.xlane.xlu1 %48 }
 0x134   :  { %v54_v18 = vmul.f32 0.032258064, %v49_v17 }
 0x136   :  { %193 = vrsqrt.f32 %v54_v18  ;;  %vm58_vm2 = vcmp.eq.f32.partialorder %v54_v18, inf  ;;  %v61_v23 = vand.u32 2147483648, %v54_v18  ;;  %vm60_vm3 = vcmp.eq.f32.partialorder %v54_v18, 0.0 }
 0x137   :  { %v52_v19 = vpop.xlane.xlu1 %51 }
 0x138   :  { %v55_v20 = vmul.f32 0.032258064, %v52_v19 }
 0x13a   :  { %195 = vrsqrt.f32 %v55_v20  ;;  %vm65_vm4 = vcmp.eq.f32.partialorder %v55_v20, inf  ;;  %v68_v29 = vand.u32 2147483648, %v55_v20  ;;  %vm67_vm5 = vcmp.eq.f32.partialorder %v55_v20, 0.0 }
 0x140   :  { %v194_v21 = vpop.eup %193 }
 0x141   :  { %v57_v22 = vmul.f32 %v194_v21, %v54_v18 }
 0x143   :  { %v59_v24 = vsel %vm58_vm2, %v54_v18, %v57_v22 }
 0x144   :  { %v196_v25 = vpop.eup %195  ;;  %v62_v26 = vsel %vm60_vm3, %v61_v23, %v59_v24 }
 0x145   :  { %v70_v27 = vadd.f32 1e-06, %v62_v26  ;;  %v64_v28 = vmul.f32 %v196_v25, %v55_v20 }
 0x147   :  { %197 = vrcp.f32 %v70_v27  ;;  %v66_v30 = vsel %vm65_vm4, %v55_v20, %v64_v28 }
 0x148   :  { %v69_v31 = vsel %vm67_vm5, %v68_v29, %v66_v30 }
 0x149   :  { %v71_v32 = vadd.f32 1e-06, %v69_v31 }
 0x14b   :  { %199 = vrcp.f32 %v71_v32 }
 0x151   :  { %v198_v34 = vpop.eup %197 }
 0x152   :  { %v78_v37 = vmul.f32 %v198_v34, %v76_v35 }
 0x154   :  { %v82_v41 = vadd.f32 %v81_v39, %v78_v37 }
 0x155   :  { %v200_v38 = vpop.eup %199 }
 0x156   :  { %v79_v40 = vmul.f32 %v200_v38, %v77_v36 }
 0x158   :  { %v83_v42 = vadd.f32 %v81_v39, %v79_v40 }
 0x15a   :  { %v84_v43 = vpack.c.bf16 %v83_v42, %v82_v41 }
 0x15c   :  { %185 = vmatmul.mubr.msk.bf16.vlgmr.msra.gmra.mrb[0].mxu0 %vm33_vm0, %v84_v43 }
 0x22f   :  { %v145_v45 = vpop.f32.mrb[0].mxu0 }
 0x230   :  { %v146_v46 = vadd.f32 %v169_v44, %v145_v45  ;;  %v186_v47 = vpop.f32.mrb[1].mxu0 }
 0x231   :  { %v148_v48 = vpop.f32.mrb[2].mxu0 }
 0x232   :  { %v175_v49 = vpack.c.bf16 %v146_v46, %v146_v46  ;;  %v149_v50 = vadd.f32 %v169_v44, %v148_v48  ;;  %v187_v51 = vpop.f32.mrb[3].mxu0 }
 0x234   :  { %161 = vst.msk [vmem:[%s276_s4] sm:$0xf] %vm160_vm6, %v175_v49  ;;  %v176_v52 = vpack.c.bf16 %v149_v50, %v149_v50 }
 0x236   :  { %162 = vst.msk [vmem:[%s276_s4 + $0x4] sm:$0xf] %vm160_vm6, %v176_v52 }
 0x237   :  { %167 = vsyncpa [#allocation3], 1 }

// kernel: decoder_block_pallas.11
= control target key start
LH: loop header
LB: loop body
LE: loop exit
PB: predicated region body
PF: predicated region fallthrough
CT: control target
= control target key end

     0   :  { %v124_v0 = vmov 0.0   ;;  %vm125_vm0 = vmmov 0   ;;  %vm48_vm1 = vcmask 261120   ;;  %s178_s1 = inlined_call_operand.vmem [shape: bf16[32,32], index: 1, kind: input, shape index: {}]   ;;  %s179_s0 = inlined_call_operand.vmem [shape: bf16[16,32], index: 0, kind: input, shape index: {}]   ;;  %s180_s2 = inlined_call_operand.vmem [shape: f32[1,32], index: 2, kind: input, shape index: {}]   ;;  %s181_s3 = inlined_call_operand.vmem [shape: f32[16,32], index: 3, kind: input, shape index: {}]   ;;  %s182_s4 = inlined_call_operand.vmem [shape: f32[16,32], index: 4, kind: output, shape index: {}]  }
   0x1   :  { %111 = vmatprep.subr.bf16.mxu0 %v124_v0  ;;  %v121_v1 = vld [vmem:[%s178_s1] sm:$0xff]   ;;  %115 = vmatprep.mubr.msk.bf16.mxu0 %vm125_vm0, %v124_v0  ;;  %v122_v2 = vld [vmem:[%s178_s1 + $0x8] sm:$0xff]  }
   0x2   :  { %112 = vmatpush3.bf16.msra.mxu0 %v121_v1  ;;  %v123_v3 = vld [vmem:[%s179_s0] sm:$0xff]   ;;  %v94_v10 = vld [vmem:[%s181_s3 + $0x8] sm:$0xff] }
   0x3   :  { %113 = vmatprep.subr.bf16.mxu0 %v124_v0  ;;  %v103_v4 = vld [vmem:[%s180_s2] ss:$0 sm:$0xff] }
   0x4   :  { %v93_v6 = vld [vmem:[%s181_s3] sm:$0xff] }
   0x6   :  { %114 = vmatpush3.bf16.msra.mxu0 %v122_v2 }
   0x9   :  { %116 = vmatmul.mubr.msk.bf16.vlgmr.msra.gmra.mrb[0].mxu0 %vm48_vm1, %v123_v3 }
  0xdc   :  { %v86_v5 = vpop.f32.mrb[0].mxu0 }
  0xdd   :  { %v87_v7 = vadd.f32 %v103_v4, %v86_v5  ;;  %v117_v8 = vpop.f32.mrb[1].mxu0 }
  0xde   :  { %v89_v9 = vpop.f32.mrb[2].mxu0 }
  0xdf   :  { %v95_v11 = vadd.f32 %v93_v6, %v87_v7  ;;  %v90_v12 = vadd.f32 %v103_v4, %v89_v9  ;;  %v118_v13 = vpop.f32.mrb[3].mxu0 }
  0xe1   :  { %97 = vst.msk [vmem:[%s182_s4] sm:$0xff] %vm48_vm1, %v95_v11  ;;  %v96_v14 = vadd.f32 %v94_v10, %v90_v12 }
  0xe3   :  { %98 = vst.msk [vmem:[%s182_s4 + $0x8] sm:$0xff] %vm48_vm1, %v96_v14 }

// kernel: decoder_block_pallas.12
= control target key start
LH: loop header
LB: loop body
LE: loop exit
PB: predicated region body
PF: predicated region fallthrough
CT: control target
= control target key end

     0   :  { %9 = vsyncpa [#allocation3], 0  ;;  %s272_s0 = inlined_call_operand.vmem [shape: f32[2], index: 0, kind: input, shape index: {}]   ;;  %s273_s1 = inlined_call_operand.vmem [shape: f32[16,32], index: 1, kind: input, shape index: {}]   ;;  %s274_s2 = inlined_call_operand.vmem [shape: bf16[32,32], index: 2, kind: input, shape index: {}]   ;;  %s275_s3 = inlined_call_operand.vmem [shape: f32[1,32], index: 3, kind: input, shape index: {}]   ;;  %s276_s4 = inlined_call_operand.vmem [shape: bf16[16,32], index: 4, kind: output, shape index: {}]  }
   0x1   :  { %s16_s17 = sshll.u32 %s272_s0, 4  ;;  %s17_s17 = int_to_ptr.vmem [resolvable:$true] %s16_s17 }
   0x2   :  { %s201_s18 = scalar_lea.vmem %s17_s17, 16  ;;  %p206_p1 = scmp.lt.s32.totalorder %s17_s17, %s17_s17 }
   0x3   :  { %p202_p0 = scmp.ne.s32.totalorder %s17_s17, %s201_s18  ;;  %p207_p2 = scmp.lt.s32.totalorder %s201_s18, %s201_s18 }
   0x5   :  { %p208_p3 = por %p207_p2, %p206_p1 }
   0x7   :  { %p209_p4 = pnand %p208_p3, %p202_p0 }
   0x9   :  { %212 = shalt.err (!%p209_p4)
}
   0xa   :  { %s215_s19 = smov [#allocation2]  }
   0xb   :  { %19 = dma.vmem_to_smem %s17_s17, 16, %s215_s19, [#allocation3]  }
   0xc   :  { %213 = dma.done.wait [#allocation3], 16  }
   0xd   :  { %214 = vsyncadd [#allocation3], 4294967280 }
   0xe   :  { %29 = sfence }
   0xf   :  { %v31_v0 = vld [vmem:[%s273_s1] sm:$0xff]  ;;  %vm33_vm0 = vcmask 261120   ;;  %v32_v1 = vld [vmem:[%s273_s1 + $0x8] sm:$0xff]  ;;  %v216_v15 = vmov 0.0   ;;  %vm217_vm1 = vmmov 0   ;;  %s168_s26 = sld [smem:[#allocation2 + $0x1]] }
  0x10   :  { %v34_v2 = vsel %vm33_vm0, %v31_v0, 0.0  ;;  %v37_v3 = vsel %vm33_vm0, %v32_v1, 0.0  ;;  %v191_v14 = vld [vmem:[%s274_s2] sm:$0xff]   ;;  %180 = vmatprep.subr.bf16.mxu0 %v216_v15  ;;  %184 = vmatprep.mubr.msk.bf16.mxu0 %vm217_vm1, %v216_v15  ;;  %v192_v16 = vld [vmem:[%s274_s2 + $0x8] sm:$0xff]   ;;  %s74_s2 = sld [smem:[#allocation2]]  ;;  %vm160_vm6 = vcmask 257024  }
  0x11   :  { %35 = vadd.xlane.f32.xlu0 %v34_v2  ;;  %181 = vmatpush3.bf16.msra.mxu0 %v191_v14  ;;  %v169_v44 = vld [vmem:[%s275_s3] ss:$0 sm:$0xff] }
  0x12   :  { %182 = vmatprep.subr.bf16.mxu0 %v216_v15 }
  0x15   :  { %38 = vadd.xlane.f32.xlu0 %v37_v3  ;;  %183 = vmatpush3.bf16.msra.mxu0 %v192_v16  ;;  %v81_v39 = vstv %s168_s26 }
  0x16   :  { %v75_v33 = vstv %s74_s2 }
  0x9e   :  { %v36_v4 = vpop.xlane.xlu0 %35 }
  0x9f   :  { %v41_v5 = vmul.f32 0.03125, %v36_v4 }
  0xa1   :  { %v43_v6 = vsub.f32 %v31_v0, %v41_v5 }
  0xa2   :  { %v39_v7 = vpop.xlane.xlu0 %38 }
  0xa3   :  { %v42_v8 = vmul.f32 0.03125, %v39_v7  ;;  %v45_v9 = vmul.f32 %v43_v6, %v43_v6  ;;  %v76_v35 = vmul.f32 %v75_v33, %v43_v6 }
  0xa5   :  { %v44_v10 = vsub.f32 %v32_v1, %v42_v8  ;;  %v47_v11 = vsel %vm33_vm0, %v45_v9, 0.0 }
  0xa6   :  { %48 = vadd.xlane.f32.xlu1 %v47_v11 }
  0xa7   :  { %v46_v12 = vmul.f32 %v44_v10, %v44_v10  ;;  %v77_v36 = vmul.f32 %v75_v33, %v44_v10 }
  0xa9   :  { %v50_v13 = vsel %vm33_vm0, %v46_v12, 0.0 }
  0xaa   :  { %51 = vadd.xlane.f32.xlu1 %v50_v13 }
 0x133   :  { %v49_v17 = vpop.xlane.xlu1 %48 }
 0x134   :  { %v54_v18 = vmul.f32 0.032258064, %v49_v17 }
 0x136   :  { %193 = vrsqrt.f32 %v54_v18  ;;  %vm58_vm2 = vcmp.eq.f32.partialorder %v54_v18, inf  ;;  %v61_v23 = vand.u32 2147483648, %v54_v18  ;;  %vm60_vm3 = vcmp.eq.f32.partialorder %v54_v18, 0.0 }
 0x137   :  { %v52_v19 = vpop.xlane.xlu1 %51 }
 0x138   :  { %v55_v20 = vmul.f32 0.032258064, %v52_v19 }
 0x13a   :  { %195 = vrsqrt.f32 %v55_v20  ;;  %vm65_vm4 = vcmp.eq.f32.partialorder %v55_v20, inf  ;;  %v68_v29 = vand.u32 2147483648, %v55_v20  ;;  %vm67_vm5 = vcmp.eq.f32.partialorder %v55_v20, 0.0 }
 0x140   :  { %v194_v21 = vpop.eup %193 }
 0x141   :  { %v57_v22 = vmul.f32 %v194_v21, %v54_v18 }
 0x143   :  { %v59_v24 = vsel %vm58_vm2, %v54_v18, %v57_v22 }
 0x144   :  { %v196_v25 = vpop.eup %195  ;;  %v62_v26 = vsel %vm60_vm3, %v61_v23, %v59_v24 }
 0x145   :  { %v70_v27 = vadd.f32 1e-06, %v62_v26  ;;  %v64_v28 = vmul.f32 %v196_v25, %v55_v20 }
 0x147   :  { %197 = vrcp.f32 %v70_v27  ;;  %v66_v30 = vsel %vm65_vm4, %v55_v20, %v64_v28 }
 0x148   :  { %v69_v31 = vsel %vm67_vm5, %v68_v29, %v66_v30 }
 0x149   :  { %v71_v32 = vadd.f32 1e-06, %v69_v31 }
 0x14b   :  { %199 = vrcp.f32 %v71_v32 }
 0x151   :  { %v198_v34 = vpop.eup %197 }
 0x152   :  { %v78_v37 = vmul.f32 %v198_v34, %v76_v35 }
 0x154   :  { %v82_v41 = vadd.f32 %v81_v39, %v78_v37 }
 0x155   :  { %v200_v38 = vpop.eup %199 }
 0x156   :  { %v79_v40 = vmul.f32 %v200_v38, %v77_v36 }
 0x158   :  { %v83_v42 = vadd.f32 %v81_v39, %v79_v40 }
 0x15a   :  { %v84_v43 = vpack.c.bf16 %v83_v42, %v82_v41 }
 0x15c   :  { %185 = vmatmul.mubr.msk.bf16.vlgmr.msra.gmra.mrb[0].mxu0 %vm33_vm0, %v84_v43 }
 0x22f   :  { %v145_v45 = vpop.f32.mrb[0].mxu0 }
 0x230   :  { %v146_v46 = vadd.f32 %v169_v44, %v145_v45  ;;  %v186_v47 = vpop.f32.mrb[1].mxu0 }
 0x231   :  { %v148_v48 = vpop.f32.mrb[2].mxu0 }
 0x232   :  { %v175_v49 = vpack.c.bf16 %v146_v46, %v146_v46  ;;  %v149_v50 = vadd.f32 %v169_v44, %v148_v48  ;;  %v187_v51 = vpop.f32.mrb[3].mxu0 }
 0x234   :  { %161 = vst.msk [vmem:[%s276_s4] sm:$0xf] %vm160_vm6, %v175_v49  ;;  %v176_v52 = vpack.c.bf16 %v149_v50, %v149_v50 }
 0x236   :  { %162 = vst.msk [vmem:[%s276_s4 + $0x4] sm:$0xf] %vm160_vm6, %v176_v52 }
 0x237   :  { %167 = vsyncpa [#allocation3], 1 }

// kernel: decoder_block_pallas.10
= control target key start
LH: loop header
LB: loop body
LE: loop exit
PB: predicated region body
PF: predicated region fallthrough
CT: control target
= control target key end

     0   :  { %s2036_s15 = smov 0   ;;  %s2038_s16 = smov 0   ;;  %s2514_s0 = inlined_call_operand.vmem [shape: bf16[2,8,3,4,8], index: 0, kind: input, shape index: {}, may-alias: {0,1,2}]   ;;  %s2515_s1 = inlined_call_operand.vmem [shape: bf16[2,8,3,4,8], index: 1, kind: input, shape index: {}, may-alias: {0,1,2}]   ;;  %s2516_s2 = inlined_call_operand.vmem [shape: bf16[2,8,3,4,8], index: 2, kind: input, shape index: {}, may-alias: {0,1,2}]   ;;  %s2517_s3 = inlined_call_operand.vmem [shape: f32[2,8,8], index: 3, kind: input, shape index: {}]   ;;  %s2518_s4 = inlined_call_operand.vmem [shape: bf16[2,8,4,8], index: 4, kind: output, shape index: {}]  }
   0x1   :  { %s2040_s17 = smov 0  }
   0x2 LB: > { %s1808_s18 = sadd.s32 4294967295, %s2006_s17   ;;  %s2053_s19 = sadd.s32 1, %s2006_s17   ;;  %s2006_s17 = sphi %s2040_s17, %s2522_s17   ;;  %s2002_s16 = sphi %s2038_s16, %s2521_s16   ;;  %s1998_s15 = sphi %s2036_s15, %s2520_s15  }
   0x3   : > { %s18_s20 = ssub.s32 %s2006_s17, %s2053_s19  ;;  %s21_s21 = sadd.s32 1, %s2002_s16 }
   0x4   : > { %p19_p0 = scmp.eq.s32.totalorder %s18_s20, 0  ;;  %p28_p1 = scmp.ne.s32.totalorder %s2002_s16, %s1998_s15 }
   0x5   : > { %p29_p2 = scmp.eq.s32.totalorder %s2006_s17, 0  ;;  %p1811_p4 = scmp.ge.s32.totalorder %s2006_s17, 2 }
   0x6   : > { %s2062_s22 = scalar_select %p19_p0, %s2002_s16, %s21_s21  }
   0x7   : > { %p2064_p3 = por %p29_p2, %p28_p1  ;;  %158 = sbr.rel (%p1811_p4) target bundleno = 44 (0x2c), region = 16 }
   0xe   : > { %161 = sbr.rel (!%p2064_p3) target bundleno = 24 (0x18), region = 20  ;;  %s163_s24 = sand.u32 (%p2064_p3), 1, %s2002_s16  }
   0xf   : > { %s1940_s25 = smul.u32 (%p2064_p3), 48, %s2006_s17  ;;  %s1812_s26 = sshll.u32 (%p2064_p3), %s163_s24, 4 }
  0x10   : > { %s165_s30 = scalar_lea.vmem (%p2064_p3), [#allocation2], %s1812_s26 }
  0x11   : > { %s168_s29 = scalar_lea.vmem (%p2064_p3), %s2514_s0, %s1940_s25 }
  0x12   : > { %v184_v0 = vld [vmem:[%s168_s29] sm:$0x3] (%p2064_p3)  ;;  %v186_v1 = vld [vmem:[%s168_s29 + $0x6] sm:$0x3] (%p2064_p3)  ;;  %v188_v2 = vld [vmem:[%s168_s29 + $0xc] sm:$0x3] (%p2064_p3) }
  0x13   : > { %185 = vst [vmem:[%s165_s30] sm:$0x3] (%p2064_p3), %v184_v0  ;;  %187 = vst [vmem:[%s165_s30 + $0x2] sm:$0x3] (%p2064_p3), %v186_v1  ;;  %v190_v3 = vld [vmem:[%s168_s29 + $0x12] sm:$0x3] (%p2064_p3) }
  0x14   : > { %189 = vst [vmem:[%s165_s30 + $0x4] sm:$0x3] (%p2064_p3), %v188_v2  ;;  %v192_v4 = vld [vmem:[%s168_s29 + $0x18] sm:$0x3] (%p2064_p3)  ;;  %v194_v5 = vld [vmem:[%s168_s29 + $0x1e] sm:$0x3] (%p2064_p3) }
  0x15   : > { %191 = vst [vmem:[%s165_s30 + $0x6] sm:$0x3] %v190_v3  ;;  %193 = vst [vmem:[%s165_s30 + $0x8] sm:$0x3] %v192_v4  ;;  %v196_v6 = vld [vmem:[%s168_s29 + $0x24] sm:$0x3] }
  0x16   : > { %195 = vst [vmem:[%s165_s30 + $0xa] sm:$0x3] %v194_v5  ;;  %v198_v7 = vld [vmem:[%s168_s29 + $0x2a] sm:$0x3]  ;;  %197 = vst [vmem:[%s165_s30 + $0xc] sm:$0x3] %v196_v6 }
  0x17   : > { %199 = vst [vmem:[%s165_s30 + $0xe] sm:$0x3] %v198_v7 }
  0x18 PF: > { %238 = sbr.rel (!%p2064_p3) target bundleno = 34 (0x22), region = 61  ;;  %s240_s5 = sand.u32 (%p2064_p3), 1, %s2002_s16  }
  0x19   : > { %s1815_s6 = smul.u32 (%p2064_p3), 48, %s2006_s17  ;;  %s1814_s7 = sshll.u32 (%p2064_p3), %s240_s5, 4 }
  0x1a   : > { %s242_s11 = scalar_lea.vmem (%p2064_p3), [#allocation3], %s1814_s7 }
  0x1b   : > { %s1724_s10 = scalar_lea.vmem (%p2064_p3), %s2515_s1, %s1815_s6 }
  0x1c   : > { %v1816_v8 = vld [vmem:[%s1724_s10 + $0x2] sm:$0x3] (%p2064_p3)  ;;  %v1817_v9 = vld [vmem:[%s1724_s10 + $0x8] sm:$0x3] (%p2064_p3)  ;;  %v1818_v10 = vld [vmem:[%s1724_s10 + $0xe] sm:$0x3] (%p2064_p3) }
  0x1d   : > { %263 = vst [vmem:[%s242_s11] sm:$0x3] (%p2064_p3), %v1816_v8  ;;  %265 = vst [vmem:[%s242_s11 + $0x2] sm:$0x3] (%p2064_p3), %v1817_v9  ;;  %v1819_v11 = vld [vmem:[%s1724_s10 + $0x14] sm:$0x3] (%p2064_p3) }
  0x1e   : > { %267 = vst [vmem:[%s242_s11 + $0x4] sm:$0x3] (%p2064_p3), %v1818_v10  ;;  %v1820_v12 = vld [vmem:[%s1724_s10 + $0x1a] sm:$0x3] (%p2064_p3)  ;;  %v1821_v13 = vld [vmem:[%s1724_s10 + $0x20] sm:$0x3] (%p2064_p3) }
  0x1f   : > { %269 = vst [vmem:[%s242_s11 + $0x6] sm:$0x3] %v1819_v11  ;;  %271 = vst [vmem:[%s242_s11 + $0x8] sm:$0x3] %v1820_v12  ;;  %v1822_v14 = vld [vmem:[%s1724_s10 + $0x26] sm:$0x3] }
  0x20   : > { %273 = vst [vmem:[%s242_s11 + $0xa] sm:$0x3] %v1821_v13  ;;  %v1823_v15 = vld [vmem:[%s1724_s10 + $0x2c] sm:$0x3]  ;;  %275 = vst [vmem:[%s242_s11 + $0xc] sm:$0x3] %v1822_v14 }
  0x21   : > { %277 = vst [vmem:[%s242_s11 + $0xe] sm:$0x3] %v1823_v15 }
  0x22 PF: > { %316 = sbr.rel (!%p2064_p3) target bundleno = 44 (0x2c), region = 102  ;;  %s318_s12 = sand.u32 (%p2064_p3), 1, %s2002_s16  }
  0x23   : > { %s1825_s13 = smul.u32 (%p2064_p3), 48, %s2006_s17  ;;  %s1824_s14 = sshll.u32 (%p2064_p3), %s318_s12, 4 }
  0x24   : > { %s320_s25 = scalar_lea.vmem (%p2064_p3), [#allocation4], %s1824_s14 }
  0x25   : > { %s1730_s24 = scalar_lea.vmem (%p2064_p3), %s2516_s2, %s1825_s13 }
  0x26   : > { %v1826_v16 = vld [vmem:[%s1730_s24 + $0x4] sm:$0x3] (%p2064_p3)  ;;  %v1827_v17 = vld [vmem:[%s1730_s24 + $0xa] sm:$0x3] (%p2064_p3)  ;;  %v1828_v18 = vld [vmem:[%s1730_s24 + $0x10] sm:$0x3] (%p2064_p3) }
  0x27   : > { %341 = vst [vmem:[%s320_s25] sm:$0x3] (%p2064_p3), %v1826_v16  ;;  %343 = vst [vmem:[%s320_s25 + $0x2] sm:$0x3] (%p2064_p3), %v1827_v17  ;;  %v1829_v19 = vld [vmem:[%s1730_s24 + $0x16] sm:$0x3] (%p2064_p3) }
  0x28   : > { %345 = vst [vmem:[%s320_s25 + $0x4] sm:$0x3] (%p2064_p3), %v1828_v18  ;;  %v1830_v20 = vld [vmem:[%s1730_s24 + $0x1c] sm:$0x3] (%p2064_p3)  ;;  %v1831_v21 = vld [vmem:[%s1730_s24 + $0x22] sm:$0x3] (%p2064_p3) }
  0x29   : > { %347 = vst [vmem:[%s320_s25 + $0x6] sm:$0x3] %v1829_v19  ;;  %349 = vst [vmem:[%s320_s25 + $0x8] sm:$0x3] %v1830_v20  ;;  %v1832_v22 = vld [vmem:[%s1730_s24 + $0x28] sm:$0x3] }
  0x2a   : > { %351 = vst [vmem:[%s320_s25 + $0xa] sm:$0x3] %v1831_v21  ;;  %v1833_v23 = vld [vmem:[%s1730_s24 + $0x2e] sm:$0x3]  ;;  %353 = vst [vmem:[%s320_s25 + $0xc] sm:$0x3] %v1832_v22 }
  0x2b   : > { %355 = vst [vmem:[%s320_s25 + $0xe] sm:$0x3] %v1833_v23 }
  0x2c PF: > { %p1834_p5 = scmp.ge.s32.totalorder %s2006_s17, 1  ;;  %p400_p6 = scmp.lt.s32.totalorder %s2006_s17, 3 }
  0x2e   : > { %p401_p7 = pnand %p1834_p5, %p400_p6 }
  0x2f   : > { %s407_s23 = sand.u32 (!%p401_p7), 1, %s1998_s15   ;;  %v2008_v24 = vmov (!%p401_p7), 0.0   ;;  %vm2009_vm0 = vmmov (!%p401_p7), 0   ;;  %vm566_vm1 = vcmask (!%p401_p7), 1041409   ;;  %vm569_vm2 = vcmask (!%p401_p7), 1042434   ;;  %p458_p8 = scmp.lt.s32.totalorder (!%p401_p7), %s1808_s18, 1 }
  0x30   : > { %404 = sbr.rel (%p401_p7) target bundleno = 1390 (0x56e), region = 147  ;;  %1892 = vmatprep.subr.bf16.mxu0 (!%p401_p7), %v2008_v24  ;;  %s2094_s26 = sshll.u32 (!%p401_p7), %s407_s23, 4  ;;  %1898 = vmatprep.subr.bf16.mxu1 (!%p401_p7), %v2008_v24  ;;  %vm572_vm3 = vcmask (!%p401_p7), 1043459   ;;  %vm575_vm4 = vcmask (!%p401_p7), 1044484   ;;  %vm578_vm5 = vcmask (!%p401_p7), 1045509   ;;  %vm581_vm6 = vcmask (!%p401_p7), 1046534  }
  0x31   : > { %s416_s27 = scalar_lea.vmem (!%p401_p7), [#allocation3], %s2094_s26  ;;  %1894 = vmatprep.mubr.msk.bf16.mxu0 (!%p401_p7), %vm2009_vm0, %v2008_v24  ;;  %1900 = vmatprep.mubr.msk.bf16.mxu1 (!%p401_p7), %vm2009_vm0, %v2008_v24  ;;  %s409_s15 = scalar_lea.vmem (!%p401_p7), [#allocation2], %s2094_s26  ;;  %vm584_vm7 = vcmask (!%p401_p7), 1047559   ;;  %vm674_vm8 = vcmask (!%p401_p7), 64512   ;;  %vm826_vm10 = vcmask (!%p401_p7), 1043456   ;;  %vm1651_vm11 = vcmask (!%p401_p7), 1040384  }
  0x32   : > { %v1849_v25 = vld.sshfl [vmem:[%s416_s27] sm:$0x3 pattern:$0x76325410] (!%p401_p7)  ;;  %s423_s17 = scalar_lea.vmem (!%p401_p7), [#allocation4], %s2094_s26  ;;  %vm1660_vm12 = vcmask (!%p401_p7), 1041408  }
  0x33   : > { %v1850_v26 = vld.sshfl [vmem:[%s416_s27 + $0x2] sm:$0x3 pattern:$0x76325410] (!%p401_p7)  ;;  %v2102_v28 = vunpack.c.l.b16 (!%p401_p7), %v1849_v25  ;;  %vm1669_vm13 = vcmask (!%p401_p7), 1042432   ;;  %vm1686_vm14 = vcmask (!%p401_p7), 58368  }
  0x34   : > { %v1851_v27 = vld.sshfl [vmem:[%s416_s27 + $0x4] sm:$0x3 pattern:$0x76325410] (!%p401_p7)  ;;  %v2104_v29 = vunpack.c.l.b16 (!%p401_p7), %v1850_v26 }
  0x35   : > { %v1852_v30 = vld.sshfl [vmem:[%s416_s27 + $0x6] sm:$0x3 pattern:$0x76325410] (!%p401_p7)  ;;  %v2106_v31 = vunpack.c.l.b16 (!%p401_p7), %v1851_v27 }
  0x36   : > { %v1853_v32 = vld.sshfl [vmem:[%s416_s27 + $0x8] sm:$0x3 pattern:$0x76325410] (!%p401_p7)  ;;  %v2108_v33 = vunpack.c.l.b16 (!%p401_p7), %v1852_v30  ;;  %v659_v34 = vrot.slane (!%p401_p7), %v2104_v29, 7 }
  0x37   : > { %v1854_v35 = vld.sshfl [vmem:[%s416_s27 + $0xa] sm:$0x3 pattern:$0x76325410]  ;;  %v2111_v36 = vunpack.c.l.b16 %v1853_v32  ;;  %v661_v37 = vrot.slane %v2106_v31, 6  ;;  %s2524_s18 = smov (!%p458_p8, %s1808_s18), 1 }
  0x38   : > { %v1855_v38 = vld.sshfl [vmem:[%s416_s27 + $0xc] sm:$0x3 pattern:$0x76325410]  ;;  %v2114_v39 = vunpack.c.l.b16 %v1854_v35  ;;  %v660_v40 = vsel %vm566_vm1, %v659_v34, %v2102_v28  ;;  %v663_v41 = vrot.slane %v2108_v33, 5  ;;  %s1838_s28 = sshll.u32 %s2524_s18, 3 }
  0x39   : > { %v1856_v42 = vld.sshfl [vmem:[%s416_s27 + $0xe] sm:$0x3 pattern:$0x76325410]  ;;  %v2119_v43 = vunpack.c.l.b16 %v1855_v38  ;;  %v662_v44 = vsel %vm569_vm2, %v661_v37, %v660_v40  ;;  %v665_v45 = vrot.slane %v2111_v36, 4  ;;  %s461_s5 = scalar_lea.vmem %s2517_s3, %s1838_s28  ;;  %s1875_s6 = sshll.u32 %s2524_s18, 4 }
  0x3a   : > { %v2123_v46 = vunpack.c.l.b16 %v1856_v42  ;;  %v664_v47 = vsel %vm572_vm3, %v663_v41, %v662_v44  ;;  %v667_v48 = vrot.slane %v2114_v39, 3  ;;  %v1841_v49 = vld.sshfl [vmem:[%s409_s15] sm:$0x3 pattern:$0x76325410]  ;;  %s466_s18 = scalar_lea.vmem %s2518_s4, %s1875_s6 }
  0x3b   : > { %v666_v50 = vsel %vm575_vm4, %v665_v45, %v664_v47  ;;  %v669_v51 = vrot.slane %v2119_v43, 2  ;;  %v1842_v52 = vld.sshfl [vmem:[%s409_s15 + $0x2] sm:$0x3 pattern:$0x76325410]  ;;  %v2132_v56 = vunpack.c.l.b16 %v1841_v49 }
  0x3c   : > { %v668_v53 = vsel %vm578_vm5, %v667_v48, %v666_v50  ;;  %v671_v54 = vrot.slane %v2123_v46, 1  ;;  %v1843_v55 = vld.sshfl [vmem:[%s409_s15 + $0x4] sm:$0x3 pattern:$0x76325410]  ;;  %v2134_v57 = vunpack.c.l.b16 %v1842_v52 }
  0x3d   : > { %v670_v58 = vsel %vm581_vm6, %v669_v51, %v668_v53  ;;  %v1844_v59 = vld.sshfl [vmem:[%s409_s15 + $0x6] sm:$0x3 pattern:$0x76325410]  ;;  %v2137_v60 = vunpack.c.l.b16 %v1843_v55 }
  0x3e   : > { %v672_v61 = vsel %vm584_vm7, %v671_v54, %v670_v58  ;;  %v1845_v62 = vld.sshfl [vmem:[%s409_s15 + $0x8] sm:$0x3 pattern:$0x76325410]  ;;  %v2140_v63 = vunpack.c.l.b16 %v1844_v59  ;;  %v565_v0 = vrot.slane %v2134_v57, 7  ;;  %v2180_v25 = vld [vmem:[%s461_s5] sm:$0xff] }
  0x3f   : > { %v673_v1 = vpack.c.b16 %v672_v61, %v672_v61  ;;  %v1846_v2 = vld.sshfl [vmem:[%s409_s15 + $0xa] sm:$0x3 pattern:$0x76325410]  ;;  %v2143_v3 = vunpack.c.l.b16 %v1845_v62  ;;  %v568_v4 = vrot.slane %v2137_v60, 6  ;;  %vm722_vm9 = vcmp.eq.f32.partialorder %v2180_v25, 0.0 }
  0x40   : > { %v1847_v5 = vld.sshfl [vmem:[%s409_s15 + $0xc] sm:$0x3 pattern:$0x76325410]  ;;  %v2146_v6 = vunpack.c.l.b16 %v1846_v2  ;;  %v567_v7 = vsel %vm566_vm1, %v565_v0, %v2132_v56  ;;  %v571_v8 = vrot.slane %v2140_v63, 5 }
  0x41   : > { %v679_v9 = vsel %vm674_vm8, %v673_v1, 0  ;;  %v1848_v10 = vld.sshfl [vmem:[%s409_s15 + $0xe] sm:$0x3 pattern:$0x76325410]  ;;  %v2152_v11 = vunpack.c.l.b16 %v1847_v5  ;;  %v570_v12 = vsel %vm569_vm2, %v568_v4, %v567_v7  ;;  %v574_v13 = vrot.slane %v2143_v3, 4 }
  0x42   : > { %1893 = vmatpush3.bf16.xpose.msra.mxu0 %v679_v9  ;;  %v2156_v14 = vunpack.c.l.b16 %v1848_v10  ;;  %v573_v15 = vsel %vm572_vm3, %v571_v8, %v570_v12  ;;  %v577_v16 = vrot.slane %v2146_v6, 3  ;;  %v1859_v45 = vld.sshfl [vmem:[%s423_s17 + $0x2] sm:$0x3 pattern:$0x76325410] }
  0x43   : > { %v576_v17 = vsel %vm575_vm4, %v574_v13, %v573_v15  ;;  %v580_v18 = vrot.slane %v2152_v11, 2  ;;  %1910 = vmatprep.subr.bf16.mxu0 %v2008_v24  ;;  %v1860_v47 = vld.sshfl [vmem:[%s423_s17 + $0x4] sm:$0x3 pattern:$0x76325410]  ;;  %v2191_v48 = vunpack.c.l.b16 %v1859_v45 }
  0x44   : > { %v579_v19 = vsel %vm578_vm5, %v577_v16, %v576_v17  ;;  %v583_v20 = vrot.slane %v2156_v14, 1  ;;  %v1858_v49 = vld.sshfl [vmem:[%s423_s17] sm:$0x3 pattern:$0x76325410]  ;;  %v2193_v50 = vunpack.c.l.b16 %v1860_v47  ;;  %v895_v47 = vrot.slane %v2119_v43, 3 }
  0x45   : > { %v582_v21 = vsel %vm581_vm6, %v580_v18, %v579_v19  ;;  %v1861_v51 = vld.sshfl [vmem:[%s423_s17 + $0x6] sm:$0x3 pattern:$0x76325410]  ;;  %v2195_v52 = vunpack.c.l.b16 %v1858_v49  ;;  %v808_v53 = vrot.slane %v2191_v48, 7 }
  0x46   : > { %v585_v22 = vsel %vm584_vm7, %v583_v20, %v582_v21  ;;  %v1862_v54 = vld.sshfl [vmem:[%s423_s17 + $0x8] sm:$0x3 pattern:$0x76325410]  ;;  %v2198_v55 = vunpack.c.l.b16 %v1861_v51  ;;  %v810_v58 = vrot.slane %v2193_v50, 6 }
  0x47   : > { %v586_v23 = vpack.c.b16 %v585_v22, %v585_v22  ;;  %v1863_v59 = vld.sshfl [vmem:[%s423_s17 + $0xa] sm:$0x3 pattern:$0x76325410]  ;;  %v2201_v61 = vunpack.c.l.b16 %v1862_v54  ;;  %v809_v62 = vsel %vm566_vm1, %v808_v53, %v2195_v52  ;;  %v885_v22 = vrot.slane %v2102_v28, 1 }
  0x48   : > { %v1864_v0 = vld.sshfl [vmem:[%s423_s17 + $0xc] sm:$0x3 pattern:$0x76325410]  ;;  %v2205_v1 = vunpack.c.l.b16 %v1863_v59  ;;  %v811_v2 = vsel %vm569_vm2, %v810_v58, %v809_v62  ;;  %v812_v4 = vrot.slane %v2198_v55, 5  ;;  %v1040_v53 = vrot.slane %v2108_v33, 7 }
  0x49   : > { %1895 = vmatmul.mubr.msk.bf16.vlgmr.msra.gmra.mrb[0].mxu0 %vm674_vm8, %v586_v23  ;;  %v1865_v5 = vld.sshfl [vmem:[%s423_s17 + $0xe] sm:$0x3 pattern:$0x76325410]  ;;  %v2209_v7 = vunpack.c.l.b16 %v1864_v0  ;;  %v814_v8 = vrot.slane %v2201_v61, 4  ;;  %v887_v23 = vrot.slane %v2106_v31, 7 }
  0x4a   : > { %1912 = vmatprep.mubr.msk.bf16.mxu0 %vm2009_vm0, %v2008_v24  ;;  %v2212_v9 = vunpack.c.l.b16 %v1865_v5  ;;  %v813_v10 = vsel %vm572_vm3, %v812_v4, %v811_v2  ;;  %v816_v12 = vrot.slane %v2205_v1, 3  ;;  %v874_v58 = vrot.slane %v2140_v63, 6 }
  0x4b   : > { %v815_v13 = vsel %vm575_vm4, %v814_v8, %v813_v10  ;;  %v818_v15 = vrot.slane %v2209_v7, 2  ;;  %v1187_v0 = vrot.slane %v2102_v28, 3  ;;  %v1188_v2 = vrot.slane %v2104_v29, 2 }
  0x4c   : > { %v817_v16 = vsel %vm578_vm5, %v816_v12, %v815_v13  ;;  %v820_v17 = vrot.slane %v2212_v9, 1  ;;  %v897_v5 = vrot.slane %v2123_v46, 2  ;;  %v1042_v8 = vrot.slane %v2111_v36, 6 }
  0x4d   : > { %v819_v18 = vsel %vm581_vm6, %v818_v15, %v817_v16  ;;  %v876_v10 = vrot.slane %v2143_v3, 5  ;;  %v1021_v13 = vrot.slane %v2132_v56, 2  ;;  %v1022_v15 = vrot.slane %v2134_v57, 1 }
  0x4e   : > { %v821_v19 = vsel %vm584_vm7, %v820_v17, %v819_v18  ;;  %v1189_v17 = vsel %vm566_vm1, %v1188_v2, %v1187_v0 }
  0x4f   : > { %v822_v20 = vpack.c.b16 %v821_v19, %v821_v19  ;;  %v878_v19 = vrot.slane %v2146_v6, 4 }
  0x51   : > { %v828_v21 = vsel %vm826_vm10, %v822_v20, 0 }
  0x52   : > { %1899 = vmatpush3.bf16.msra.mxu1 %v828_v21 }
  0x53   : > { %1904 = vmatprep.subr.bf16.mxu1 %v2008_v24 }
 0x11c   : > { %v715_v26 = vpop.f32.mrb[0].mxu0 }
 0x11d   : > { %v721_v27 = vmul.f32 0.35355338, %v715_v26  ;;  %v1896_v30 = vpop.f32.mrb[1].mxu0  ;;  %v886_v26 = vsel %vm566_vm1, %v2104_v29, %v885_v22  ;;  %v1023_v22 = vsel %vm566_vm1, %v1022_v15, %v1021_v13  ;;  %v1199_v13 = vrot.slane %v2123_v46, 4 }
 0x11e   : > { %v718_v32 = vpop.f32.mrb[2].mxu0  ;;  %v888_v30 = vsel %vm569_vm2, %v887_v23, %v886_v26  ;;  %v1046_v23 = vrot.slane %v2119_v43, 4 }
 0x11f   : > { %v1897_v34 = vpop.f32.mrb[3].mxu0  ;;  %v723_v35 = vsel %vm722_vm9, -1e+09, %v721_v27  ;;  %v889_v27 = vrot.slane %v2108_v33, 6  ;;  %v891_v32 = vrot.slane %v2111_v36, 5 }
 0x120   : > { %v724_v37 = vsel %vm674_vm8, %v723_v35, -inf }
 0x121   : > { %725 = vmax.xlane.f32.xlu0 %v724_v37  ;;  %v890_v34 = vsel %vm572_vm3, %v889_v27, %v888_v30  ;;  %v1037_v37 = vrot.slane %v2104_v29, 1  ;;  %v1044_v29 = vrot.slane %v2114_v39, 5  ;;  %v1025_v30 = vrot.slane %v2140_v63, 7 }
 0x1ae   : > { %v726_v38 = vpop.xlane.xlu0 %725 }
 0x1af   : > { %v727_v40 = vsub.f32 %v723_v35, %v726_v38  ;;  %v1036_v35 = vrot.slane %v2102_v28, 2  ;;  %v870_v38 = vrot.slane %v2132_v56, 1  ;;  %v1190_v28 = vrot.slane %v2106_v31, 1 }
 0x1b1   : > { %v728_v41 = vmul.f32 1.442695, %v727_v40  ;;  %v893_v40 = vrot.slane %v2114_v39, 4  ;;  %v1038_v45 = vsel %vm566_vm1, %v1037_v37, %v1036_v35  ;;  %v871_v49 = vsel %vm566_vm1, %v2134_v57, %v870_v38 }
 0x1b2   : > { %v1039_v59 = vsel %vm569_vm2, %v2106_v31, %v1038_v45  ;;  %v1191_v26 = vsel %vm569_vm2, %v1190_v28, %v1189_v17  ;;  %v1024_v35 = vsel %vm569_vm2, %v2137_v60, %v1023_v22  ;;  %v1193_v37 = vrot.slane %v2111_v36, 7 }
 0x1b3   : > { %1968 = vpow2.f32 %v728_v41  ;;  %v892_v41 = vsel %vm575_vm4, %v891_v32, %v890_v34  ;;  %v1041_v12 = vsel %vm572_vm3, %v1040_v53, %v1039_v59  ;;  %v880_v34 = vrot.slane %v2152_v11, 3 }
 0x1b4   : > { %v894_v51 = vsel %vm578_vm5, %v893_v40, %v892_v41  ;;  %v1043_v20 = vsel %vm575_vm4, %v1042_v8, %v1041_v12  ;;  %v1048_v40 = vrot.slane %v2123_v46, 3  ;;  %v1192_v41 = vsel %vm572_vm3, %v2108_v33, %v1191_v26 }
 0x1b5   : > { %v896_v4 = vsel %vm581_vm6, %v895_v47, %v894_v51  ;;  %v1045_v31 = vsel %vm578_vm5, %v1044_v29, %v1043_v20  ;;  %v1173_v45 = vrot.slane %v2134_v57, 2  ;;  %v1027_v51 = vrot.slane %v2143_v3, 6 }
 0x1b6   : > { %v898_v18 = vsel %vm584_vm7, %v897_v5, %v896_v4  ;;  %v882_v36 = vrot.slane %v2156_v14, 2  ;;  %v1175_v57 = vrot.slane %v2137_v60, 1  ;;  %v1197_v4 = vrot.slane %v2119_v43, 5 }
 0x1b7   : > { %v899_v27 = vpack.c.b16 %v898_v18, %v898_v18  ;;  %v1031_v8 = vrot.slane %v2152_v11, 4  ;;  %v1033_v28 = vrot.slane %v2156_v14, 3  ;;  %v1180_v20 = vrot.slane %v2146_v6, 6 }
 0x1b9   : > { %v904_v53 = vsel %vm674_vm8, %v899_v27, 0 }
 0x1bd   : > { %v2186_v42 = vpop.eup %1968 }
 0x1be   : > { %v730_v44 = vsel %vm674_vm8, %v2186_v42, 0.0 }
 0x1bf   : > { %731 = vadd.xlane.f32.xlu0 %v730_v44  ;;  %v872_v44 = vrot.slane %v2137_v60, 7 }
 0x1c1   : > { %v873_v62 = vsel %vm569_vm2, %v872_v44, %v871_v49  ;;  %v1172_v44 = vrot.slane %v2132_v56, 3  ;;  %v1047_v49 = vsel %vm581_vm6, %v1046_v23, %v1045_v31  ;;  %v1194_v56 = vsel %vm575_vm4, %v1193_v37, %v1192_v41 }
 0x1c2   : > { %v875_v16 = vsel %vm572_vm3, %v874_v58, %v873_v62  ;;  %v1195_v58 = vrot.slane %v2114_v39, 6  ;;  %v1029_v62 = vrot.slane %v2146_v6, 5  ;;  %v1184_v6 = vrot.slane %v2156_v14, 4 }
 0x1c3   : > { %v877_v21 = vsel %vm575_vm4, %v876_v10, %v875_v16  ;;  %v1174_v0 = vsel %vm566_vm1, %v1173_v45, %v1172_v44  ;;  %v1178_v16 = vrot.slane %v2143_v3, 7 }
 0x1c4   : > { %v879_v32 = vsel %vm578_vm5, %v878_v19, %v877_v21  ;;  %v1196_v60 = vsel %vm578_vm5, %v1195_v58, %v1194_v56  ;;  %v1176_v10 = vsel %vm569_vm2, %v1175_v57, %v1174_v0  ;;  %v1182_v21 = vrot.slane %v2152_v11, 5 }
 0x1c5   : > { %v881_v33 = vsel %vm581_vm6, %v880_v34, %v879_v32  ;;  %v1198_v15 = vsel %vm581_vm6, %v1197_v4, %v1196_v60  ;;  %v1177_v29 = vsel %vm572_vm3, %v2140_v63, %v1176_v10 }
 0x1c6   : > { %v883_v39 = vsel %vm584_vm7, %v882_v36, %v881_v33  ;;  %v1200_v19 = vsel %vm584_vm7, %v1199_v13, %v1198_v15  ;;  %v1179_v46 = vsel %vm575_vm4, %v1178_v16, %v1177_v29  ;;  %v960_v29 = vrot.slane %v2195_v52, 1 }
 0x1c7   : > { %v884_v43 = vpack.c.b16 %v883_v39, %v883_v39  ;;  %v1201_v63 = vpack.c.b16 %v1200_v19, %v1200_v19  ;;  %v1181_v22 = vsel %vm578_vm5, %v1180_v20, %v1179_v46  ;;  %v964_v20 = vrot.slane %v2198_v55, 6 }
 0x1c8   : > { %v1183_v27 = vsel %vm581_vm6, %v1182_v21, %v1181_v22  ;;  %v961_v19 = vsel %vm566_vm1, %v2191_v48, %v960_v29  ;;  %v968_v21 = vrot.slane %v2205_v1, 4 }
 0x1c9   : > { %v1206_v26 = vsel %vm674_vm8, %v1201_v63, 0  ;;  %v1185_v31 = vsel %vm584_vm7, %v1184_v6, %v1183_v27 }
 0x24c   : > { %v732_v54 = vpop.xlane.xlu0 %731 }
 0x24d   : > { %1970 = vrcp.f32 %v732_v54  ;;  %v1026_v54 = vsel %vm572_vm3, %v1025_v30, %v1024_v35  ;;  %v1186_v30 = vpack.c.b16 %v1185_v31, %v1185_v31 }
 0x24e   : > { %v1028_v2 = vsel %vm575_vm4, %v1027_v51, %v1026_v54 }
 0x24f   : > { %v1030_v12 = vsel %vm578_vm5, %v1029_v62, %v1028_v2 }
 0x250   : > { %v1032_v18 = vsel %vm581_vm6, %v1031_v8, %v1030_v12 }
 0x251   : > { %v1034_v3 = vsel %vm584_vm7, %v1033_v28, %v1032_v18  ;;  %v962_v18 = vrot.slane %v2193_v50, 7 }
 0x252   : > { %v1035_v23 = vpack.c.b16 %v1034_v3, %v1034_v3  ;;  %v966_v3 = vrot.slane %v2201_v61, 5 }
 0x253   : > { %v963_v46 = vsel %vm569_vm2, %v962_v18, %v961_v19  ;;  %v1328_v19 = vlaneseq }
 0x254   : > { %v965_v63 = vsel %vm572_vm3, %v964_v20, %v963_v46 }
 0x255   : > { %v967_v22 = vsel %vm575_vm4, %v966_v3, %v965_v63 }
 0x256   : > { %v969_v6 = vsel %vm578_vm5, %v968_v21, %v967_v22 }
 0x257   : > { %v1971_v38 = vpop.eup %1970 }
 0x258   : > { %v734_v47 = vmul.f32 %v1971_v38, %v2186_v42  ;;  %v1049_v42 = vsel %vm584_vm7, %v1048_v40, %v1047_v49 }
 0x259   : > { %v1050_v5 = vpack.c.b16 %v1049_v42, %v1049_v42 }
 0x25a   : > { %v735_v59 = vpack.c.bf16 %v734_v47, %v734_v47 }
 0x25b   : > { %v1055_v17 = vsel %vm674_vm8, %v1050_v5, 0 }
 0x25c   : > { %1901 = vmatmul.mubr.msk.bf16.vlgmr.msra.gmra.mrb[0].mxu1 %vm674_vm8, %v735_v59 }
 0x25d   : > { %1905 = vmatpush3.bf16.xpose.msra.mxu1 %v904_v53  ;;  %1906 = vmatprep.mubr.msk.bf16.mxu1 %vm2009_vm0, %v2008_v24 }
 0x25e   : > { %1916 = vmatprep.subr.bf16.mxu1 %v2008_v24 }
 0x264   : > { %1907 = vmatmul.mubr.msk.bf16.vlgmr.msra.gmra.mrb[4].mxu1 %vm674_vm8, %v884_v43 }
 0x265   : > { %1917 = vmatpush3.bf16.xpose.msra.mxu1 %v1055_v17  ;;  %1918 = vmatprep.mubr.msk.bf16.mxu1 %vm2009_vm0, %v2008_v24 }
 0x266   : > { %1928 = vmatprep.subr.bf16.mxu1 %v2008_v24 }
 0x26c   : > { %1919 = vmatmul.mubr.msk.bf16.vlgmr.msra.gmra.mrb[8].mxu1 %vm674_vm8, %v1035_v23  ;;  %v970_v23 = vrot.slane %v2209_v7, 3 }
 0x26d   : > { %1929 = vmatpush3.bf16.xpose.msra.mxu1 %v1206_v26  ;;  %1930 = vmatprep.mubr.msk.bf16.mxu1 %vm2009_vm0, %v2008_v24  ;;  %v972_v26 = vrot.slane %v2212_v9, 2 }
 0x26e   : > { %v971_v27 = vsel %vm581_vm6, %v970_v23, %v969_v6 }
 0x26f   : > { %v973_v31 = vsel %vm584_vm7, %v972_v26, %v971_v27 }
 0x274   : > { %1931 = vmatmul.mubr.msk.bf16.vlgmr.msra.gmra.mrb[12].mxu1 %vm674_vm8, %v1186_v30  ;;  %v974_v30 = vpack.c.b16 %v973_v31, %v973_v31 }
 0x32f   : > { %v2330_v11 = vpop.f32.mrb[0].mxu1 }
 0x330   : > { %v1902_v32 = vpop.f32.mrb[1].mxu1  ;;  %v1324_v3 = vcombine.high %v2330_v11, %v2330_v11 }
 0x331   : > { %v867_v34 = vpop.f32.mrb[2].mxu1  ;;  %v979_v32 = vsel %vm826_vm10, %v974_v30, 0 }
 0x332   : > { %v1903_v14 = vpop.f32.mrb[3].mxu1  ;;  %1911 = vmatpush3.bf16.msra.mxu0 %v979_v32  ;;  %v1111_v34 = vrot.slane %v2195_v52, 2 }
 0x333   : > { %1922 = vmatprep.subr.bf16.mxu0 %v2008_v24  ;;  %v1112_v14 = vrot.slane %v2191_v48, 1 }
 0x337   : > { %v940_v35 = vpop.f32.mrb[4].mxu1 }
 0x338   : > { %v946_v37 = vmul.f32 0.35355338, %v940_v35  ;;  %v1908_v38 = vpop.f32.mrb[5].mxu1  ;;  %v1113_v35 = vsel %vm566_vm1, %v1112_v14, %v1111_v34 }
 0x339   : > { %v943_v40 = vpop.f32.mrb[6].mxu1  ;;  %v1114_v38 = vsel %vm569_vm2, %v2193_v50, %v1113_v35 }
 0x33a   : > { %v1909_v41 = vpop.f32.mrb[7].mxu1  ;;  %v947_v44 = vsel %vm722_vm9, -1e+09, %v946_v37  ;;  %v1115_v37 = vrot.slane %v2198_v55, 7  ;;  %v1262_v40 = vrot.slane %v2195_v52, 3  ;;  %v1268_v52 = vrot.slane %v2201_v61, 7 }
 0x33b   : > { %v948_v45 = vsel %vm674_vm8, %v947_v44, -inf  ;;  %v1263_v41 = vrot.slane %v2191_v48, 2 }
 0x33c   : > { %949 = vmax.xlane.f32.xlu1 %v948_v45  ;;  %v1116_v45 = vsel %vm572_vm3, %v1115_v37, %v1114_v38 }
 0x33f   : > { %v1091_v47 = vpop.f32.mrb[8].mxu1 }
 0x340   : > { %v1097_v49 = vmul.f32 0.35355338, %v1091_v47  ;;  %v1920_v51 = vpop.f32.mrb[9].mxu1  ;;  %v1265_v47 = vrot.slane %v2193_v50, 1 }
 0x341   : > { %v1094_v53 = vpop.f32.mrb[10].mxu1  ;;  %v1264_v51 = vsel %vm566_vm1, %v1263_v41, %v1262_v40 }
 0x342   : > { %v1921_v36 = vpop.f32.mrb[11].mxu1  ;;  %v1098_v54 = vsel %vm722_vm9, -1e+09, %v1097_v49  ;;  %v1119_v49 = vrot.slane %v2205_v1, 5 }
 0x343   : > { %v1099_v58 = vsel %vm674_vm8, %v1098_v54, -inf }
 0x344   : > { %1100 = vmax.xlane.f32.xlu1 %v1099_v58  ;;  %v1266_v58 = vsel %vm569_vm2, %v1265_v47, %v1264_v51 }
 0x345   : > { %v1267_v50 = vsel %vm572_vm3, %v2198_v55, %v1266_v58 }
 0x347   : > { %v1242_v59 = vpop.f32.mrb[12].mxu1 }
 0x348   : > { %v1248_v33 = vmul.f32 0.35355338, %v1242_v59  ;;  %v1932_v56 = vpop.f32.mrb[13].mxu1  ;;  %v1123_v59 = vrot.slane %v2212_v9, 3 }
 0x349   : > { %v1245_v57 = vpop.f32.mrb[14].mxu1  ;;  %v1270_v56 = vrot.slane %v2205_v1, 6 }
 0x34a   : > { %v1933_v42 = vpop.f32.mrb[15].mxu1  ;;  %v1249_v62 = vsel %vm722_vm9, -1e+09, %v1248_v33  ;;  %v1269_v57 = vsel %vm575_vm4, %v1268_v52, %v1267_v50 }
 0x34b   : > { %v1250_v0 = vsel %vm674_vm8, %v1249_v62, -inf }
 0x34c   : > { %1251 = vmax.xlane.f32.xlu0 %v1250_v0  ;;  %v1272_v0 = vrot.slane %v2209_v7, 5 }
 0x3c9   : > { %v950_v2 = vpop.xlane.xlu1 %949 }
 0x3ca   : > { %v951_v4 = vsub.f32 %v947_v44, %v950_v2  ;;  %v1117_v44 = vrot.slane %v2201_v61, 6  ;;  %v1271_v2 = vsel %vm578_vm5, %v1270_v56, %v1269_v57 }
 0x3cc   : > { %v952_v39 = vmul.f32 1.442695, %v951_v4  ;;  %v1118_v53 = vsel %vm575_vm4, %v1117_v44, %v1116_v45 }
 0x3cd   : > { %v1120_v48 = vsel %vm578_vm5, %v1119_v49, %v1118_v53 }
 0x3ce   : > { %1972 = vpow2.f32 %v952_v39  ;;  %v1274_v39 = vrot.slane %v2212_v9, 4 }
 0x3d1   : > { %v1101_v60 = vpop.xlane.xlu1 %1100 }
 0x3d2   : > { %v1102_v5 = vsub.f32 %v1098_v54, %v1101_v60  ;;  %v1121_v54 = vrot.slane %v2209_v7, 4  ;;  %v1273_v60 = vsel %vm581_vm6, %v1272_v0, %v1271_v2 }
 0x3d4   : > { %v1103_v8 = vmul.f32 1.442695, %v1102_v5  ;;  %v1122_v33 = vsel %vm581_vm6, %v1121_v54, %v1120_v48 }
 0x3d5   : > { %v1124_v42 = vsel %vm584_vm7, %v1123_v59, %v1122_v33 }
 0x3d6   : > { %1974 = vpow2.f32 %v1103_v8  ;;  %v1125_v61 = vpack.c.b16 %v1124_v42, %v1124_v42  ;;  %v1275_v8 = vsel %vm584_vm7, %v1274_v39, %v1273_v60 }
 0x3d7   : > { %v1276_v7 = vpack.c.b16 %v1275_v8, %v1275_v8 }
 0x3d8   : > { %v2341_v10 = vpop.eup %1972  ;;  %v1130_v1 = vsel %vm826_vm10, %v1125_v61, 0 }
 0x3d9   : > { %v1252_v12 = vpop.xlane.xlu0 %1251  ;;  %v954_v13 = vsel %vm674_vm8, %v2341_v10, 0.0 }
 0x3da   : > { %v1253_v43 = vsub.f32 %v1249_v62, %v1252_v12  ;;  %955 = vadd.xlane.f32.xlu1 %v954_v13 }
 0x3dc   : > { %v1254_v25 = vmul.f32 1.442695, %v1253_v43  ;;  %v1281_v43 = vsel %vm826_vm10, %v1276_v7, 0 }
 0x3de   : > { %1976 = vpow2.f32 %v1254_v25 }
 0x3e0   : > { %v2345_v15 = vpop.eup %1974 }
 0x3e1   : > { %v1105_v16 = vsel %vm674_vm8, %v2345_v15, 0.0 }
 0x3e2   : > { %1106 = vadd.xlane.f32.xlu0 %v1105_v16 }
 0x3e8   : > { %v2349_v28 = vpop.eup %1976 }
 0x3e9   : > { %v1256_v17 = vsel %vm674_vm8, %v2349_v28, 0.0 }
 0x3ea   : > { %1257 = vadd.xlane.f32.xlu1 %v1256_v17  ;;  %v2010_v17 = vmov 1966171168  }
 0x3eb   : > { %v1326_v18 = vunpack.c.l.s4 %v2010_v17 }
 0x3ed   : > { %v1327_v20 = vunpack.c.0.s8 %v1326_v18 }
 0x467   : > { %v956_v36 = vpop.xlane.xlu1 %955 }
 0x468   : > { %1978 = vrcp.f32 %v956_v36 }
 0x46f   : > { %v1107_v62 = vpop.xlane.xlu0 %1106 }
 0x470   : > { %1980 = vrcp.f32 %v1107_v62 }
 0x472   : > { %v1979_v4 = vpop.eup %1978 }
 0x473   : > { %v958_v55 = vmul.f32 %v1979_v4, %v2341_v10 }
 0x475   : > { %v959_v5 = vpack.c.bf16 %v958_v55, %v958_v55 }
 0x477   : > { %1913 = vmatmul.mubr.msk.bf16.vlgmr.msra.gmra.mrb[4].mxu0 %vm674_vm8, %v959_v5  ;;  %v1258_v12 = vpop.xlane.xlu1 %1257 }
 0x478   : > { %1923 = vmatpush3.bf16.msra.mxu0 %v1130_v1  ;;  %1982 = vrcp.f32 %v1258_v12  ;;  %1924 = vmatprep.mubr.msk.bf16.mxu0 %vm2009_vm0, %v2008_v24 }
 0x479   : > { %1934 = vmatprep.subr.bf16.mxu0 %v2008_v24 }
 0x47a   : > { %v1981_v9 = vpop.eup %1980 }
 0x47b   : > { %v1109_v10 = vmul.f32 %v1981_v9, %v2345_v15  ;;  %v1329_v15 = vshrl.u32 %v1328_v19, 7 }
 0x47d   : > { %v1110_v13 = vpack.c.bf16 %v1109_v10, %v1109_v10  ;;  %v2413_v46 = vsub.s32 %v1327_v20, %v1329_v15  ;;  %v2424_v32 = vsub.s32 0, %v1329_v15 }
 0x47f   : > { %1925 = vmatmul.mubr.msk.bf16.vlgmr.msra.gmra.mrb[8].mxu0 %vm674_vm8, %v1110_v13  ;;  %v1331_v63 = vrot.slane %v2330_v11, %v2413_v46 }
 0x480   : > { %1935 = vmatpush3.bf16.msra.mxu0 %v1281_v43  ;;  %1936 = vmatprep.mubr.msk.bf16.mxu0 %vm2009_vm0, %v2008_v24  ;;  %v1338_v24 = vrot.slane %v1324_v3, %v2413_v46 }
 0x481   : > { %v1339_v21 = vcombine.high %v1331_v63, %v1331_v63  ;;  %v1347_v27 = vrot.slane %v1331_v63, %v2413_v46 }
 0x482   : > { %v1983_v25 = vpop.eup %1982  ;;  %v1354_v31 = vrot.slane %v1338_v24, %v2413_v46 }
 0x483   : > { %v1260_v16 = vmul.f32 %v1983_v25, %v2349_v28  ;;  %v1340_v28 = vcombine.high %v1338_v24, %v1338_v24  ;;  %v1361_v30 = vrot.slane %v1339_v21, %v2413_v46  ;;  %v1369_v47 = vcombine.high %v1347_v27, %v1347_v27 }
 0x484   : > { %v1370_v49 = vcombine.high %v1354_v31, %v1354_v31 }
 0x485   : > { %v1261_v29 = vpack.c.bf16 %v1260_v16, %v1260_v16  ;;  %v1368_v38 = vrot.slane %v1340_v28, %v2413_v46  ;;  %v1371_v51 = vcombine.high %v1361_v30, %v1361_v30 }
 0x487   : > { %1937 = vmatmul.mubr.msk.bf16.vlgmr.msra.gmra.mrb[12].mxu0 %vm674_vm8, %v1261_v29  ;;  %v1372_v52 = vcombine.high %v1368_v38, %v1368_v38 }
 0x54a   : > { %v1015_v22 = vpop.f32.mrb[4].mxu0 }
 0x54b   : > { %v1382_v23 = vcombine.high %v1015_v22, %v1015_v22  ;;  %v1389_v6 = vrot.slane %v1015_v22, %v2413_v46  ;;  %v1914_v26 = vpop.f32.mrb[5].mxu0 }
 0x54c   : > { %v1018_v34 = vpop.f32.mrb[6].mxu0 }
 0x54d   : > { %v1396_v11 = vrot.slane %v1382_v23, %v2413_v46  ;;  %v1397_v14 = vcombine.high %v1389_v6, %v1389_v6  ;;  %v1405_v35 = vrot.slane %v1389_v6, %v2413_v46  ;;  %v1915_v37 = vpop.f32.mrb[7].mxu0 }
 0x54f   : > { %v1398_v40 = vcombine.high %v1396_v11, %v1396_v11  ;;  %v1412_v41 = vrot.slane %v1396_v11, %v2413_v46  ;;  %v1419_v44 = vrot.slane %v1397_v14, %v2413_v46  ;;  %v1427_v45 = vcombine.high %v1405_v35, %v1405_v35 }
 0x550   : > { %v1534_v53 = vrot.slane %v1405_v35, %v2424_v32 }
 0x551   : > { %v1426_v36 = vrot.slane %v1398_v40, %v2413_v46  ;;  %v1428_v54 = vcombine.high %v1412_v41, %v1412_v41  ;;  %v1429_v58 = vcombine.high %v1419_v44, %v1419_v44  ;;  %v1538_v48 = vrot.slane %v1419_v44, %v2424_v32 }
 0x552   : > { %v1542_v59 = vrot.slane %v1427_v45, %v2424_v32  ;;  %v1550_v50 = vrot.slane %v1412_v41, %v2424_v32  ;;  %v1652_v33 = vsel %vm1651_vm11, %v1347_v27, %v1534_v53  ;;  %v1166_v56 = vpop.f32.mrb[8].mxu0 }
 0x553   : > { %v1430_v57 = vcombine.high %v1426_v36, %v1426_v36  ;;  %v1546_v42 = vrot.slane %v1429_v58, %v2424_v32  ;;  %v1554_v62 = vrot.slane %v1426_v36, %v2424_v32  ;;  %v1558_v0 = vrot.slane %v1428_v54, %v2424_v32  ;;  %v1926_v2 = vpop.f32.mrb[9].mxu0 }
 0x554   : > { %v1653_v61 = vsel %vm1651_vm11, %v1361_v30, %v1538_v48  ;;  %v1654_v4 = vsel %vm1651_vm11, %v1369_v47, %v1542_v59  ;;  %v1656_v39 = vsel %vm1651_vm11, %v1354_v31, %v1550_v50  ;;  %v1432_v55 = vcombine.high %v1166_v56, %v1166_v56  ;;  %v1169_v60 = vpop.f32.mrb[10].mxu0 }
 0x555   : > { %v1562_v5 = vrot.slane %v1430_v57, %v2424_v32  ;;  %v1655_v1 = vsel %vm1651_vm11, %v1371_v51, %v1546_v42  ;;  %v1657_v8 = vsel %vm1651_vm11, %v1368_v38, %v1554_v62  ;;  %v1658_v12 = vsel %vm1651_vm11, %v1370_v49, %v1558_v0  ;;  %v1927_v7 = vpop.f32.mrb[11].mxu0 }
 0x556   : > { %v1439_v9 = vrot.slane %v1166_v56, %v2413_v46  ;;  %v1446_v10 = vrot.slane %v1432_v55, %v2413_v46 }
 0x557   : > { %v1659_v13 = vsel %vm1651_vm11, %v1372_v52, %v1562_v5 }
 0x558   : > { %v1447_v43 = vcombine.high %v1439_v9, %v1439_v9  ;;  %v1448_v25 = vcombine.high %v1446_v10, %v1446_v10  ;;  %v1455_v16 = vrot.slane %v1439_v9, %v2413_v46  ;;  %v1462_v29 = vrot.slane %v1446_v10, %v2413_v46 }
 0x55a   : > { %v1469_v17 = vrot.slane %v1447_v43, %v2413_v46  ;;  %v1476_v18 = vrot.slane %v1448_v25, %v2413_v46  ;;  %v1477_v19 = vcombine.high %v1455_v16, %v1455_v16  ;;  %v1478_v20 = vcombine.high %v1462_v29, %v1462_v29  ;;  %v1317_v15 = vpop.f32.mrb[12].mxu0 }
 0x55b   : > { %v1574_v3 = vrot.slane %v1455_v16, %v2424_v32  ;;  %v1590_v63 = vrot.slane %v1462_v29, %v2424_v32  ;;  %v1482_v24 = vcombine.high %v1317_v15, %v1317_v15  ;;  %v1489_v21 = vrot.slane %v1317_v15, %v2413_v46  ;;  %v1938_v28 = vpop.f32.mrb[13].mxu0 }
 0x55c   : > { %v1479_v22 = vcombine.high %v1469_v17, %v1469_v17  ;;  %v1480_v23 = vcombine.high %v1476_v18, %v1476_v18  ;;  %v1578_v6 = vrot.slane %v1469_v17, %v2424_v32  ;;  %v1582_v26 = vrot.slane %v1477_v19, %v2424_v32  ;;  %v1320_v27 = vpop.f32.mrb[14].mxu0 }
 0x55d   : > { %v1594_v31 = vrot.slane %v1476_v18, %v2424_v32  ;;  %v1598_v30 = vrot.slane %v1478_v20, %v2424_v32  ;;  %v1661_v34 = vsel %vm1660_vm12, %v1652_v33, %v1574_v3  ;;  %v1665_v11 = vsel %vm1660_vm12, %v1656_v39, %v1590_v63  ;;  %v1939_v14 = vpop.f32.mrb[15].mxu0 }
 0x55e   : > { %v1586_v35 = vrot.slane %v1479_v22, %v2424_v32  ;;  %v1602_v37 = vrot.slane %v1480_v23, %v2424_v32  ;;  %v1662_v38 = vsel %vm1660_vm12, %v1653_v61, %v1578_v6  ;;  %v1663_v40 = vsel %vm1660_vm12, %v1654_v4, %v1582_v26 }
 0x55f   : > { %v1666_v41 = vsel %vm1660_vm12, %v1657_v8, %v1594_v31  ;;  %v1667_v44 = vsel %vm1660_vm12, %v1658_v12, %v1598_v30  ;;  %v1496_v45 = vrot.slane %v1482_v24, %v2413_v46  ;;  %v1497_v47 = vcombine.high %v1489_v21, %v1489_v21 }
 0x560   : > { %v1664_v49 = vsel %vm1660_vm12, %v1655_v1, %v1586_v35  ;;  %v1668_v51 = vsel %vm1660_vm12, %v1659_v13, %v1602_v37  ;;  %v1505_v53 = vrot.slane %v1489_v21, %v2413_v46 }
 0x561   : > { %v1498_v36 = vcombine.high %v1496_v45, %v1496_v45  ;;  %v1512_v54 = vrot.slane %v1496_v45, %v2413_v46  ;;  %v1519_v58 = vrot.slane %v1497_v47, %v2413_v46 }
 0x562   : > { %v1527_v48 = vcombine.high %v1505_v53, %v1505_v53  ;;  %v1614_v52 = vrot.slane %v1505_v53, %v2424_v32 }
 0x563   : > { %v1526_v59 = vrot.slane %v1498_v36, %v2413_v46  ;;  %v1528_v50 = vcombine.high %v1512_v54, %v1512_v54  ;;  %v1529_v33 = vcombine.high %v1519_v58, %v1519_v58  ;;  %v1618_v56 = vrot.slane %v1519_v58, %v2424_v32 }
 0x564   : > { %v1622_v57 = vrot.slane %v1527_v48, %v2424_v32  ;;  %v1630_v42 = vrot.slane %v1512_v54, %v2424_v32  ;;  %v1670_v62 = vsel %vm1669_vm13, %v1661_v34, %v1614_v52 }
 0x565   : > { %v1530_v0 = vcombine.high %v1526_v59, %v1526_v59  ;;  %v1626_v2 = vrot.slane %v1529_v33, %v2424_v32  ;;  %v1634_v46 = vrot.slane %v1526_v59, %v2424_v32  ;;  %v1638_v61 = vrot.slane %v1528_v50, %v2424_v32 }
 0x566   : > { %v1671_v4 = vsel %vm1669_vm13, %v1662_v38, %v1618_v56  ;;  %v1672_v39 = vsel %vm1669_vm13, %v1663_v40, %v1622_v57  ;;  %v1674_v55 = vsel %vm1669_vm13, %v1665_v11, %v1630_v42  ;;  %v1678_v60 = vpack.c.bf16 %v1670_v62, %v1670_v62 }
 0x567   : > { %v1642_v5 = vrot.slane %v1530_v0, %v2424_v32  ;;  %v1673_v1 = vsel %vm1669_vm13, %v1664_v49, %v1626_v2  ;;  %v1675_v8 = vsel %vm1669_vm13, %v1666_v41, %v1634_v46  ;;  %v1676_v12 = vsel %vm1669_vm13, %v1667_v44, %v1638_v61 }
 0x568   : > { %v1679_v7 = vpack.c.bf16 %v1671_v4, %v1671_v4  ;;  %v1680_v9 = vpack.c.bf16 %v1672_v39, %v1672_v39  ;;  %v1681_v10 = vpack.c.bf16 %v1673_v1, %v1673_v1  ;;  %v1682_v13 = vpack.c.bf16 %v1674_v55, %v1674_v55  ;;  %1687 = vst.msk [vmem:[%s466_s18] sm:$0x3] %vm1686_vm14, %v1678_v60 }
 0x569   : > { %v1677_v43 = vsel %vm1669_vm13, %v1668_v51, %v1642_v5  ;;  %v1683_v25 = vpack.c.bf16 %v1675_v8, %v1675_v8  ;;  %v1684_v16 = vpack.c.bf16 %v1676_v12, %v1676_v12 }
 0x56a   : > { %v1685_v29 = vpack.c.bf16 %v1677_v43, %v1677_v43  ;;  %1688 = vst.msk [vmem:[%s466_s18 + $0x2] sm:$0x3] %vm1686_vm14, %v1679_v7  ;;  %1689 = vst.msk [vmem:[%s466_s18 + $0x4] sm:$0x3] %vm1686_vm14, %v1680_v9 }
 0x56b   : > { %1690 = vst.msk [vmem:[%s466_s18 + $0x6] sm:$0x3] %vm1686_vm14, %v1681_v10  ;;  %1691 = vst.msk [vmem:[%s466_s18 + $0x8] sm:$0x3] %vm1686_vm14, %v1682_v13 }
 0x56c   : > { %1692 = vst.msk [vmem:[%s466_s18 + $0xa] sm:$0x3] %vm1686_vm14, %v1683_v25  ;;  %1693 = vst.msk [vmem:[%s466_s18 + $0xc] sm:$0x3] %vm1686_vm14, %v1684_v16 }
 0x56d   : > { %1694 = vst.msk [vmem:[%s466_s18 + $0xe] sm:$0x3] %vm1686_vm14, %v1685_v29 }
 0x56e PF: > { %p11_p9 = scmp.ge.s32.totalorder %s2053_s19, 4   ;;  %s2520_s15 = smov %s2002_s16 }
 0x56f   : > { %s2521_s16 = smov %s2062_s22  ;;  %s2522_s17 = smov %s2053_s19 }
 0x570   :  { %13 = sbr.rel (!%p11_p9) target bundleno = 2 (0x2), region = 213 }

// kernel: decoder_block_pallas.13
= control target key start
LH: loop header
LB: loop body
LE: loop exit
PB: predicated region body
PF: predicated region fallthrough
CT: control target
= control target key end

     0   :  { %vm44_vm0 = vcmask 261120   ;;  %vm116_vm1 = vcmask 519168   ;;  %s205_s1 = inlined_call_operand.vmem [shape: bf16[32,64], index: 1, kind: input, shape index: {}]   ;;  %s206_s0 = inlined_call_operand.vmem [shape: f32[32,32], index: 0, kind: input, shape index: {}]   ;;  %s207_s2 = inlined_call_operand.vmem [shape: f32[1,64], index: 2, kind: input, shape index: {}]   ;;  %s208_s3 = inlined_call_operand.vmem [shape: bf16[32,64], index: 3, kind: output, shape index: {}]  }
   0x1   :  { %v150_v0 = vld [vmem:[%s205_s1] sm:$0xff]   ;;  %v151_v1 = vld [vmem:[%s205_s1 + $0x8] sm:$0xff]   ;;  %v17_v5 = vld [vmem:[%s206_s0 + $0x10] sm:$0xff] }
   0x2   :  { %142 = vmatprep.subr.bf16.mxu0 %v150_v0  ;;  %v15_v2 = vld [vmem:[%s206_s0] sm:$0xff]  ;;  %v16_v3 = vld [vmem:[%s206_s0 + $0x8] sm:$0xff]  ;;  %v18_v6 = vld [vmem:[%s206_s0 + $0x18] sm:$0xff] }
   0x3   :  { %143 = vmatpush3.bf16.msra.mxu0 %v150_v0  ;;  %v19_v4 = vpack.c.bf16 %v16_v3, %v15_v2  ;;  %v20_v7 = vpack.c.bf16 %v18_v6, %v17_v5  ;;  %v125_v8 = vld [vmem:[%s207_s2] ss:$0 sm:$0xff] }
   0x4   :  { %144 = vmatprep.subr.bf16.mxu0 %v151_v1 }
   0x5   :  { %146 = vmatprep.mubr.msk.bf16.mxu0 %vm44_vm0, %v19_v4 }
   0x7   :  { %145 = vmatpush3.bf16.msra.mxu0 %v151_v1 }
   0xa   :  { %147 = vmatmul.mubr.msk.bf16.vlgmr.msra.gmra.mrb[0].mxu0 %vm44_vm0, %v20_v7 }
  0xdd   :  { %v148_v9 = vpop.f32.mrb[0].mxu0 }
  0xde   :  { %v94_v10 = vadd.f32 %v148_v9, %v125_v8  ;;  %v85_v11 = vpop.f32.mrb[1].mxu0 }
  0xdf   :  { %v86_v12 = vadd.f32 %v125_v8, %v85_v11  ;;  %v149_v13 = vpop.f32.mrb[2].mxu0 }
  0xe0   :  { %v136_v14 = vpack.c.bf16 %v94_v10, %v94_v10  ;;  %v97_v15 = vadd.f32 %v149_v13, %v125_v8  ;;  %v88_v16 = vpop.f32.mrb[3].mxu0 }
  0xe1   :  { %v134_v17 = vpack.c.bf16 %v86_v12, %v86_v12  ;;  %v89_v18 = vadd.f32 %v125_v8, %v88_v16 }
  0xe2   :  { %119 = vst.msk [vmem:[%s208_s3 + $0x8] sm:$0xf] %vm116_vm1, %v136_v14  ;;  %v137_v19 = vpack.c.bf16 %v97_v15, %v97_v15 }
  0xe3   :  { %117 = vst.msk [vmem:[%s208_s3] sm:$0xf] %vm116_vm1, %v134_v17  ;;  %v135_v20 = vpack.c.bf16 %v89_v18, %v89_v18 }
  0xe4   :  { %120 = vst.msk [vmem:[%s208_s3 + $0xc] sm:$0xf] %vm116_vm1, %v137_v19 }
  0xe5   :  { %118 = vst.msk [vmem:[%s208_s3 + $0x4] sm:$0xf] %vm116_vm1, %v135_v20 }

// kernel: decoder_block_pallas.16
= control target key start
LH: loop header
LB: loop body
LE: loop exit
PB: predicated region body
PF: predicated region fallthrough
CT: control target
= control target key end

     0   :  { %9 = vsyncpa [#allocation3], 0  ;;  %s274_s0 = inlined_call_operand.vmem [shape: f32[2], index: 0, kind: input, shape index: {}]   ;;  %s275_s1 = inlined_call_operand.vmem [shape: f32[16,32], index: 1, kind: input, shape index: {}]   ;;  %s276_s2 = inlined_call_operand.vmem [shape: bf16[32,64], index: 2, kind: input, shape index: {}]   ;;  %s277_s3 = inlined_call_operand.vmem [shape: f32[1,64], index: 3, kind: input, shape index: {}]   ;;  %s278_s4 = inlined_call_operand.vmem [shape: bf16[16,64], index: 4, kind: output, shape index: {}]  }
   0x1   :  { %s16_s17 = sshll.u32 %s274_s0, 4  ;;  %s17_s17 = int_to_ptr.vmem [resolvable:$true] %s16_s17 }
   0x2   :  { %s203_s18 = scalar_lea.vmem %s17_s17, 16  ;;  %p208_p1 = scmp.lt.s32.totalorder %s17_s17, %s17_s17 }
   0x3   :  { %p204_p0 = scmp.ne.s32.totalorder %s17_s17, %s203_s18  ;;  %p209_p2 = scmp.lt.s32.totalorder %s203_s18, %s203_s18 }
   0x5   :  { %p210_p3 = por %p209_p2, %p208_p1 }
   0x7   :  { %p211_p4 = pnand %p210_p3, %p204_p0 }
   0x9   :  { %214 = shalt.err (!%p211_p4)
}
   0xa   :  { %s217_s19 = smov [#allocation2]  }
   0xb   :  { %19 = dma.vmem_to_smem %s17_s17, 16, %s217_s19, [#allocation3]  }
   0xc   :  { %215 = dma.done.wait [#allocation3], 16  }
   0xd   :  { %216 = vsyncadd [#allocation3], 4294967280 }
   0xe   :  { %29 = sfence }
   0xf   :  { %v31_v0 = vld [vmem:[%s275_s1] sm:$0xff]  ;;  %vm33_vm0 = vcmask 261120   ;;  %v32_v1 = vld [vmem:[%s275_s1 + $0x8] sm:$0xff]  ;;  %v218_v15 = vmov 0.0   ;;  %vm219_vm1 = vmmov 0   ;;  %s170_s26 = sld [smem:[#allocation2 + $0x1]] }
  0x10   :  { %v34_v2 = vsel %vm33_vm0, %v31_v0, 0.0  ;;  %v37_v3 = vsel %vm33_vm0, %v32_v1, 0.0  ;;  %v193_v14 = vld [vmem:[%s276_s2] sm:$0xff]   ;;  %182 = vmatprep.subr.bf16.mxu0 %v218_v15  ;;  %186 = vmatprep.mubr.msk.bf16.mxu0 %vm219_vm1, %v218_v15  ;;  %v194_v16 = vld [vmem:[%s276_s2 + $0x8] sm:$0xff]   ;;  %s74_s2 = sld [smem:[#allocation2]]  ;;  %vm162_vm6 = vcmask 519168  }
  0x11   :  { %35 = vadd.xlane.f32.xlu0 %v34_v2  ;;  %183 = vmatpush3.bf16.msra.mxu0 %v193_v14  ;;  %v171_v44 = vld [vmem:[%s277_s3] ss:$0 sm:$0xff] }
  0x12   :  { %184 = vmatprep.subr.bf16.mxu0 %v218_v15 }
  0x15   :  { %38 = vadd.xlane.f32.xlu0 %v37_v3  ;;  %185 = vmatpush3.bf16.msra.mxu0 %v194_v16  ;;  %v81_v39 = vstv %s170_s26 }
  0x16   :  { %v75_v33 = vstv %s74_s2 }
  0x9e   :  { %v36_v4 = vpop.xlane.xlu0 %35 }
  0x9f   :  { %v41_v5 = vmul.f32 0.03125, %v36_v4 }
  0xa1   :  { %v43_v6 = vsub.f32 %v31_v0, %v41_v5 }
  0xa2   :  { %v39_v7 = vpop.xlane.xlu0 %38 }
  0xa3   :  { %v42_v8 = vmul.f32 0.03125, %v39_v7  ;;  %v45_v9 = vmul.f32 %v43_v6, %v43_v6  ;;  %v76_v35 = vmul.f32 %v75_v33, %v43_v6 }
  0xa5   :  { %v44_v10 = vsub.f32 %v32_v1, %v42_v8  ;;  %v47_v11 = vsel %vm33_vm0, %v45_v9, 0.0 }
  0xa6   :  { %48 = vadd.xlane.f32.xlu1 %v47_v11 }
  0xa7   :  { %v46_v12 = vmul.f32 %v44_v10, %v44_v10  ;;  %v77_v36 = vmul.f32 %v75_v33, %v44_v10 }
  0xa9   :  { %v50_v13 = vsel %vm33_vm0, %v46_v12, 0.0 }
  0xaa   :  { %51 = vadd.xlane.f32.xlu1 %v50_v13 }
 0x133   :  { %v49_v17 = vpop.xlane.xlu1 %48 }
 0x134   :  { %v54_v18 = vmul.f32 0.032258064, %v49_v17 }
 0x136   :  { %195 = vrsqrt.f32 %v54_v18  ;;  %vm58_vm2 = vcmp.eq.f32.partialorder %v54_v18, inf  ;;  %v61_v23 = vand.u32 2147483648, %v54_v18  ;;  %vm60_vm3 = vcmp.eq.f32.partialorder %v54_v18, 0.0 }
 0x137   :  { %v52_v19 = vpop.xlane.xlu1 %51 }
 0x138   :  { %v55_v20 = vmul.f32 0.032258064, %v52_v19 }
 0x13a   :  { %197 = vrsqrt.f32 %v55_v20  ;;  %vm65_vm4 = vcmp.eq.f32.partialorder %v55_v20, inf  ;;  %v68_v29 = vand.u32 2147483648, %v55_v20  ;;  %vm67_vm5 = vcmp.eq.f32.partialorder %v55_v20, 0.0 }
 0x140   :  { %v196_v21 = vpop.eup %195 }
 0x141   :  { %v57_v22 = vmul.f32 %v196_v21, %v54_v18 }
 0x143   :  { %v59_v24 = vsel %vm58_vm2, %v54_v18, %v57_v22 }
 0x144   :  { %v198_v25 = vpop.eup %197  ;;  %v62_v26 = vsel %vm60_vm3, %v61_v23, %v59_v24 }
 0x145   :  { %v70_v27 = vadd.f32 1e-06, %v62_v26  ;;  %v64_v28 = vmul.f32 %v198_v25, %v55_v20 }
 0x147   :  { %199 = vrcp.f32 %v70_v27  ;;  %v66_v30 = vsel %vm65_vm4, %v55_v20, %v64_v28 }
 0x148   :  { %v69_v31 = vsel %vm67_vm5, %v68_v29, %v66_v30 }
 0x149   :  { %v71_v32 = vadd.f32 1e-06, %v69_v31 }
 0x14b   :  { %201 = vrcp.f32 %v71_v32 }
 0x151   :  { %v200_v34 = vpop.eup %199 }
 0x152   :  { %v78_v37 = vmul.f32 %v200_v34, %v76_v35 }
 0x154   :  { %v82_v41 = vadd.f32 %v81_v39, %v78_v37 }
 0x155   :  { %v202_v38 = vpop.eup %201 }
 0x156   :  { %v79_v40 = vmul.f32 %v202_v38, %v77_v36 }
 0x158   :  { %v83_v42 = vadd.f32 %v81_v39, %v79_v40 }
 0x15a   :  { %v84_v43 = vpack.c.bf16 %v83_v42, %v82_v41 }
 0x15c   :  { %187 = vmatmul.mubr.msk.bf16.vlgmr.msra.gmra.mrb[0].mxu0 %vm33_vm0, %v84_v43 }
 0x22f   :  { %v145_v45 = vpop.f32.mrb[0].mxu0 }
 0x230   :  { %v146_v46 = vadd.f32 %v171_v44, %v145_v45  ;;  %v188_v47 = vpop.f32.mrb[1].mxu0 }
 0x231   :  { %v148_v48 = vpop.f32.mrb[2].mxu0 }
 0x232   :  { %v152_v49 = vmax.f32 %v146_v46, 0.0  ;;  %v149_v50 = vadd.f32 %v171_v44, %v148_v48  ;;  %v189_v51 = vpop.f32.mrb[3].mxu0 }
 0x234   :  { %v177_v52 = vpack.c.bf16 %v152_v49, %v152_v49  ;;  %v153_v53 = vmax.f32 %v149_v50, 0.0 }
 0x236   :  { %163 = vst.msk [vmem:[%s278_s4] sm:$0xf] %vm162_vm6, %v177_v52  ;;  %v178_v54 = vpack.c.bf16 %v153_v53, %v153_v53 }
 0x238   :  { %164 = vst.msk [vmem:[%s278_s4 + $0x4] sm:$0xf] %vm162_vm6, %v178_v54 }
 0x239   :  { %169 = vsyncpa [#allocation3], 1 }

// kernel: decoder_block_pallas.17
= control target key start
LH: loop header
LB: loop body
LE: loop exit
PB: predicated region body
PF: predicated region fallthrough
CT: control target
= control target key end

     0   :  { %v191_v1 = vmov 0.0   ;;  %vm192_vm0 = vmmov 0   ;;  %s257_s0 = inlined_call_operand.vmem [shape: bf16[16,64], index: 0, kind: input, shape index: {}]   ;;  %s258_s1 = inlined_call_operand.vmem [shape: bf16[64,32], index: 1, kind: input, shape index: {}]   ;;  %s259_s2 = inlined_call_operand.vmem [shape: f32[1,32], index: 2, kind: input, shape index: {}]   ;;  %s260_s3 = inlined_call_operand.vmem [shape: f32[16,32], index: 3, kind: input, shape index: {}]   ;;  %s261_s4 = inlined_call_operand.hbm [shape: f32[16,32], index: 4, kind: output, shape index: {}]  }
   0x1   :  { %v162_v0 = vld [vmem:[%s258_s1] sm:$0xff]   ;;  %145 = vmatprep.subr.bf16.mxu0 %v191_v1  ;;  %v163_v2 = vld [vmem:[%s258_s1 + $0x8] sm:$0xff]   ;;  %153 = vmatprep.mubr.msk.bf16.mxu0 %vm192_vm0, %v191_v1 }
   0x2   :  { %146 = vmatpush3.bf16.msra.mxu0 %v162_v0 }
   0x3   :  { %147 = vmatprep.subr.bf16.mxu0 %v191_v1 }
   0x4   :  { %9 = vsyncpa [#allocation3], 0  ;;  %v164_v3 = vld [vmem:[%s258_s1 + $0x10] sm:$0xff]   ;;  %v165_v4 = vld [vmem:[%s258_s1 + $0x18] sm:$0xff]   ;;  %vm65_vm1 = vcmask 523264   ;;  %s193_s1 = smov [#allocation2]  }
   0x5   :  { %v166_v5 = vld [vmem:[%s257_s0] sm:$0xff]   ;;  %s122_s29 = sshll.u32 %s193_s1, 4  ;;  %vm114_vm2 = vcmask 261120   ;;  %v111_v12 = vld [vmem:[%s260_s3 + $0x8] sm:$0xff]  ;;  %s123_s29 = int_to_ptr.vmem [resolvable:$true] %s122_s29 }
   0x6   :  { %148 = vmatpush3.bf16.msra.mxu0 %v163_v2  ;;  %v133_v6 = vld [vmem:[%s259_s2] ss:$0 sm:$0xff]  ;;  %s167_s2 = scalar_lea.vmem %s123_s29, 256  ;;  %p172_p1 = scmp.lt.s32.totalorder %s123_s29, %s123_s29 }
   0x7   :  { %149 = vmatprep.subr.bf16.mxu0 %v191_v1  ;;  %v110_v8 = vld [vmem:[%s260_s3] sm:$0xff]  ;;  %p168_p0 = scmp.ne.s32.totalorder %s123_s29, %s167_s2  ;;  %p173_p2 = scmp.lt.s32.totalorder %s167_s2, %s167_s2 }
   0x9   :  { %p174_p3 = por %p173_p2, %p172_p1 }
   0xa   :  { %150 = vmatpush3.bf16.msra.mxu0 %v164_v3 }
   0xb   :  { %151 = vmatprep.subr.bf16.mxu0 %v191_v1  ;;  %p175_p4 = pnand %p174_p3, %p168_p0 }
   0xe   :  { %152 = vmatpush3.bf16.msra.mxu0 %v165_v4 }
  0x11   :  { %154 = vmatmul.mubr.msk.bf16.vlgmr.msra.gmra.mrb[0].mxu0 %vm65_vm1, %v166_v5 }
  0xe4   :  { %v103_v7 = vpop.f32.mrb[0].mxu0 }
  0xe5   :  { %v104_v9 = vadd.f32 %v133_v6, %v103_v7  ;;  %v155_v10 = vpop.f32.mrb[1].mxu0 }
  0xe6   :  { %v106_v11 = vpop.f32.mrb[2].mxu0 }
  0xe7   :  { %v112_v13 = vadd.f32 %v110_v8, %v104_v9  ;;  %v107_v14 = vadd.f32 %v133_v6, %v106_v11  ;;  %v156_v15 = vpop.f32.mrb[3].mxu0 }
  0xe9   :  { %115 = vst.msk [vmem:[#allocation2] sm:$0xff] %vm114_vm2, %v112_v13  ;;  %v113_v16 = vadd.f32 %v111_v12, %v107_v14 }
  0xeb   :  { %116 = vst.msk [vmem:[#allocation2 + $0x8] sm:$0xff] %vm114_vm2, %v113_v16 }
  0xec   :  { %178 = shalt.err (!%p175_p4)
}
  0xed   :  { %s179_s7 = scalar_lea.hbm %s261_s4, 256 }
  0xee   :  { %p180_p5 = scmp.ne.s32.totalorder %s261_s4, %s179_s7  ;;  %p183_p6 = scmp.lt.u32.totalorder %s179_s7, %s261_s4 }
  0xf0   :  { %p185_p7 = pnand %p183_p6, %p180_p5 }
  0xf2   :  { %188 = shalt.err (!%p185_p7)
}
  0xf3   :  { %s194_s11 = smov 128   ;;  %s195_s12 = smov 8  }
  0xf4   :  { %128 = dma.vmem_to_hbm [thread:$0]  %s123_s29, 256, %s261_s4, [#allocation3], %s194_s11, %s194_s11, %s195_s12  }
  0xf5   :  { %189 = dma.done.wait [#allocation3], 256  }
  0xf6   :  { %190 = vsyncadd [#allocation3], 4294967040 }
  0xf7   :  { %132 = vsyncpa [#allocation3], 1 }

// kernel: decoder_block_pallas.14
= control target key start
LH: loop header
LB: loop body
LE: loop exit
PB: predicated region body
PF: predicated region fallthrough
CT: control target
= control target key end

     0   :  { %11 = vsyncpa [#allocation5], 0  ;;  %s3253_s0 = inlined_call_operand.vmem [shape: bf16[2,8,4,8], index: 0, kind: input, shape index: {}]   ;;  %s3254_s1 = inlined_call_operand.vmem [shape: bf16[2,16,2,4,8], index: 1, kind: input, shape index: {}, may-alias: {1,2}]   ;;  %s3255_s2 = inlined_call_operand.vmem [shape: bf16[2,16,2,4,8], index: 2, kind: input, shape index: {}, may-alias: {1,2}]   ;;  %s3256_s3 = inlined_call_operand.vmem [shape: f32[2,8,16], index: 3, kind: input, shape index: {}]   ;;  %s3257_s4 = inlined_call_operand.vmem [shape: bf16[2,8,4,8], index: 4, kind: output, shape index: {0}]   ;;  %s3258_s5 = inlined_call_operand.hbm [shape: f32[2,4,8,16], index: 5, kind: output, shape index: {1}]  }
   0x1   :  { %13 = vsyncpa [#allocation5 + $0x1], 0  ;;  %s2469_s18 = smov 0   ;;  %s2471_s19 = smov 0  }
   0x2   :  { %s2473_s20 = smov 0   ;;  %s2475_s21 = smov 0  }
   0x3 LB: > { %s2490_s22 = sadd.s32 4294967295, %s2431_s21   ;;  %s2153_s23 = sadd.s32 4294967294, %s2431_s21   ;;  %s2431_s21 = sphi %s2475_s21, %s3268_s21   ;;  %s2427_s20 = sphi %s2473_s20, %s3267_s20   ;;  %s2423_s19 = sphi %s2471_s19, %s3266_s19   ;;  %s2419_s18 = sphi %s2469_s18, %s3265_s18  }
   0x4   : > { %s2494_s24 = sadd.s32 1, %s2431_s21   ;;  %s52_s25 = sadd.s32 1, %s2427_s20 }
   0x5   : > { %s49_s26 = ssub.s32 %s2431_s21, %s2494_s24  ;;  %p59_p0 = scmp.ne.s32.totalorder %s2427_s20, %s2423_s19 }
   0x6   : > { %p50_p1 = scmp.eq.s32.totalorder %s49_s26, 0  ;;  %p60_p2 = scmp.eq.s32.totalorder %s2431_s21, 0 }
   0x7   : > { %p167_p3 = scmp.eq.s32.totalorder %s2490_s22, 1  ;;  %p172_p4 = scmp.ne.s32.totalorder %s2423_s19, %s2419_s18 }
   0x8   : > { %s2506_s27 = scalar_select %p50_p1, %s2427_s20, %s52_s25  }
   0x9   : > { %p2508_p5 = por %p60_p2, %p59_p0  ;;  %p2512_p6 = por %p167_p3, %p59_p0 }
   0xa   : > { %p173_p7 = scmp.eq.s32.totalorder %s2153_s23, 1  ;;  %p2155_p9 = scmp.ge.s32.totalorder %s2431_s21, 2 }
   0xc   : > { %p2516_p8 = por %p173_p7, %p172_p4  ;;  %189 = sbr.rel (%p2155_p9) target bundleno = 47 (0x2f), region = 16 }
  0x13   : > { %200 = sbr.rel (!%p2508_p5) target bundleno = 33 (0x21), region = 24  ;;  %s202_s6 = sand.u32 (%p2508_p5), 1, %s2427_s20  }
  0x14   : > { %s2240_s7 = sshll.u32 (%p2508_p5), %s2431_s21, 6  ;;  %s2156_s8 = sshll.u32 (%p2508_p5), %s202_s6, 5 }
  0x15   : > { %s2530_s11 = scalar_lea.vmem (%p2508_p5), %s3254_s1, %s2240_s7  ;;  %s204_s12 = scalar_lea.vmem (%p2508_p5), [#allocation2], %s2156_s8 }
  0x16   : > { %v223_v0 = vld [vmem:[%s2530_s11] sm:$0x3] (%p2508_p5)  ;;  %v225_v1 = vld [vmem:[%s2530_s11 + $0x4] sm:$0x3] (%p2508_p5)  ;;  %v227_v2 = vld [vmem:[%s2530_s11 + $0x8] sm:$0x3] (%p2508_p5) }
  0x17   : > { %224 = vst [vmem:[%s204_s12] sm:$0x3] (%p2508_p5), %v223_v0  ;;  %226 = vst [vmem:[%s204_s12 + $0x2] sm:$0x3] (%p2508_p5), %v225_v1  ;;  %v229_v3 = vld [vmem:[%s2530_s11 + $0xc] sm:$0x3] (%p2508_p5) }
  0x18   : > { %v231_v4 = vld [vmem:[%s2530_s11 + $0x10] sm:$0x3] (%p2508_p5)  ;;  %228 = vst [vmem:[%s204_s12 + $0x4] sm:$0x3] (%p2508_p5), %v227_v2  ;;  %230 = vst [vmem:[%s204_s12 + $0x6] sm:$0x3] (%p2508_p5), %v229_v3 }
  0x19   : > { %232 = vst [vmem:[%s204_s12 + $0x8] sm:$0x3] (%p2508_p5), %v231_v4  ;;  %v233_v5 = vld [vmem:[%s2530_s11 + $0x14] sm:$0x3] (%p2508_p5)  ;;  %v235_v6 = vld [vmem:[%s2530_s11 + $0x18] sm:$0x3] (%p2508_p5) }
  0x1a   : > { %v237_v7 = vld [vmem:[%s2530_s11 + $0x1c] sm:$0x3]  ;;  %234 = vst [vmem:[%s204_s12 + $0xa] sm:$0x3] %v233_v5  ;;  %236 = vst [vmem:[%s204_s12 + $0xc] sm:$0x3] %v235_v6 }
  0x1b   : > { %238 = vst [vmem:[%s204_s12 + $0xe] sm:$0x3] %v237_v7  ;;  %v239_v8 = vld [vmem:[%s2530_s11 + $0x20] sm:$0x3]  ;;  %v241_v9 = vld [vmem:[%s2530_s11 + $0x24] sm:$0x3] }
  0x1c   : > { %v243_v10 = vld [vmem:[%s2530_s11 + $0x28] sm:$0x3]  ;;  %240 = vst [vmem:[%s204_s12 + $0x10] sm:$0x3] %v239_v8  ;;  %242 = vst [vmem:[%s204_s12 + $0x12] sm:$0x3] %v241_v9 }
  0x1d   : > { %244 = vst [vmem:[%s204_s12 + $0x14] sm:$0x3] %v243_v10  ;;  %v245_v11 = vld [vmem:[%s2530_s11 + $0x2c] sm:$0x3]  ;;  %v247_v12 = vld [vmem:[%s2530_s11 + $0x30] sm:$0x3] }
  0x1e   : > { %v249_v13 = vld [vmem:[%s2530_s11 + $0x34] sm:$0x3]  ;;  %246 = vst [vmem:[%s204_s12 + $0x16] sm:$0x3] %v245_v11  ;;  %248 = vst [vmem:[%s204_s12 + $0x18] sm:$0x3] %v247_v12 }
  0x1f   : > { %250 = vst [vmem:[%s204_s12 + $0x1a] sm:$0x3] %v249_v13  ;;  %v251_v14 = vld [vmem:[%s2530_s11 + $0x38] sm:$0x3]  ;;  %v253_v15 = vld [vmem:[%s2530_s11 + $0x3c] sm:$0x3] }
  0x20   : > { %252 = vst [vmem:[%s204_s12 + $0x1c] sm:$0x3] %v251_v14  ;;  %254 = vst [vmem:[%s204_s12 + $0x1e] sm:$0x3] %v253_v15 }
  0x21 PF: > { %309 = sbr.rel (!%p2508_p5) target bundleno = 47 (0x2f), region = 65  ;;  %s311_s13 = sand.u32 (%p2508_p5), 1, %s2427_s20  }
  0x22   : > { %s2241_s14 = sshll.u32 (%p2508_p5), %s2431_s21, 6  ;;  %s2159_s15 = sshll.u32 (%p2508_p5), %s311_s13, 5 }
  0x23   : > { %s2555_s23 = scalar_lea.vmem (%p2508_p5), %s3255_s2, %s2241_s14  ;;  %s313_s25 = scalar_lea.vmem (%p2508_p5), [#allocation3], %s2159_s15 }
  0x24   : > { %v2162_v16 = vld [vmem:[%s2555_s23 + $0x2] sm:$0x3] (%p2508_p5)  ;;  %v2163_v17 = vld [vmem:[%s2555_s23 + $0x6] sm:$0x3] (%p2508_p5)  ;;  %v2164_v18 = vld [vmem:[%s2555_s23 + $0xa] sm:$0x3] (%p2508_p5) }
  0x25   : > { %334 = vst [vmem:[%s313_s25] sm:$0x3] (%p2508_p5), %v2162_v16  ;;  %336 = vst [vmem:[%s313_s25 + $0x2] sm:$0x3] (%p2508_p5), %v2163_v17  ;;  %v2165_v19 = vld [vmem:[%s2555_s23 + $0xe] sm:$0x3] (%p2508_p5) }
  0x26   : > { %v2166_v20 = vld [vmem:[%s2555_s23 + $0x12] sm:$0x3] (%p2508_p5)  ;;  %338 = vst [vmem:[%s313_s25 + $0x4] sm:$0x3] (%p2508_p5), %v2164_v18  ;;  %340 = vst [vmem:[%s313_s25 + $0x6] sm:$0x3] (%p2508_p5), %v2165_v19 }
  0x27   : > { %342 = vst [vmem:[%s313_s25 + $0x8] sm:$0x3] (%p2508_p5), %v2166_v20  ;;  %v2167_v21 = vld [vmem:[%s2555_s23 + $0x16] sm:$0x3] (%p2508_p5)  ;;  %v2168_v22 = vld [vmem:[%s2555_s23 + $0x1a] sm:$0x3] (%p2508_p5) }
  0x28   : > { %v2169_v23 = vld [vmem:[%s2555_s23 + $0x1e] sm:$0x3]  ;;  %344 = vst [vmem:[%s313_s25 + $0xa] sm:$0x3] %v2167_v21  ;;  %346 = vst [vmem:[%s313_s25 + $0xc] sm:$0x3] %v2168_v22 }
  0x29   : > { %348 = vst [vmem:[%s313_s25 + $0xe] sm:$0x3] %v2169_v23  ;;  %v2170_v24 = vld [vmem:[%s2555_s23 + $0x22] sm:$0x3]  ;;  %v2171_v25 = vld [vmem:[%s2555_s23 + $0x26] sm:$0x3] }
  0x2a   : > { %v2172_v26 = vld [vmem:[%s2555_s23 + $0x2a] sm:$0x3]  ;;  %350 = vst [vmem:[%s313_s25 + $0x10] sm:$0x3] %v2170_v24  ;;  %352 = vst [vmem:[%s313_s25 + $0x12] sm:$0x3] %v2171_v25 }
  0x2b   : > { %354 = vst [vmem:[%s313_s25 + $0x14] sm:$0x3] %v2172_v26  ;;  %v2173_v27 = vld [vmem:[%s2555_s23 + $0x2e] sm:$0x3]  ;;  %v2174_v28 = vld [vmem:[%s2555_s23 + $0x32] sm:$0x3] }
  0x2c   : > { %v2175_v29 = vld [vmem:[%s2555_s23 + $0x36] sm:$0x3]  ;;  %356 = vst [vmem:[%s313_s25 + $0x16] sm:$0x3] %v2173_v27  ;;  %358 = vst [vmem:[%s313_s25 + $0x18] sm:$0x3] %v2174_v28 }
  0x2d   : > { %360 = vst [vmem:[%s313_s25 + $0x1a] sm:$0x3] %v2175_v29  ;;  %v2176_v30 = vld [vmem:[%s2555_s23 + $0x3a] sm:$0x3]  ;;  %v2177_v31 = vld [vmem:[%s2555_s23 + $0x3e] sm:$0x3] }
  0x2e   : > { %362 = vst [vmem:[%s313_s25 + $0x1c] sm:$0x3] %v2176_v30  ;;  %364 = vst [vmem:[%s313_s25 + $0x1e] sm:$0x3] %v2177_v31 }
  0x2f PF: > { %p2178_p10 = scmp.ge.s32.totalorder %s2431_s21, 1  ;;  %p425_p11 = scmp.lt.s32.totalorder %s2431_s21, 3 }
  0x31   : > { %p426_p12 = pnand %p2178_p10, %p425_p11 }
  0x32   : > { %s432_s26 = sand.u32 (!%p426_p12), 1, %s2423_s19   ;;  %v3259_v32 = vmov (!%p426_p12), 0.0   ;;  %vm2434_vm0 = vmmov (!%p426_p12), 0   ;;  %vm613_vm1 = vcmask (!%p426_p12), 1041409   ;;  %p484_p13 = scmp.lt.s32.totalorder (!%p426_p12), %s2490_s22, 1  ;;  %vm616_vm2 = vcmask (!%p426_p12), 1042434  }
  0x33   : > { %429 = sbr.rel (%p426_p12) target bundleno = 1401 (0x579), region = 110  ;;  %2261 = vmatprep.subr.bf16.mxu0 (!%p426_p12), %v3259_v32  ;;  %s2579_s28 = sshll.u32 (!%p426_p12), %s432_s26, 5  ;;  %2267 = vmatprep.subr.bf16.mxu1 (!%p426_p12), %v3259_v32  ;;  %vm619_vm3 = vcmask (!%p426_p12), 1043459   ;;  %vm622_vm4 = vcmask (!%p426_p12), 1044484   ;;  %vm625_vm5 = vcmask (!%p426_p12), 1045509   ;;  %vm628_vm6 = vcmask (!%p426_p12), 1046534  }
  0x34   : > { %s2583_s6 = scalar_lea.vmem (!%p426_p12), [#allocation2], %s2579_s28  ;;  %2263 = vmatprep.mubr.msk.bf16.mxu0 (!%p426_p12), %vm2434_vm0, %v3259_v32  ;;  %2269 = vmatprep.mubr.msk.bf16.mxu1 (!%p426_p12), %vm2434_vm0, %v3259_v32  ;;  %vm631_vm7 = vcmask (!%p426_p12), 1047559   ;;  %vm807_vm8 = vcmask (!%p426_p12), 64512   ;;  %vm857_vm10 = vcmask (!%p426_p12), 130048   ;;  %s2740_s16 = scalar_lea.vmem (!%p426_p12), [#allocation3], %s2579_s28 }
  0x35   : > { %v2195_v33 = vld.sshfl [vmem:[%s2583_s6] sm:$0x3 pattern:$0x76325410] (!%p426_p12)  ;;  %s2924_s17 = scalar_lea.vmem (!%p426_p12), [#allocation4], %s2579_s28  ;;  %s2244_s23 = sshll.u32 (!%p426_p12), %s2490_s22, 9 }
  0x36   : > { %v2196_v34 = vld.sshfl [vmem:[%s2583_s6 + $0x2] sm:$0x3 pattern:$0x76325410] (!%p426_p12)  ;;  %v2592_v36 = vunpack.c.l.b16 (!%p426_p12), %v2195_v33  ;;  %s2016_s9 = sshll.u32 (!%p426_p12), %s2924_s17, 4  ;;  %s3119_s10 = scalar_lea.sflag (!%p426_p12), [#allocation5], %s432_s26  ;;  %s3115_s9 = int_to_ptr.vmem [resolvable:$true] %s2016_s9 }
  0x37   : > { %v2197_v35 = vld.sshfl [vmem:[%s2583_s6 + $0x4] sm:$0x3 pattern:$0x76325410] (!%p426_p12)  ;;  %v2594_v37 = vunpack.c.l.b16 (!%p426_p12), %v2196_v34 }
  0x38   : > { %v2198_v38 = vld.sshfl [vmem:[%s2583_s6 + $0x6] sm:$0x3 pattern:$0x76325410] (!%p426_p12)  ;;  %v2597_v39 = vunpack.c.l.b16 (!%p426_p12), %v2197_v35 }
  0x39   : > { %v2199_v40 = vld.sshfl [vmem:[%s2583_s6 + $0x8] sm:$0x3 pattern:$0x76325410] (!%p426_p12)  ;;  %v2601_v41 = vunpack.c.l.b16 (!%p426_p12), %v2198_v38  ;;  %v778_v42 = vrot.slane (!%p426_p12), %v2594_v37, 7 }
  0x3a   : > { %v2200_v43 = vld.sshfl [vmem:[%s2583_s6 + $0xa] sm:$0x3 pattern:$0x76325410]  ;;  %v2605_v44 = vunpack.c.l.b16 %v2199_v40  ;;  %v780_v45 = vrot.slane %v2597_v39, 6  ;;  %s2622_s7 = scalar_select %p484_p13, %s2490_s22, 1 }
  0x3b   : > { %v2201_v46 = vld.sshfl [vmem:[%s2583_s6 + $0xc] sm:$0x3 pattern:$0x76325410]  ;;  %v2609_v47 = vunpack.c.l.b16 %v2200_v43  ;;  %v779_v48 = vsel %vm613_vm1, %v778_v42, %v2592_v36  ;;  %v782_v49 = vrot.slane %v2601_v41, 5  ;;  %s2435_s22 = smov [#allocation4]  }
  0x3c   : > { %v2202_v50 = vld.sshfl [vmem:[%s2583_s6 + $0xe] sm:$0x3 pattern:$0x76325410]  ;;  %v2615_v51 = vunpack.c.l.b16 %v2201_v46  ;;  %v781_v52 = vsel %vm616_vm2, %v780_v45, %v779_v48  ;;  %v784_v53 = vrot.slane %v2605_v44, 4  ;;  %s2242_s8 = sshll.u32 %s2622_s7, 4 }
  0x3d   : > { %v2203_v54 = vld.sshfl [vmem:[%s2583_s6 + $0x10] sm:$0x3 pattern:$0x76325410]  ;;  %v783_v55 = vsel %vm619_vm3, %v782_v49, %v781_v52  ;;  %v786_v56 = vrot.slane %v2609_v47, 3  ;;  %v2628_v58 = vunpack.c.l.b16 %v2202_v50  ;;  %s2663_s11 = scalar_lea.vmem %s3253_s0, %s2242_s8  ;;  %s2184_s12 = sshll.u32 %s2622_s7, 3 }
  0x3e   : > { %v2204_v57 = vld.sshfl [vmem:[%s2583_s6 + $0x12] sm:$0x3 pattern:$0x76325410]  ;;  %v785_v59 = vsel %vm622_vm4, %v784_v53, %v783_v55  ;;  %v2632_v61 = vunpack.c.l.b16 %v2203_v54  ;;  %v788_v63 = vrot.slane %v2615_v51, 2  ;;  %s492_s15 = scalar_lea.vmem %s3256_s3, %s2184_s12  ;;  %s2373_s12 = sshll.u32 %s2435_s22, 4  ;;  %s2374_s12 = int_to_ptr.vmem [resolvable:$false] %s2373_s12 }
  0x3f   : > { %v2205_v60 = vld.sshfl [vmem:[%s2583_s6 + $0x14] sm:$0x3 pattern:$0x76325410]  ;;  %v2634_v62 = vunpack.c.l.b16 %v2204_v57  ;;  %v787_v2 = vsel %vm625_vm5, %v786_v56, %v785_v59  ;;  %v790_v8 = vrot.slane %v2628_v58, 1  ;;  %s2375_s13 = scalar_lea.vmem %s2374_s12, 1024  ;;  %p2376_p3 = scmp.lt.s32.totalorder %s3115_s9, %s2374_s12 }
  0x40   : > { %v2206_v0 = vld.sshfl [vmem:[%s2583_s6 + $0x16] sm:$0x3 pattern:$0x76325410]  ;;  %v2638_v1 = vunpack.c.l.b16 %v2205_v60  ;;  %v789_v12 = vsel %vm628_vm6, %v788_v63, %v787_v2 }
  0x41   : > { %v2207_v3 = vld.sshfl [vmem:[%s2583_s6 + $0x18] sm:$0x3 pattern:$0x76325410]  ;;  %v2643_v4 = vunpack.c.l.b16 %v2206_v0  ;;  %v792_v5 = vrot.slane %v2634_v62, 7  ;;  %v791_v23 = vsel %vm631_vm7, %v790_v8, %v789_v12 }
  0x42   : > { %v2208_v6 = vld.sshfl [vmem:[%s2583_s6 + $0x1a] sm:$0x3 pattern:$0x76325410]  ;;  %v2647_v7 = vunpack.c.l.b16 %v2207_v3  ;;  %v794_v9 = vrot.slane %v2638_v1, 6 }
  0x43   : > { %v2209_v10 = vld.sshfl [vmem:[%s2583_s6 + $0x1c] sm:$0x3 pattern:$0x76325410]  ;;  %v2652_v11 = vunpack.c.l.b16 %v2208_v6  ;;  %v793_v13 = vsel %vm613_vm1, %v792_v5, %v2632_v61  ;;  %v796_v14 = vrot.slane %v2643_v4, 5 }
  0x44   : > { %v2210_v15 = vld.sshfl [vmem:[%s2583_s6 + $0x1e] sm:$0x3 pattern:$0x76325410]  ;;  %v2666_v16 = vunpack.c.l.b16 %v2209_v10  ;;  %v795_v17 = vsel %vm616_vm2, %v794_v9, %v793_v13  ;;  %v798_v18 = vrot.slane %v2647_v7, 4  ;;  %v2729_v13 = vld [vmem:[%s492_s15] sm:$0xff]  ;;  %s3112_s6 = scalar_lea.hbm %s3258_s5, %s2244_s23 }
  0x45   : > { %v2670_v19 = vunpack.c.l.b16 %v2210_v15  ;;  %v797_v20 = vsel %vm619_vm3, %v796_v14, %v795_v17  ;;  %v800_v21 = vrot.slane %v2652_v11, 3  ;;  %v2187_v22 = vld.sshfl [vmem:[%s2663_s11] sm:$0x3 pattern:$0x76325410]  ;;  %vm855_vm9 = vcmp.eq.f32.partialorder %v2729_v13, 0.0 }
  0x46   : > { %v799_v24 = vsel %vm622_vm4, %v798_v18, %v797_v20  ;;  %v802_v25 = vrot.slane %v2666_v16, 2  ;;  %v2188_v26 = vld.sshfl [vmem:[%s2663_s11 + $0x2] sm:$0x3 pattern:$0x76325410]  ;;  %v2682_v30 = vunpack.c.l.b16 %v2187_v22 }
  0x47   : > { %v801_v27 = vsel %vm625_vm5, %v800_v21, %v799_v24  ;;  %v804_v28 = vrot.slane %v2670_v19, 1  ;;  %v2189_v29 = vld.sshfl [vmem:[%s2663_s11 + $0x4] sm:$0x3 pattern:$0x76325410]  ;;  %v2684_v31 = vunpack.c.l.b16 %v2188_v26 }
  0x48   : > { %v803_v33 = vsel %vm628_vm6, %v802_v25, %v801_v27  ;;  %v2190_v34 = vld.sshfl [vmem:[%s2663_s11 + $0x6] sm:$0x3 pattern:$0x76325410]  ;;  %v2688_v35 = vunpack.c.l.b16 %v2189_v29 }
  0x49   : > { %v805_v38 = vsel %vm631_vm7, %v804_v28, %v803_v33  ;;  %v2191_v40 = vld.sshfl [vmem:[%s2663_s11 + $0x8] sm:$0x3 pattern:$0x76325410]  ;;  %v2692_v42 = vunpack.c.l.b16 %v2190_v34  ;;  %v612_v43 = vrot.slane %v2684_v31, 7 }
  0x4a   : > { %v806_v45 = vpack.c.b16 %v805_v38, %v791_v23  ;;  %v2192_v46 = vld.sshfl [vmem:[%s2663_s11 + $0xa] sm:$0x3 pattern:$0x76325410]  ;;  %v2696_v48 = vunpack.c.l.b16 %v2191_v40  ;;  %v615_v49 = vrot.slane %v2688_v35, 6 }
  0x4b   : > { %v2193_v50 = vld.sshfl [vmem:[%s2663_s11 + $0xc] sm:$0x3 pattern:$0x76325410]  ;;  %v2700_v52 = vunpack.c.l.b16 %v2192_v46  ;;  %v614_v53 = vsel %vm613_vm1, %v612_v43, %v2682_v30  ;;  %v618_v54 = vrot.slane %v2692_v42, 5 }
  0x4c   : > { %v812_v55 = vsel %vm807_vm8, %v806_v45, 0  ;;  %v2194_v56 = vld.sshfl [vmem:[%s2663_s11 + $0xe] sm:$0x3 pattern:$0x76325410]  ;;  %v2707_v57 = vunpack.c.l.b16 %v2193_v50  ;;  %v617_v59 = vsel %vm616_vm2, %v615_v49, %v614_v53  ;;  %v621_v60 = vrot.slane %v2696_v48, 4 }
  0x4d   : > { %2262 = vmatpush3.bf16.xpose.msra.mxu0 %v812_v55  ;;  %v2711_v63 = vunpack.c.l.b16 %v2194_v56  ;;  %v620_v0 = vsel %vm619_vm3, %v618_v54, %v617_v59  ;;  %v624_v2 = vrot.slane %v2700_v52, 3  ;;  %v2213_v28 = vld.sshfl [vmem:[%s2740_s16 + $0x2] sm:$0x3 pattern:$0x76325410]  ;;  %s2369_s11 = scalar_lea.vmem %s3115_s9, 512 }
  0x4e   : > { %v623_v3 = vsel %vm622_vm4, %v621_v60, %v620_v0  ;;  %v627_v5 = vrot.slane %v2707_v57, 2  ;;  %2279 = vmatprep.subr.bf16.mxu0 %v3259_v32  ;;  %v2214_v29 = vld.sshfl [vmem:[%s2740_s16 + $0x4] sm:$0x3 pattern:$0x76325410]  ;;  %v2744_v33 = vunpack.c.l.b16 %v2213_v28  ;;  %p2370_p0 = scmp.ne.s32.totalorder %s3115_s9, %s2369_s11  ;;  %p2377_p4 = scmp.lt.s32.totalorder %s2375_s13, %s2369_s11 }
  0x4f   : > { %v626_v6 = vsel %vm625_vm5, %v624_v2, %v623_v3  ;;  %v630_v8 = vrot.slane %v2711_v63, 1  ;;  %v2212_v34 = vld.sshfl [vmem:[%s2740_s16] sm:$0x3 pattern:$0x76325410]  ;;  %v2747_v38 = vunpack.c.l.b16 %v2214_v29 }
  0x50   : > { %v629_v9 = vsel %vm628_vm6, %v627_v5, %v626_v6  ;;  %v2215_v40 = vld.sshfl [vmem:[%s2740_s16 + $0x6] sm:$0x3 pattern:$0x76325410]  ;;  %v2750_v43 = vunpack.c.l.b16 %v2212_v34  ;;  %v1014_v45 = vrot.slane %v2744_v33, 7  ;;  %p2371_p1 = pnand %p2370_p0, %p2512_p6  ;;  %p2378_p5 = por %p2377_p4, %p2376_p3 }
  0x51   : > { %v632_v10 = vsel %vm631_vm7, %v630_v8, %v629_v9  ;;  %v2216_v46 = vld.sshfl [vmem:[%s2740_s16 + $0x8] sm:$0x3 pattern:$0x76325410]  ;;  %v2754_v49 = vunpack.c.l.b16 %v2215_v40  ;;  %v1016_v50 = vrot.slane %v2747_v38, 6 }
  0x52   : > { %v633_v12 = vpack.c.b16 %v632_v10, %v632_v10  ;;  %v2217_v53 = vld.sshfl [vmem:[%s2740_s16 + $0xa] sm:$0x3 pattern:$0x76325410]  ;;  %v2758_v54 = vunpack.c.l.b16 %v2216_v46  ;;  %v1015_v55 = vsel %vm613_vm1, %v1014_v45, %v2750_v43  ;;  %p2372_p2 = pneg %p2371_p1 }
  0x53   : > { %v2218_v56 = vld.sshfl [vmem:[%s2740_s16 + $0xc] sm:$0x3 pattern:$0x76325410]  ;;  %v2763_v59 = vunpack.c.l.b16 %v2217_v53  ;;  %v1017_v60 = vsel %vm616_vm2, %v1016_v50, %v1015_v55  ;;  %v1018_v0 = vrot.slane %v2754_v49, 5 }
  0x54   : > { %2264 = vmatmul.mubr.msk.bf16.vlgmr.msra.gmra.mrb[0].mxu0 %vm807_vm8, %v633_v12  ;;  %v2219_v2 = vld.sshfl [vmem:[%s2740_s16 + $0xe] sm:$0x3 pattern:$0x76325410]  ;;  %v2768_v3 = vunpack.c.l.b16 %v2218_v56  ;;  %v1020_v5 = vrot.slane %v2758_v54, 4  ;;  %p2379_p7 = pnand %p2378_p5, %p2372_p2 }
  0x55   : > { %2281 = vmatprep.mubr.msk.bf16.mxu0 %vm2434_vm0, %v3259_v32  ;;  %v2220_v6 = vld.sshfl [vmem:[%s2740_s16 + $0x10] sm:$0x3 pattern:$0x76325410]  ;;  %v1019_v8 = vsel %vm619_vm3, %v1018_v0, %v1017_v60  ;;  %v1022_v9 = vrot.slane %v2763_v59, 3 }
  0x56   : > { %v2221_v10 = vld.sshfl [vmem:[%s2740_s16 + $0x12] sm:$0x3 pattern:$0x76325410]  ;;  %v1021_v12 = vsel %vm622_vm4, %v1020_v5, %v1019_v8 }
  0x57   : > { %v2225_v28 = vld.sshfl [vmem:[%s2740_s16 + $0x1a] sm:$0x3 pattern:$0x76325410] }
  0x58   : > { %v2226_v40 = vld.sshfl [vmem:[%s2740_s16 + $0x1c] sm:$0x3 pattern:$0x76325410]  ;;  %v2797_v45 = vunpack.c.l.b16 %v2225_v28  ;;  %v1116_v28 = vrot.slane %v2632_v61, 1 }
  0x59   : > { %v2227_v55 = vld.sshfl [vmem:[%s2740_s16 + $0x1e] sm:$0x3 pattern:$0x76325410]  ;;  %v2804_v56 = vunpack.c.l.b16 %v2226_v40  ;;  %v1118_v40 = vrot.slane %v2638_v1, 7 }
  0x5a   : > { %v2809_v5 = vunpack.c.l.b16 %v2227_v55  ;;  %v1036_v8 = vrot.slane %v2797_v45, 3  ;;  %v1120_v55 = vrot.slane %v2643_v4, 6 }
 0x127   : > { %v848_v14 = vpop.f32.mrb[0].mxu0 }
 0x128   : > { %v854_v15 = vmul.f32 0.35355338, %v848_v14  ;;  %v2265_v17 = vpop.f32.mrb[1].mxu0 }
 0x129   : > { %v851_v18 = vpop.f32.mrb[2].mxu0  ;;  %v2222_v14 = vld.sshfl [vmem:[%s2740_s16 + $0x14] sm:$0x3 pattern:$0x76325410]  ;;  %v2779_v17 = vunpack.c.l.b16 %v2220_v6 }
 0x12a   : > { %v2266_v20 = vpop.f32.mrb[3].mxu0  ;;  %v856_v21 = vsel %vm855_vm9, -1e+09, %v854_v15  ;;  %v2777_v15 = vunpack.c.l.b16 %v2219_v2  ;;  %v2781_v18 = vunpack.c.l.b16 %v2221_v10  ;;  %v1038_v10 = vrot.slane %v2804_v56, 2 }
 0x12b   : > { %v858_v22 = vsel %vm857_vm10, %v856_v21, -inf  ;;  %v2223_v20 = vld.sshfl [vmem:[%s2740_s16 + $0x16] sm:$0x3 pattern:$0x76325410] }
 0x12c   : > { %859 = vmax.xlane.f32.xlu0 %v858_v22  ;;  %v1024_v22 = vrot.slane %v2768_v3, 2  ;;  %v1026_v46 = vrot.slane %v2777_v15, 1 }
 0x1b9   : > { %v860_v23 = vpop.xlane.xlu0 %859 }
 0x1ba   : > { %v861_v24 = vsub.f32 %v856_v21, %v860_v23  ;;  %v2784_v21 = vunpack.c.l.b16 %v2222_v14  ;;  %v2224_v23 = vld.sshfl [vmem:[%s2740_s16 + $0x18] sm:$0x3 pattern:$0x76325410] }
 0x1bb   : > { %v2793_v29 = vunpack.c.l.b16 %v2224_v23 }
 0x1bc   : > { %v862_v25 = vmul.f32 1.442695, %v861_v24  ;;  %v2788_v24 = vunpack.c.l.b16 %v2223_v20  ;;  %v1030_v34 = vrot.slane %v2784_v21, 6  ;;  %v1040_v20 = vrot.slane %v2809_v5, 1 }
 0x1bd   : > { %v1034_v2 = vrot.slane %v2793_v29, 4 }
 0x1be   : > { %2353 = vpow2.f32 %v862_v25  ;;  %v1023_v25 = vsel %vm625_vm5, %v1022_v9, %v1021_v12  ;;  %v1032_v53 = vrot.slane %v2788_v24, 5 }
 0x1bf   : > { %v1025_v60 = vsel %vm628_vm6, %v1024_v22, %v1023_v25 }
 0x1c0   : > { %v1027_v12 = vsel %vm631_vm7, %v1026_v46, %v1025_v60 }
 0x1c8   : > { %v2735_v26 = vpop.eup %2353 }
 0x1c9   : > { %v864_v27 = vsel %vm857_vm10, %v2735_v26, 0.0 }
 0x1ca   : > { %865 = vadd.xlane.f32.xlu0 %v864_v27  ;;  %v1028_v27 = vrot.slane %v2781_v18, 7 }
 0x1cc   : > { %v1029_v50 = vsel %vm613_vm1, %v1028_v27, %v2779_v17  ;;  %v1102_v27 = vrot.slane %v2592_v36, 1 }
 0x1cd   : > { %v1031_v0 = vsel %vm616_vm2, %v1030_v34, %v1029_v50  ;;  %v1104_v34 = vrot.slane %v2597_v39, 7  ;;  %v1117_v50 = vsel %vm613_vm1, %v2634_v62, %v1116_v28  ;;  %v1126_v28 = vrot.slane %v2666_v16, 3 }
 0x1ce   : > { %v1033_v6 = vsel %vm619_vm3, %v1032_v53, %v1031_v0  ;;  %v1103_v46 = vsel %vm613_vm1, %v2594_v37, %v1102_v27  ;;  %v1106_v53 = vrot.slane %v2601_v41, 6  ;;  %v1119_v0 = vsel %vm616_vm2, %v1118_v40, %v1117_v50 }
 0x1cf   : > { %v1035_v9 = vsel %vm622_vm4, %v1034_v2, %v1033_v6  ;;  %v1105_v60 = vsel %vm616_vm2, %v1104_v34, %v1103_v46  ;;  %v1108_v2 = vrot.slane %v2605_v44, 5  ;;  %v1122_v6 = vrot.slane %v2647_v7, 5 }
 0x1d0   : > { %v1037_v14 = vsel %vm625_vm5, %v1036_v8, %v1035_v9  ;;  %v1107_v8 = vsel %vm619_vm3, %v1106_v53, %v1105_v60  ;;  %v1121_v9 = vsel %vm619_vm3, %v1120_v55, %v1119_v0  ;;  %v1089_v34 = vrot.slane %v2688_v35, 7 }
 0x1d1   : > { %v1039_v22 = vsel %vm628_vm6, %v1038_v10, %v1037_v14  ;;  %v1110_v10 = vrot.slane %v2609_v47, 4  ;;  %v1109_v14 = vsel %vm622_vm4, %v1108_v2, %v1107_v8  ;;  %v1279_v40 = vrot.slane %v2592_v36, 2 }
 0x1d2   : > { %v1041_v23 = vsel %vm631_vm7, %v1040_v20, %v1039_v22  ;;  %v1123_v20 = vsel %vm622_vm4, %v1122_v6, %v1121_v9  ;;  %v1087_v22 = vrot.slane %v2682_v30, 1  ;;  %v1280_v46 = vrot.slane %v2594_v37, 1 }
 0x1d3   : > { %v1042_v25 = vpack.c.b16 %v1041_v23, %v1027_v12  ;;  %v1124_v12 = vrot.slane %v2652_v11, 4  ;;  %v1112_v23 = vrot.slane %v2615_v51, 3  ;;  %v1293_v50 = vrot.slane %v2632_v61, 2 }
 0x1d4   : > { %v1294_v53 = vrot.slane %v2634_v62, 1  ;;  %v1114_v55 = vrot.slane %v2628_v58, 2  ;;  %v1088_v60 = vsel %vm613_vm1, %v2684_v31, %v1087_v22  ;;  %v1128_v2 = vrot.slane %v2670_v19, 2 }
 0x1d5   : > { %2268 = vmatpush3.bf16.msra.mxu1 %v1042_v25  ;;  %v1111_v25 = vsel %vm625_vm5, %v1110_v10, %v1109_v14  ;;  %v1125_v27 = vsel %vm625_vm5, %v1124_v12, %v1123_v20  ;;  %v1091_v8 = vrot.slane %v2692_v42, 6  ;;  %v1090_v9 = vsel %vm616_vm2, %v1089_v34, %v1088_v60 }
 0x1d6   : > { %2273 = vmatprep.subr.bf16.mxu1 %v3259_v32  ;;  %v1113_v0 = vsel %vm628_vm6, %v1112_v23, %v1111_v25  ;;  %v1127_v6 = vsel %vm628_vm6, %v1126_v28, %v1125_v27  ;;  %v1281_v10 = vsel %vm613_vm1, %v1280_v46, %v1279_v40  ;;  %v1295_v12 = vsel %vm613_vm1, %v1294_v53, %v1293_v50 }
 0x1d7   : > { %v1115_v14 = vsel %vm631_vm7, %v1114_v55, %v1113_v0  ;;  %v1129_v20 = vsel %vm631_vm7, %v1128_v2, %v1127_v6  ;;  %v1093_v22 = vrot.slane %v2696_v48, 5  ;;  %v1283_v23 = vrot.slane %v2601_v41, 7 }
 0x1d8   : > { %v1297_v25 = vrot.slane %v2643_v4, 7  ;;  %v1092_v27 = vsel %vm619_vm3, %v1091_v8, %v1090_v9  ;;  %v1282_v28 = vsel %vm616_vm2, %v2597_v39, %v1281_v10  ;;  %v1296_v34 = vsel %vm616_vm2, %v2638_v1, %v1295_v12 }
 0x1d9   : > { %v1456_v40 = vrot.slane %v2592_v36, 3  ;;  %v1457_v46 = vrot.slane %v2594_v37, 2  ;;  %v1470_v50 = vrot.slane %v2632_v61, 3  ;;  %v1471_v53 = vrot.slane %v2634_v62, 2 }
 0x1da   : > { %v1095_v55 = vrot.slane %v2700_v52, 4  ;;  %v1285_v60 = vrot.slane %v2605_v44, 6  ;;  %v1299_v0 = vrot.slane %v2647_v7, 6  ;;  %v1284_v2 = vsel %vm619_vm3, %v1283_v23, %v1282_v28 }
 0x1db   : > { %v1298_v6 = vsel %vm619_vm3, %v1297_v25, %v1296_v34  ;;  %v1264_v8 = vrot.slane %v2682_v30, 2  ;;  %v1130_v36 = vpack.c.b16 %v1129_v20, %v1115_v14  ;;  %v1094_v37 = vsel %vm622_vm4, %v1093_v22, %v1092_v27 }
 0x1dc   : > { %v1459_v61 = vrot.slane %v2597_v39, 1  ;;  %v1473_v62 = vrot.slane %v2638_v1, 1  ;;  %v1287_v9 = vrot.slane %v2609_v47, 5  ;;  %v1301_v10 = vrot.slane %v2652_v11, 5 }
 0x1dd   : > { %v1458_v12 = vsel %vm613_vm1, %v1457_v46, %v1456_v40  ;;  %v1472_v23 = vsel %vm613_vm1, %v1471_v53, %v1470_v50  ;;  %v1097_v25 = vrot.slane %v2707_v57, 3  ;;  %v1286_v28 = vsel %vm622_vm4, %v1285_v60, %v1284_v2 }
 0x1de   : > { %v1300_v14 = vsel %vm622_vm4, %v1299_v0, %v1298_v6  ;;  %v1096_v20 = vsel %vm625_vm5, %v1095_v55, %v1094_v37  ;;  %v1099_v39 = vrot.slane %v2711_v63, 2  ;;  %v1289_v1 = vrot.slane %v2615_v51, 4 }
 0x1df   : > { %v1291_v27 = vrot.slane %v2628_v58, 3  ;;  %v1303_v34 = vrot.slane %v2666_v16, 4  ;;  %v1460_v40 = vsel %vm616_vm2, %v1459_v61, %v1458_v12  ;;  %v1474_v46 = vsel %vm616_vm2, %v1473_v62, %v1472_v23 }
 0x1e0   : > { %v1135_v50 = vsel %vm807_vm8, %v1130_v36, 0  ;;  %v1288_v53 = vsel %vm625_vm5, %v1287_v9, %v1286_v28  ;;  %v1302_v55 = vsel %vm625_vm5, %v1301_v10, %v1300_v14  ;;  %v1268_v60 = vrot.slane %v2692_v42, 7 }
 0x1e1   : > { %v1305_v0 = vrot.slane %v2670_v19, 3  ;;  %v1462_v6 = vrot.slane %v2605_v44, 7  ;;  %v1461_v36 = vsel %vm619_vm3, %v2601_v41, %v1460_v40  ;;  %v1475_v37 = vsel %vm619_vm3, %v2643_v4, %v1474_v46 }
 0x1e2   : > { %v1441_v61 = vrot.slane %v2682_v30, 3  ;;  %v1442_v62 = vrot.slane %v2684_v31, 2  ;;  %v1290_v10 = vsel %vm628_vm6, %v1289_v1, %v1288_v53  ;;  %v1304_v44 = vsel %vm628_vm6, %v1303_v34, %v1302_v55 }
 0x1e3   : > { %v1270_v12 = vrot.slane %v2696_v48, 6  ;;  %v1464_v41 = vrot.slane %v2609_v47, 6  ;;  %v1478_v4 = vrot.slane %v2652_v11, 6  ;;  %v1463_v30 = vsel %vm622_vm4, %v1462_v6, %v1461_v36 }
 0x1e4   : > { %v1306_v14 = vsel %vm631_vm7, %v1305_v0, %v1304_v44  ;;  %v1272_v47 = vrot.slane %v2700_v52, 5  ;;  %v1443_v11 = vsel %vm613_vm1, %v1442_v62, %v1441_v61  ;;  %v1466_v1 = vrot.slane %v2615_v51, 5 }
 0x1e5   : > { %v3264_v34 = vmov 0.0   ;;  %v1274_v53 = vrot.slane %v2707_v57, 4  ;;  %v1276_v6 = vrot.slane %v2711_v63, 3  ;;  %v1451_v62 = vrot.slane %v2707_v57, 5 }
 0x257   : > { %v866_v32 = vpop.xlane.xlu0 %865 }
 0x258   : > { %2355 = vrcp.f32 %v866_v32  ;;  %v1265_v32 = vrot.slane %v2684_v31, 1 }
 0x25a   : > { %v1266_v22 = vsel %vm613_vm1, %v1265_v32, %v1264_v8  ;;  %v1476_v8 = vrot.slane %v2647_v7, 7  ;;  %v1098_v7 = vsel %vm628_vm6, %v1097_v25, %v1096_v20  ;;  %v1292_v25 = vsel %vm631_vm7, %v1291_v27, %v1290_v10 }
 0x25b   : > { %v1267_v2 = vsel %vm616_vm2, %v2688_v35, %v1266_v22  ;;  %v1480_v22 = vrot.slane %v2666_v16, 5  ;;  %v1465_v27 = vsel %vm625_vm5, %v1464_v41, %v1463_v30  ;;  %v1307_v46 = vpack.c.b16 %v1306_v14, %v1292_v25 }
 0x25c   : > { %v1269_v23 = vsel %vm619_vm3, %v1268_v60, %v1267_v2  ;;  %v1477_v31 = vsel %vm622_vm4, %v1476_v8, %v1475_v37  ;;  %v1468_v16 = vrot.slane %v2628_v58, 4  ;;  %v1447_v2 = vrot.slane %v2696_v48, 7 }
 0x25d   : > { %v1271_v20 = vsel %vm622_vm4, %v1270_v12, %v1269_v23  ;;  %v1479_v40 = vsel %vm625_vm5, %v1478_v4, %v1477_v31  ;;  %v1449_v37 = vrot.slane %v2700_v52, 6  ;;  %v1453_v52 = vrot.slane %v2711_v63, 4 }
 0x25e   : > { %v1273_v51 = vsel %vm625_vm5, %v1272_v47, %v1271_v20  ;;  %v1481_v0 = vsel %vm628_vm6, %v1480_v22, %v1479_v40 }
 0x25f   : > { %v1275_v36 = vsel %vm628_vm6, %v1274_v53, %v1273_v51 }
 0x262   : > { %v2356_v32 = vpop.eup %2355 }
 0x263   : > { %v868_v9 = vmul.f32 %v2356_v32, %v2735_v26  ;;  %v1444_v26 = vrot.slane %v2688_v35, 1  ;;  %v1100_v35 = vsel %vm631_vm7, %v1099_v39, %v1098_v7  ;;  %v1467_v39 = vsel %vm628_vm6, %v1466_v1, %v1465_v27 }
 0x264   : > { %v1101_v60 = vpack.c.b16 %v1100_v35, %v1100_v35  ;;  %v1312_v32 = vsel %vm807_vm8, %v1307_v46, 0  ;;  %v1469_v58 = vsel %vm631_vm7, %v1468_v16, %v1467_v39 }
 0x265   : > { %v869_v28 = vpack.c.bf16 %v868_v9, %v868_v9  ;;  %1990 = vst.msk [vmem:[%s2924_s17] sm:$0xff] %vm857_vm10, %v868_v9  ;;  %v1445_v55 = vsel %vm616_vm2, %v1444_v26, %v1443_v11 }
 0x266   : > { %v1446_v8 = vsel %vm619_vm3, %v2692_v42, %v1445_v55  ;;  %v1277_v42 = vsel %vm631_vm7, %v1276_v6, %v1275_v36 }
 0x267   : > { %2270 = vmatmul.mubr.msk.bf16.vlgmr.msra.gmra.mrb[0].mxu1 %vm857_vm10, %v869_v28  ;;  %v1448_v61 = vsel %vm622_vm4, %v1447_v2, %v1446_v8  ;;  %v1278_v10 = vpack.c.b16 %v1277_v42, %v1277_v42 }
 0x268   : > { %2274 = vmatpush3.bf16.xpose.msra.mxu1 %v1135_v50  ;;  %2275 = vmatprep.mubr.msk.bf16.mxu1 %vm2434_vm0, %v3264_v34  ;;  %v1482_v50 = vrot.slane %v2670_v19, 4  ;;  %v1450_v9 = vsel %vm625_vm5, %v1449_v37, %v1448_v61 }
 0x269   : > { %2285 = vmatprep.subr.bf16.mxu1 %v3264_v34  ;;  %v1452_v12 = vsel %vm628_vm6, %v1451_v62, %v1450_v9  ;;  %v1191_v9 = vrot.slane %v2750_v43, 1 }
 0x26a   : > { %v1483_v19 = vsel %vm631_vm7, %v1482_v50, %v1481_v0  ;;  %v1454_v7 = vsel %vm631_vm7, %v1453_v52, %v1452_v12  ;;  %v1193_v52 = vrot.slane %v2747_v38, 7 }
 0x26b   : > { %v1484_v48 = vpack.c.b16 %v1483_v19, %v1469_v58  ;;  %v1455_v23 = vpack.c.b16 %v1454_v7, %v1454_v7  ;;  %v1192_v12 = vsel %vm613_vm1, %v2744_v33, %v1191_v9  ;;  %v1195_v7 = vrot.slane %v2754_v49, 6 }
 0x26c   : > { %v1374_v9 = vrot.slane %v2758_v54, 6 }
 0x26d   : > { %v1489_v44 = vsel %vm807_vm8, %v1484_v48, 0 }
 0x26f   : > { %2276 = vmatmul.mubr.msk.bf16.vlgmr.msra.gmra.mrb[4].mxu1 %vm807_vm8, %v1101_v60 }
 0x270   : > { %2286 = vmatpush3.bf16.xpose.msra.mxu1 %v1312_v32  ;;  %2287 = vmatprep.mubr.msk.bf16.mxu1 %vm2434_vm0, %v3264_v34 }
 0x271   : > { %2297 = vmatprep.subr.bf16.mxu1 %v3264_v34 }
 0x277   : > { %2288 = vmatmul.mubr.msk.bf16.vlgmr.msra.gmra.mrb[8].mxu1 %vm807_vm8, %v1278_v10  ;;  %v1205_v10 = vrot.slane %v2779_v17, 1 }
 0x278   : > { %2298 = vmatpush3.bf16.xpose.msra.mxu1 %v1489_v44  ;;  %2299 = vmatprep.mubr.msk.bf16.mxu1 %vm2434_vm0, %v3264_v34  ;;  %v1207_v44 = vrot.slane %v2784_v21, 7 }
 0x27f   : > { %2300 = vmatmul.mubr.msk.bf16.vlgmr.msra.gmra.mrb[12].mxu1 %vm807_vm8, %v1455_v23  ;;  %v1206_v23 = vsel %vm613_vm1, %v2781_v18, %v1205_v10  ;;  %v1388_v10 = vrot.slane %v2793_v29, 6 }
 0x33a   : > { %v2977_v57 = vpop.f32.mrb[0].mxu1 }
 0x33b   : > { %v2271_v41 = vpop.f32.mrb[1].mxu1 }
 0x33c   : > { %v1084_v4 = vpop.f32.mrb[2].mxu1  ;;  %v1209_v41 = vrot.slane %v2788_v24, 6 }
 0x33d   : > { %v2272_v63 = vpop.f32.mrb[3].mxu1  ;;  %v1194_v4 = vsel %vm616_vm2, %v1193_v52, %v1192_v12  ;;  %v1548_v12 = vrot.slane %v2747_v38, 1 }
 0x33e   : > { %v1197_v63 = vrot.slane %v2758_v54, 5 }
 0x342   : > { %v1171_v28 = vpop.f32.mrb[4].mxu1 }
 0x343   : > { %v1177_v30 = vmul.f32 0.35355338, %v1171_v28  ;;  %v2277_v31 = vpop.f32.mrb[5].mxu1  ;;  %v1208_v28 = vsel %vm616_vm2, %v1207_v44, %v1206_v23 }
 0x344   : > { %v1174_v26 = vpop.f32.mrb[6].mxu1  ;;  %v1196_v31 = vsel %vm619_vm3, %v1195_v7, %v1194_v4  ;;  %v1562_v7 = vrot.slane %v2784_v21, 1 }
 0x345   : > { %v2278_v25 = vpop.f32.mrb[7].mxu1  ;;  %v1178_v14 = vsel %vm855_vm9, -1e+09, %v1177_v30  ;;  %v1211_v30 = vrot.slane %v2793_v29, 5  ;;  %v1199_v26 = vrot.slane %v2763_v59, 4 }
 0x346   : > { %v1179_v47 = vsel %vm857_vm10, %v1178_v14, -inf  ;;  %v1210_v25 = vsel %vm619_vm3, %v1209_v41, %v1208_v28 }
 0x347   : > { %1180 = vmax.xlane.f32.xlu1 %v1179_v47  ;;  %v1198_v47 = vsel %vm622_vm4, %v1197_v63, %v1196_v31  ;;  %v1378_v63 = vrot.slane %v2768_v3, 4 }
 0x34a   : > { %v1348_v11 = vpop.f32.mrb[8].mxu1 }
 0x34b   : > { %v1354_v20 = vmul.f32 0.35355338, %v1348_v11  ;;  %v2289_v1 = vpop.f32.mrb[9].mxu1  ;;  %v1201_v11 = vrot.slane %v2768_v3, 3 }
 0x34c   : > { %v1351_v22 = vpop.f32.mrb[10].mxu1  ;;  %v1215_v1 = vrot.slane %v2804_v56, 3 }
 0x34d   : > { %v2290_v35 = vpop.f32.mrb[11].mxu1  ;;  %v1355_v27 = vsel %vm855_vm9, -1e+09, %v1354_v20  ;;  %v1212_v20 = vsel %vm622_vm4, %v1211_v30, %v1210_v25  ;;  %v1200_v22 = vsel %vm625_vm5, %v1199_v26, %v1198_v47  ;;  %v1551_v26 = vrot.slane %v2758_v54, 7 }
 0x34e   : > { %v1356_v40 = vsel %vm857_vm10, %v1355_v27, -inf  ;;  %v1203_v35 = vrot.slane %v2777_v15, 2  ;;  %v1565_v25 = vrot.slane %v2793_v29, 7  ;;  %v1394_v47 = vrot.slane %v2809_v5, 3 }
 0x34f   : > { %1357 = vmax.xlane.f32.xlu1 %v1356_v40  ;;  %v1217_v40 = vrot.slane %v2809_v5, 2  ;;  %v1553_v54 = vrot.slane %v2763_v59, 6  ;;  %v1567_v29 = vrot.slane %v2797_v45, 6 }
 0x352   : > { %v1525_v46 = vpop.f32.mrb[12].mxu1 }
 0x353   : > { %v1531_v53 = vmul.f32 0.35355338, %v1525_v46  ;;  %v2301_v55 = vpop.f32.mrb[13].mxu1  ;;  %v1202_v46 = vsel %vm628_vm6, %v1201_v11, %v1200_v22 }
 0x354   : > { %v1528_v51 = vpop.f32.mrb[14].mxu1  ;;  %v1204_v55 = vsel %vm631_vm7, %v1203_v35, %v1202_v46 }
 0x355   : > { %v2302_v16 = vpop.f32.mrb[15].mxu1  ;;  %v1532_v50 = vsel %vm855_vm9, -1e+09, %v1531_v53 }
 0x356   : > { %v1533_v60 = vsel %vm857_vm10, %v1532_v50, -inf }
 0x357   : > { %1534 = vmax.xlane.f32.xlu0 %v1533_v60  ;;  %v1369_v60 = vrot.slane %v2744_v33, 1 }
 0x3d4   : > { %v1181_v39 = vpop.xlane.xlu1 %1180 }
 0x3d5   : > { %v1182_v0 = vsub.f32 %v1178_v14, %v1181_v39  ;;  %v1213_v14 = vrot.slane %v2797_v45, 4  ;;  %v1382_v39 = vrot.slane %v2779_v17, 2 }
 0x3d7   : > { %v1183_v2 = vmul.f32 1.442695, %v1182_v0  ;;  %v1383_v0 = vrot.slane %v2781_v18, 1 }
 0x3d9   : > { %2357 = vpow2.f32 %v1183_v2 }
 0x3dc   : > { %v1358_v6 = vpop.xlane.xlu1 %1357 }
 0x3dd   : > { %v1359_v8 = vsub.f32 %v1355_v27, %v1358_v6  ;;  %v1214_v27 = vsel %vm625_vm5, %v1213_v14, %v1212_v20  ;;  %v1384_v6 = vsel %vm613_vm1, %v1383_v0, %v1382_v39  ;;  %v1380_v14 = vrot.slane %v2777_v15, 3 }
 0x3de   : > { %v1216_v53 = vsel %vm628_vm6, %v1215_v1, %v1214_v27  ;;  %v1571_v39 = vrot.slane %v2809_v5, 4 }
 0x3df   : > { %v1360_v32 = vmul.f32 1.442695, %v1359_v8  ;;  %v1218_v51 = vsel %vm631_vm7, %v1217_v40, %v1216_v53  ;;  %v1372_v8 = vrot.slane %v2754_v49, 7  ;;  %v1555_v53 = vrot.slane %v2768_v3, 5 }
 0x3e0   : > { %v1219_v16 = vpack.c.b16 %v1218_v51, %v1204_v55  ;;  %v1569_v55 = vrot.slane %v2804_v56, 5 }
 0x3e1   : > { %2359 = vpow2.f32 %v1360_v32  ;;  %v1386_v32 = vrot.slane %v2788_v24, 7 }
 0x3e2   : > { %2280 = vmatpush3.bf16.msra.mxu0 %v1219_v16 }
 0x3e3   : > { %v2988_v36 = vpop.eup %2357  ;;  %2291 = vmatprep.subr.bf16.mxu0 %v3264_v34 }
 0x3e4   : > { %v1535_v58 = vpop.xlane.xlu0 %1534  ;;  %v1185_v19 = vsel %vm857_vm10, %v2988_v36, 0.0 }
 0x3e5   : > { %v1536_v37 = vsub.f32 %v1532_v50, %v1535_v58  ;;  %1186 = vadd.xlane.f32.xlu1 %v1185_v19  ;;  %v1368_v50 = vrot.slane %v2750_v43, 2  ;;  %v1385_v19 = vsel %vm616_vm2, %v2784_v21, %v1384_v6 }
 0x3e6   : > { %v1387_v44 = vsel %vm619_vm3, %v1386_v32, %v1385_v19 }
 0x3e7   : > { %v1537_v13 = vmul.f32 1.442695, %v1536_v37  ;;  %v1370_v2 = vsel %vm613_vm1, %v1369_v60, %v1368_v50  ;;  %v1545_v37 = vrot.slane %v2750_v43, 3  ;;  %v1376_v43 = vrot.slane %v2763_v59, 5 }
 0x3e8   : > { %v1371_v58 = vsel %vm616_vm2, %v2747_v38, %v1370_v2  ;;  %v1389_v4 = vsel %vm622_vm4, %v1388_v10, %v1387_v44  ;;  %v1392_v38 = vrot.slane %v2804_v56, 4  ;;  %v1557_v60 = vrot.slane %v2777_v15, 4 }
 0x3e9   : > { %2361 = vpow2.f32 %v1537_v13  ;;  %v1546_v13 = vrot.slane %v2744_v33, 2  ;;  %v1373_v52 = vsel %vm619_vm3, %v1372_v8, %v1371_v58  ;;  %v1390_v33 = vrot.slane %v2797_v45, 5 }
 0x3ea   : > { %v1375_v41 = vsel %vm622_vm4, %v1374_v9, %v1373_v52 }
 0x3eb   : > { %v2992_v61 = vpop.eup %2359  ;;  %v1377_v30 = vsel %vm625_vm5, %v1376_v43, %v1375_v41  ;;  %v1391_v31 = vsel %vm625_vm5, %v1390_v33, %v1389_v4 }
 0x3ec   : > { %v1362_v42 = vsel %vm857_vm10, %v2992_v61, 0.0  ;;  %v1379_v1 = vsel %vm628_vm6, %v1378_v63, %v1377_v30  ;;  %v1393_v22 = vsel %vm628_vm6, %v1392_v38, %v1391_v31 }
 0x3ed   : > { %1363 = vadd.xlane.f32.xlu0 %v1362_v42  ;;  %v1559_v42 = vrot.slane %v2779_v17, 3  ;;  %v1547_v17 = vsel %vm613_vm1, %v1546_v13, %v1545_v37  ;;  %v1395_v46 = vsel %vm631_vm7, %v1394_v47, %v1393_v22 }
 0x3ee   : > { %v1549_v21 = vsel %vm616_vm2, %v1548_v12, %v1547_v17 }
 0x3ef   : > { %v1550_v11 = vsel %vm619_vm3, %v2754_v49, %v1549_v21  ;;  %v1381_v49 = vsel %vm631_vm7, %v1380_v14, %v1379_v1 }
 0x3f0   : > { %v1552_v27 = vsel %vm622_vm4, %v1551_v26, %v1550_v11  ;;  %v1396_v16 = vpack.c.b16 %v1395_v46, %v1381_v49 }
 0x3f1   : > { %v1554_v59 = vsel %vm625_vm5, %v1553_v54, %v1552_v27 }
 0x3f2   : > { %v1556_v0 = vsel %vm628_vm6, %v1555_v53, %v1554_v59 }
 0x3f3   : > { %v2996_v48 = vpop.eup %2361  ;;  %v1558_v15 = vsel %vm631_vm7, %v1557_v60, %v1556_v0 }
 0x3f4   : > { %v1539_v62 = vsel %vm857_vm10, %v2996_v48, 0.0 }
 0x3f5   : > { %1540 = vadd.xlane.f32.xlu1 %v1539_v62  ;;  %v1560_v62 = vrot.slane %v2781_v18, 2 }
 0x3f7   : > { %v1561_v18 = vsel %vm613_vm1, %v1560_v62, %v1559_v42 }
 0x3f8   : > { %v1563_v28 = vsel %vm616_vm2, %v1562_v7, %v1561_v18 }
 0x3f9   : > { %v1564_v20 = vsel %vm619_vm3, %v2788_v24, %v1563_v28 }
 0x3fa   : > { %v1566_v40 = vsel %vm622_vm4, %v1565_v25, %v1564_v20 }
 0x3fb   : > { %v1568_v45 = vsel %vm625_vm5, %v1567_v29, %v1566_v40 }
 0x3fc   : > { %v1570_v3 = vsel %vm628_vm6, %v1569_v55, %v1568_v45 }
 0x3fd   : > { %v1572_v5 = vsel %vm631_vm7, %v1571_v39, %v1570_v3 }
 0x3fe   : > { %v1573_v6 = vpack.c.b16 %v1572_v5, %v1558_v15 }
 0x472   : > { %v1187_v23 = vpop.xlane.xlu1 %1186 }
 0x473   : > { %2363 = vrcp.f32 %v1187_v23 }
 0x47a   : > { %v1364_v35 = vpop.xlane.xlu0 %1363 }
 0x47b   : > { %2365 = vrcp.f32 %v1364_v35 }
 0x47d   : > { %v2364_v24 = vpop.eup %2363 }
 0x47e   : > { %v1189_v51 = vmul.f32 %v2364_v24, %v2988_v36 }
 0x480   : > { %1991 = vst.msk [vmem:[%s2924_s17 + $0x8] sm:$0xff] %vm857_vm10, %v1189_v51  ;;  %v1190_v50 = vpack.c.bf16 %v1189_v51, %v1189_v51 }
 0x482   : > { %2282 = vmatmul.mubr.msk.bf16.vlgmr.msra.gmra.mrb[4].mxu0 %vm857_vm10, %v1190_v50  ;;  %v1541_v56 = vpop.xlane.xlu1 %1540 }
 0x483   : > { %2292 = vmatpush3.bf16.msra.mxu0 %v1396_v16  ;;  %2367 = vrcp.f32 %v1541_v56  ;;  %2293 = vmatprep.mubr.msk.bf16.mxu0 %vm2434_vm0, %v3264_v34 }
 0x484   : > { %2303 = vmatprep.subr.bf16.mxu0 %v3264_v34 }
 0x485   : > { %v2366_v36 = vpop.eup %2365 }
 0x486   : > { %v1366_v2 = vmul.f32 %v2366_v36, %v2992_v61 }
 0x488   : > { %1992 = vst.msk [vmem:[%s2924_s17 + $0x10] sm:$0xff] %vm857_vm10, %v1366_v2  ;;  %v1367_v8 = vpack.c.bf16 %v1366_v2, %v1366_v2 }
 0x48a   : > { %2294 = vmatmul.mubr.msk.bf16.vlgmr.msra.gmra.mrb[8].mxu0 %vm857_vm10, %v1367_v8 }
 0x48b   : > { %2304 = vmatpush3.bf16.msra.mxu0 %v1573_v6  ;;  %2305 = vmatprep.mubr.msk.bf16.mxu0 %vm2434_vm0, %v3264_v34 }
 0x48d   : > { %v2368_v32 = vpop.eup %2367 }
 0x48e   : > { %v1543_v58 = vmul.f32 %v2368_v32, %v2996_v48 }
 0x490   : > { %1993 = vst.msk [vmem:[%s2924_s17 + $0x18] sm:$0xff] %vm857_vm10, %v1543_v58  ;;  %v1544_v19 = vpack.c.bf16 %v1543_v58, %v1543_v58 }
 0x492   : > { %2306 = vmatmul.mubr.msk.bf16.vlgmr.msra.gmra.mrb[12].mxu0 %vm857_vm10, %v1544_v19 }
 0x493   : > { %2382 = shalt.err (!%p2379_p7)
}
 0x494   : > { %s2383_s26 = scalar_lea.hbm %s3112_s6, 512  ;;  %s2387_s16 = scalar_lea.hbm %s3258_s5, 1024 }
 0x495   : > { %p2384_p10 = scmp.ne.s32.totalorder %s3112_s6, %s2383_s26  ;;  %p2388_p13 = scmp.lt.u32.totalorder %s3112_s6, %s3258_s5 }
 0x496   : > { %p2389_p0 = scmp.lt.u32.totalorder %s2387_s16, %s2383_s26  ;;  %p2391_p2 = scmp.lt.u32.totalorder %s2383_s26, %s3112_s6 }
 0x497   : > { %p2385_p11 = pnand %p2384_p10, %p2512_p6 }
 0x498   : > { %p2390_p1 = por %p2389_p0, %p2388_p13 }
 0x499   : > { %p2386_p12 = pneg %p2385_p11 }
 0x49a   : > { %p2392_p3 = por %p2391_p2, %p2390_p1 }
 0x49c   : > { %p2393_p4 = pnand %p2392_p3, %p2386_p12 }
 0x49e   : > { %2396 = shalt.err (!%p2393_p4)
}
 0x49f   : > { %s2436_s25 = smov 128   ;;  %s2437_s28 = smov 8   ;;  %v2438_v34 = vmov 1966171168   ;;  %v1623_v48 = vlaneseq  ;;  %v1619_v62 = vcombine.high %v2977_v57, %v2977_v57  ;;  %vm1946_vm11 = vcmask 1040384  }
 0x4a0   : > { %2309 = dma.vmem_to_hbm [thread:$0]  (%p2512_p6), %s3115_s9, 512, %s3112_s6, %s3119_s10, %s2436_s25, %s2436_s25, %s2437_s28   ;;  %v1621_v61 = vunpack.c.l.s4 %v2438_v34  ;;  %vm1955_vm12 = vcmask 1041408   ;;  %vm1964_vm13 = vcmask 1042432   ;;  %vm1981_vm14 = vcmask 58368  }
 0x4a1   : > { %v1624_v13 = vshrl.u32 %v1623_v48, 7  ;;  %s497_s9 = scalar_lea.vmem %s3257_s4, %s2242_s8 }
 0x4a2   : > { %v1622_v37 = vunpack.c.0.s8 %v1621_v61 }
 0x4a3   : > { %v3154_v41 = vsub.s32 0, %v1624_v13 }
 0x4a4   : > { %v3143_v42 = vsub.s32 %v1622_v37, %v1624_v13 }
 0x4a6   : > { %v1626_v9 = vrot.slane %v2977_v57, %v3143_v42  ;;  %v1633_v10 = vrot.slane %v1619_v62, %v3143_v42 }
 0x4a8   : > { %v1634_v52 = vcombine.high %v1626_v9, %v1626_v9  ;;  %v1635_v44 = vcombine.high %v1633_v10, %v1633_v10  ;;  %v1642_v33 = vrot.slane %v1626_v9, %v3143_v42  ;;  %v1649_v17 = vrot.slane %v1633_v10, %v3143_v42 }
 0x4aa   : > { %v1656_v18 = vrot.slane %v1634_v52, %v3143_v42  ;;  %v1663_v28 = vrot.slane %v1635_v44, %v3143_v42  ;;  %v1664_v14 = vcombine.high %v1642_v33, %v1642_v33  ;;  %v1665_v47 = vcombine.high %v1649_v17, %v1649_v17 }
 0x4ac   : > { %v1666_v11 = vcombine.high %v1656_v18, %v1656_v18  ;;  %v1667_v29 = vcombine.high %v1663_v28, %v1663_v28 }
 0x555   : > { %v1258_v12 = vpop.f32.mrb[4].mxu0 }
 0x556   : > { %v1677_v7 = vcombine.high %v1258_v12, %v1258_v12  ;;  %v1684_v23 = vrot.slane %v1258_v12, %v3143_v42  ;;  %v2283_v43 = vpop.f32.mrb[5].mxu0 }
 0x557   : > { %v1261_v4 = vpop.f32.mrb[6].mxu0 }
 0x558   : > { %v1691_v57 = vrot.slane %v1677_v7, %v3143_v42  ;;  %v1692_v63 = vcombine.high %v1684_v23, %v1684_v23  ;;  %v1700_v38 = vrot.slane %v1684_v23, %v3143_v42  ;;  %v2284_v21 = vpop.f32.mrb[7].mxu0 }
 0x55a   : > { %v1693_v30 = vcombine.high %v1691_v57, %v1691_v57  ;;  %v1707_v31 = vrot.slane %v1691_v57, %v3143_v42  ;;  %v1714_v26 = vrot.slane %v1692_v63, %v3143_v42  ;;  %v1722_v25 = vcombine.high %v1700_v38, %v1700_v38 }
 0x55b   : > { %v1829_v20 = vrot.slane %v1700_v38, %v3154_v41 }
 0x55c   : > { %v1721_v1 = vrot.slane %v1693_v30, %v3143_v42  ;;  %v1723_v22 = vcombine.high %v1707_v31, %v1707_v31  ;;  %v1724_v35 = vcombine.high %v1714_v26, %v1714_v26  ;;  %v1833_v54 = vrot.slane %v1714_v26, %v3154_v41 }
 0x55d   : > { %v1837_v27 = vrot.slane %v1722_v25, %v3154_v41  ;;  %v1845_v40 = vrot.slane %v1707_v31, %v3154_v41  ;;  %v1947_v49 = vsel %vm1946_vm11, %v1642_v33, %v1829_v20  ;;  %v1435_v46 = vpop.f32.mrb[8].mxu0 }
 0x55e   : > { %v1725_v24 = vcombine.high %v1721_v1, %v1721_v1  ;;  %v1841_v53 = vrot.slane %v1724_v35, %v3154_v41  ;;  %v1849_v55 = vrot.slane %v1721_v1, %v3154_v41  ;;  %v1853_v51 = vrot.slane %v1723_v22, %v3154_v41  ;;  %v2295_v59 = vpop.f32.mrb[9].mxu0 }
 0x55f   : > { %v1948_v45 = vsel %vm1946_vm11, %v1656_v18, %v1833_v54  ;;  %v1949_v16 = vsel %vm1946_vm11, %v1664_v14, %v1837_v27  ;;  %v1951_v50 = vsel %vm1946_vm11, %v1649_v17, %v1845_v40  ;;  %v1727_v60 = vcombine.high %v1435_v46, %v1435_v46  ;;  %v1438_v39 = vpop.f32.mrb[10].mxu0 }
 0x560   : > { %v1857_v0 = vrot.slane %v1725_v24, %v3154_v41  ;;  %v1950_v3 = vsel %vm1946_vm11, %v1666_v11, %v1841_v53  ;;  %v1952_v56 = vsel %vm1946_vm11, %v1663_v28, %v1849_v55  ;;  %v1953_v15 = vsel %vm1946_vm11, %v1665_v47, %v1853_v51  ;;  %v2296_v5 = vpop.f32.mrb[11].mxu0 }
 0x561   : > { %v1734_v36 = vrot.slane %v1435_v46, %v3143_v42  ;;  %v1741_v2 = vrot.slane %v1727_v60, %v3143_v42 }
 0x562   : > { %v1954_v6 = vsel %vm1946_vm11, %v1667_v29, %v1857_v0 }
 0x563   : > { %v1742_v8 = vcombine.high %v1734_v36, %v1734_v36  ;;  %v1743_v32 = vcombine.high %v1741_v2, %v1741_v2  ;;  %v1750_v58 = vrot.slane %v1734_v36, %v3143_v42  ;;  %v1757_v19 = vrot.slane %v1741_v2, %v3143_v42 }
 0x565   : > { %v1764_v34 = vrot.slane %v1742_v8, %v3143_v42  ;;  %v1771_v61 = vrot.slane %v1743_v32, %v3143_v42  ;;  %v1772_v48 = vcombine.high %v1750_v58, %v1750_v58  ;;  %v1773_v37 = vcombine.high %v1757_v19, %v1757_v19  ;;  %v1612_v13 = vpop.f32.mrb[12].mxu0 }
 0x566   : > { %v1869_v62 = vrot.slane %v1750_v58, %v3154_v41  ;;  %v1885_v9 = vrot.slane %v1757_v19, %v3154_v41  ;;  %v1777_v10 = vcombine.high %v1612_v13, %v1612_v13  ;;  %v1784_v52 = vrot.slane %v1612_v13, %v3143_v42  ;;  %v2307_v44 = vpop.f32.mrb[13].mxu0 }
 0x567   : > { %v1774_v12 = vcombine.high %v1764_v34, %v1764_v34  ;;  %v1775_v7 = vcombine.high %v1771_v61, %v1771_v61  ;;  %v1873_v23 = vrot.slane %v1764_v34, %v3154_v41  ;;  %v1877_v43 = vrot.slane %v1772_v48, %v3154_v41  ;;  %v1615_v33 = vpop.f32.mrb[14].mxu0 }
 0x568   : > { %v1889_v17 = vrot.slane %v1771_v61, %v3154_v41  ;;  %v1893_v18 = vrot.slane %v1773_v37, %v3154_v41  ;;  %v1956_v4 = vsel %vm1955_vm12, %v1947_v49, %v1869_v62  ;;  %v1960_v57 = vsel %vm1955_vm12, %v1951_v50, %v1885_v9  ;;  %v2308_v63 = vpop.f32.mrb[15].mxu0 }
 0x569   : > { %v1881_v38 = vrot.slane %v1774_v12, %v3154_v41  ;;  %v1897_v21 = vrot.slane %v1775_v7, %v3154_v41  ;;  %v1957_v28 = vsel %vm1955_vm12, %v1948_v45, %v1873_v23  ;;  %v1958_v30 = vsel %vm1955_vm12, %v1949_v16, %v1877_v43 }
 0x56a   : > { %v1961_v31 = vsel %vm1955_vm12, %v1952_v56, %v1889_v17  ;;  %v1962_v26 = vsel %vm1955_vm12, %v1953_v15, %v1893_v18  ;;  %v1791_v25 = vrot.slane %v1777_v10, %v3143_v42  ;;  %v1792_v14 = vcombine.high %v1784_v52, %v1784_v52 }
 0x56b   : > { %v1959_v47 = vsel %vm1955_vm12, %v1950_v3, %v1881_v38  ;;  %v1963_v11 = vsel %vm1955_vm12, %v1954_v6, %v1897_v21  ;;  %v1800_v20 = vrot.slane %v1784_v52, %v3143_v42 }
 0x56c   : > { %v1793_v1 = vcombine.high %v1791_v25, %v1791_v25  ;;  %v1807_v22 = vrot.slane %v1791_v25, %v3143_v42  ;;  %v1814_v35 = vrot.slane %v1792_v14, %v3143_v42 }
 0x56d   : > { %v1822_v54 = vcombine.high %v1800_v20, %v1800_v20  ;;  %v1909_v29 = vrot.slane %v1800_v20, %v3154_v41 }
 0x56e   : > { %v1821_v27 = vrot.slane %v1793_v1, %v3143_v42  ;;  %v1823_v40 = vcombine.high %v1807_v22, %v1807_v22  ;;  %v1824_v49 = vcombine.high %v1814_v35, %v1814_v35  ;;  %v1913_v46 = vrot.slane %v1814_v35, %v3154_v41 }
 0x56f   : > { %v1917_v24 = vrot.slane %v1822_v54, %v3154_v41  ;;  %v1925_v53 = vrot.slane %v1807_v22, %v3154_v41  ;;  %v1965_v55 = vsel %vm1964_vm13, %v1956_v4, %v1909_v29 }
 0x570   : > { %v1825_v51 = vcombine.high %v1821_v27, %v1821_v27  ;;  %v1921_v59 = vrot.slane %v1824_v49, %v3154_v41  ;;  %v1929_v42 = vrot.slane %v1821_v27, %v3154_v41  ;;  %v1933_v45 = vrot.slane %v1823_v40, %v3154_v41 }
 0x571   : > { %v1966_v16 = vsel %vm1964_vm13, %v1957_v28, %v1913_v46  ;;  %v1967_v50 = vsel %vm1964_vm13, %v1958_v30, %v1917_v24  ;;  %v1969_v60 = vsel %vm1964_vm13, %v1960_v57, %v1925_v53  ;;  %v1973_v39 = vpack.c.bf16 %v1965_v55, %v1965_v55 }
 0x572   : > { %v1937_v0 = vrot.slane %v1825_v51, %v3154_v41  ;;  %v1968_v3 = vsel %vm1964_vm13, %v1959_v47, %v1921_v59  ;;  %v1970_v56 = vsel %vm1964_vm13, %v1961_v31, %v1929_v42  ;;  %v1971_v15 = vsel %vm1964_vm13, %v1962_v26, %v1933_v45 }
 0x573   : > { %v1974_v5 = vpack.c.bf16 %v1966_v16, %v1966_v16  ;;  %v1975_v36 = vpack.c.bf16 %v1967_v50, %v1967_v50  ;;  %v1976_v2 = vpack.c.bf16 %v1968_v3, %v1968_v3  ;;  %v1977_v6 = vpack.c.bf16 %v1969_v60, %v1969_v60  ;;  %1982 = vst.msk [vmem:[%s497_s9] sm:$0x3] %vm1981_vm14, %v1973_v39 }
 0x574   : > { %v1972_v8 = vsel %vm1964_vm13, %v1963_v11, %v1937_v0  ;;  %v1978_v32 = vpack.c.bf16 %v1970_v56, %v1970_v56  ;;  %v1979_v58 = vpack.c.bf16 %v1971_v15, %v1971_v15 }
 0x575   : > { %v1980_v19 = vpack.c.bf16 %v1972_v8, %v1972_v8  ;;  %1983 = vst.msk [vmem:[%s497_s9 + $0x2] sm:$0x3] %vm1981_vm14, %v1974_v5  ;;  %1984 = vst.msk [vmem:[%s497_s9 + $0x4] sm:$0x3] %vm1981_vm14, %v1975_v36 }
 0x576   : > { %1985 = vst.msk [vmem:[%s497_s9 + $0x6] sm:$0x3] %vm1981_vm14, %v1976_v2  ;;  %1986 = vst.msk [vmem:[%s497_s9 + $0x8] sm:$0x3] %vm1981_vm14, %v1977_v6 }
 0x577   : > { %1987 = vst.msk [vmem:[%s497_s9 + $0xa] sm:$0x3] %vm1981_vm14, %v1978_v32  ;;  %1988 = vst.msk [vmem:[%s497_s9 + $0xc] sm:$0x3] %vm1981_vm14, %v1979_v58 }
 0x578   : > { %1989 = vst.msk [vmem:[%s497_s9 + $0xe] sm:$0x3] %vm1981_vm14, %v1980_v19 }
 0x579 PF: > { %s2039_s7 = sand.u32 1, %s2419_s18   ;;  %p2312_p6 = pnand %p2155_p9, %p2516_p8 }
 0x57a   : > { %s2040_s8 = scalar_lea.sflag [#allocation5], %s2039_s7 }
 0x57b   : > { %2414 = dma.done.wait (!%p2312_p6), %s2040_s8, 512  }
 0x57c   : > { %2416 = vsyncadd (!%p2312_p6), %s2040_s8, 4294966784  ;;  %p16_p5 = scmp.ge.s32.totalorder %s2494_s24, 4   ;;  %s3265_s18 = smov %s2423_s19 }
 0x57d   : > { %s3266_s19 = smov %s2427_s20  ;;  %s3267_s20 = smov %s2506_s27 }
 0x57e   : > { %s3268_s21 = smov %s2494_s24  ;;  %18 = sbr.rel (!%p16_p5) target bundleno = 3 (0x3), region = 184 }
 0x585   :  { %2045 = vsyncpa [#allocation5], 1 }
 0x586   :  { %2047 = vsyncpa [#allocation5 + $0x1], 1 }

</bundles_post_ra>
